<compile_context>
chip_gen: v6e
topology: v6e:2x2x1
jax: 0.10.0
libtpu: 0.0.40
codegen_flags: <defaults>
</compile_context>

<pallas_src>
import jax
import jax.numpy as jnp
from jax.experimental import pallas as pl
from jax.experimental.pallas import tpu as pltpu

VMEM = pl.BlockSpec(memory_space=pltpu.MemorySpace.VMEM)


# --------------------------------------------------------------------------
# Hoisted input-projection GEMM (bf16 MXU, f32 accumulate)
# --------------------------------------------------------------------------
def _dense_kernel(x_ref, w_ref, o_ref):
    o_ref[...] = jnp.dot(x_ref[...], w_ref[...],
                         preferred_element_type=jnp.float32)


def dense_bf16(x_bf16, w_bf16):
    M = x_bf16.shape[0]
    N = w_bf16.shape[1]
    return pl.pallas_call(
        _dense_kernel,
        out_shape=jax.ShapeDtypeStruct((M, N), jnp.float32),
        in_specs=[VMEM, VMEM],
        out_specs=VMEM,
    )(x_bf16, w_bf16)


# --------------------------------------------------------------------------
# Fused bidirectional-encoder LSTM recurrence: grid = (2 directions, S)
# --------------------------------------------------------------------------
def _enc_lstm_kernel(xproj_ref, whh_ref, b_ref, h0_ref, c0_ref,
                     hseq_ref, clast_ref, h_sc, c_sc):
    s = pl.program_id(1)

    @pl.when(s == 0)
    def _():
        h_sc[...] = h0_ref[0]
        c_sc[...] = c0_ref[0]

    h = h_sc[...]                                   # (B, H) f32
    c = c_sc[...]
    H = h.shape[-1]
    gates = (xproj_ref[0, 0]                        # hoisted x @ W_ih  (B, 4H)
             + jnp.dot(h.astype(jnp.bfloat16), whh_ref[0],
                       preferred_element_type=jnp.float32)
             + b_ref[0])
    i = jax.nn.sigmoid(gates[:, 0 * H:1 * H])       # PyTorch gate order i,f,g,o
    f = jax.nn.sigmoid(gates[:, 1 * H:2 * H])
    g = jnp.tanh(gates[:, 2 * H:3 * H])
    o = jax.nn.sigmoid(gates[:, 3 * H:4 * H])
    c_new = f * c + i * g
    h_new = o * jnp.tanh(c_new)
    h_sc[...] = h_new
    c_sc[...] = c_new
    hseq_ref[0, 0] = h_new
    clast_ref[0] = c_new                            # last write wins (final cell)


def encoder_lstm(xproj, whh, b, h0, c0):
    _, S, B, H4 = xproj.shape
    H = H4 // 4
    grid_spec = pltpu.PrefetchScalarGridSpec(
        num_scalar_prefetch=0,
        grid=(2, S),
        in_specs=[
            pl.BlockSpec((1, 1, B, H4), lambda d, s: (d, s, 0, 0)),  # x @ W_ih
            pl.BlockSpec((1, H, H4), lambda d, s: (d, 0, 0)),        # W_hh (res.)
            pl.BlockSpec((1, 1, H4), lambda d, s: (d, 0, 0)),        # bias (res.)
            pl.BlockSpec((1, B, H), lambda d, s: (d, 0, 0)),         # h0
            pl.BlockSpec((1, B, H), lambda d, s: (d, 0, 0)),         # c0
        ],
        out_specs=(
            pl.BlockSpec((1, 1, B, H), lambda d, s: (d, s, 0, 0)),   # h sequence
            pl.BlockSpec((1, B, H), lambda d, s: (d, 0, 0)),         # final c
        ),
        scratch_shapes=[pltpu.VMEM((B, H), jnp.float32),
                        pltpu.VMEM((B, H), jnp.float32)],
    )
    return pl.pallas_call(
        _enc_lstm_kernel,
        out_shape=(jax.ShapeDtypeStruct((2, S, B, H), jnp.float32),
                   jax.ShapeDtypeStruct((2, B, H), jnp.float32)),
        grid_spec=grid_spec,
        compiler_params=pltpu.CompilerParams(
            dimension_semantics=("parallel", "arbitrary")),
    )(xproj, whh, b, h0, c0)


# --------------------------------------------------------------------------
# Fully fused decoder step: grid = (T,), state carried in VMEM scratch
# --------------------------------------------------------------------------
def _decoder_kernel(xproj_ref, enc_ref, h0_ref, c0_ref,
                    w_ea_ref, w_da_ref, w_et_ref, w_dt_ref, whh_ref, b_ref,
                    fcw_ref, fcb_ref,
                    logp_ref, hN_ref, cN_ref,
                    h_sc, c_sc, acc_sc, buf_sc):
    t = pl.program_id(0)
    B, T, D = buf_sc.shape

    @pl.when(t == 0)
    def _():
        h_sc[...] = h0_ref[...]
        c_sc[...] = c0_ref[...]
        acc_sc[...] = jnp.zeros_like(acc_sc)
        buf_sc[...] = jnp.zeros_like(buf_sc)

    h = h_sc[...]                                   # (B, D) previous hidden
    c = c_sc[...]
    h_bf = h.astype(jnp.bfloat16)
    enc = enc_ref[...]                              # (B, S, D) f32, VMEM resident

    # ---- intra-encoder (temporal) attention --------------------------------
    hw = jnp.dot(h_bf, w_ea_ref[...],
                 preferred_element_type=jnp.float32)                    # (B, D)
    scores = jnp.einsum('bqd,bsd->bqs', hw[:, None, :], enc,
                        preferred_element_type=jnp.float32)[:, 0, :]    # (B, S)
    exp_e = jnp.exp(scores)
    denom = jnp.where(t == 0, jnp.ones_like(exp_e), acc_sc[...])
    e_prime = exp_e * pl.reciprocal(denom, approx=True)
    alpha = e_prime * pl.reciprocal(
        jnp.sum(e_prime, axis=-1, keepdims=True), approx=True)
    ctx_et = jnp.einsum('bqs,bsd->bqd', alpha[:, None, :], enc,
                        preferred_element_type=jnp.float32)[:, 0, :]    # (B, D)
    acc_sc[...] = acc_sc[...] + exp_e

    # ---- intra-decoder attention over past decoder outputs -----------------
    buf = buf_sc[...]                               # (B, T, D); rows >= t are zero
    hwd = jnp.dot(h_bf, w_da_ref[...],
                  preferred_element_type=jnp.float32)                   # (B, D)
    sc_d = jnp.einsum('bqd,btd->bqt', hwd[:, None, :], buf,
                      preferred_element_type=jnp.float32)[:, 0, :]      # (B, T)
    tidx = jax.lax.broadcasted_iota(jnp.int32, (B, T), 1)
    sc_d = jnp.where(tidx < t, sc_d, -1e30)
    sc_d = sc_d - jnp.max(sc_d, axis=-1, keepdims=True)
    e_d = jnp.exp(sc_d)
    alpha_d = e_d * pl.reciprocal(
        jnp.sum(e_d, axis=-1, keepdims=True), approx=True)
    ctx_dt = jnp.einsum('bqt,btd->bqd', alpha_d[:, None, :], buf,
                        preferred_element_type=jnp.float32)[:, 0, :]    # (B, D)
    ctx_dt = jnp.where(t > 0, ctx_dt, 0.0)          # reproduces the i == 0 branch

    # ---- decoder LSTM cell (input = [embed | ctx_et | ctx_dt]) --------------
    gates = (xproj_ref[0]                           # hoisted embed @ W_ih part
             + jnp.dot(ctx_et.astype(jnp.bfloat16), w_et_ref[...],
                       preferred_element_type=jnp.float32)
             + jnp.dot(ctx_dt.astype(jnp.bfloat16), w_dt_ref[...],
                       preferred_element_type=jnp.float32)
             + jnp.dot(h_bf, whh_ref[...],
                       preferred_element_type=jnp.float32)
             + b_ref[...])                                              # (B, 4D)
    i_g = jax.nn.sigmoid(gates[:, 0 * D:1 * D])
    f_g = jax.nn.sigmoid(gates[:, 1 * D:2 * D])
    g_g = jnp.tanh(gates[:, 2 * D:3 * D])
    o_g = jax.nn.sigmoid(gates[:, 3 * D:4 * D])
    c_new = f_g * c + i_g * g_g
    h_new = o_g * jnp.tanh(c_new)
    h_sc[...] = h_new
    c_sc[...] = c_new

    # append h_new at row t of the past-output buffer (iota select, no DMA)
    sel = jax.lax.broadcasted_iota(jnp.int32, (B, T, D), 1) == t
    buf_sc[...] = jnp.where(sel, h_new[:, None, :], buf)

    # ---- fc_vocab + log_softmax (weight split avoids in-kernel concat) ------
    logits = (jnp.dot(h_new.astype(jnp.bfloat16), fcw_ref[0:D, :],
                      preferred_element_type=jnp.float32)
              + jnp.dot(ctx_et.astype(jnp.bfloat16), fcw_ref[D:2 * D, :],
                        preferred_element_type=jnp.float32)
              + jnp.dot(ctx_dt.astype(jnp.bfloat16), fcw_ref[2 * D:3 * D, :],
                        preferred_element_type=jnp.float32)
              + fcb_ref[...])                                           # (B, V)
    m = jnp.max(logits, axis=-1, keepdims=True)
    sh = logits - m
    lse = jnp.log(jnp.sum(jnp.exp(sh), axis=-1, keepdims=True))
    logp_ref[0] = sh - lse
    hN_ref[...] = h_new
    cN_ref[...] = c_new


def decoder_run(xproj, enc, h0, c0, params):
    T, B, D4 = xproj.shape
    D = D4 // 4
    S = enc.shape[1]
    V = params['fc_vocab_w'].shape[1]
    grid_spec = pltpu.PrefetchScalarGridSpec(
        num_scalar_prefetch=0,
        grid=(T,),
        in_specs=[
            pl.BlockSpec((1, B, D4), lambda t: (t, 0, 0)),   # per-step embed proj
            pl.BlockSpec((B, S, D), lambda t: (0, 0, 0)),    # encoder outputs (res.)
            pl.BlockSpec((B, D), lambda t: (0, 0)),          # decoder h0
            pl.BlockSpec((B, D), lambda t: (0, 0)),          # decoder c0
            pl.BlockSpec((D, D), lambda t: (0, 0)),          # W intra-enc attn
            pl.BlockSpec((D, D), lambda t: (0, 0)),          # W intra-dec attn
            pl.BlockSpec((D, D4), lambda t: (0, 0)),         # W_ih[ctx_et]
            pl.BlockSpec((D, D4), lambda t: (0, 0)),         # W_ih[ctx_dt]
            pl.BlockSpec((D, D4), lambda t: (0, 0)),         # W_hh
            pl.BlockSpec((1, D4), lambda t: (0, 0)),         # decoder bias
            pl.BlockSpec((3 * D, V), lambda t: (0, 0)),      # fc_vocab W (resident)
            pl.BlockSpec((1, V), lambda t: (0, 0)),          # fc_vocab b
        ],
        out_specs=(
            pl.BlockSpec((1, B, V), lambda t: (t, 0, 0)),    # log-probs (lane-dense)
            pl.BlockSpec((B, D), lambda t: (0, 0)),          # final h
            pl.BlockSpec((B, D), lambda t: (0, 0)),          # final c
        ),
        scratch_shapes=[pltpu.VMEM((B, D), jnp.float32),     # h state
                        pltpu.VMEM((B, D), jnp.float32),     # c state
                        pltpu.VMEM((B, S), jnp.float32),     # temporal-attn acc
                        pltpu.VMEM((B, T, D), jnp.float32)], # past decoder outputs
    )
    return pl.pallas_call(
        _decoder_kernel,
        out_shape=(jax.ShapeDtypeStruct((T, B, V), jnp.float32),
                   jax.ShapeDtypeStruct((B, D), jnp.float32),
                   jax.ShapeDtypeStruct((B, D), jnp.float32)),
        grid_spec=grid_spec,
        compiler_params=pltpu.CompilerParams(
            dimension_semantics=("arbitrary",)),
    )(xproj, enc, h0, c0,
      params['w_enc_attn'], params['w_dec_attn'],
      params['dec_w_et'], params['dec_w_dt'], params['dec_whh'],
      params['dec_b'], params['fc_vocab_w'], params['fc_vocab_b'])


# --------------------------------------------------------------------------
# Parameter init (deterministic, synthetic; bf16 matmul weights, f32 biases)
# --------------------------------------------------------------------------
def init_params(key, enc_vocab, dec_vocab, embed_size, hidden_size):
    E, H = embed_size, hidden_size
    D = 2 * H
    ks = jax.random.split(key, 16)

    def nrm(k, shape, dtype=jnp.bfloat16, scale=0.1):
        return (scale * jax.random.normal(k, shape)).astype(dtype)

    return dict(
        embedding=nrm(ks[0], (enc_vocab, E), jnp.float32),
        # encoder bi-LSTM input weights of both directions packed (E, 2*4H) so
        # the hoisted x @ W_ih is a single GEMM covering fwd+bwd.
        enc_wih=nrm(ks[1], (E, 2 * 4 * H)),
        enc_whh=nrm(ks[2], (2, H, 4 * H)),
        enc_b=nrm(ks[3], (2, 1, 4 * H), jnp.float32),
        # decoder LSTM (input E + 2D, hidden D); W_ih split by input segment.
        dec_w_embed=nrm(ks[4], (E, 4 * D)),
        dec_w_et=nrm(ks[5], (D, 4 * D)),
        dec_w_dt=nrm(ks[6], (D, 4 * D)),
        dec_whh=nrm(ks[7], (D, 4 * D)),
        dec_b=nrm(ks[8], (1, 4 * D), jnp.float32),
        # attentions (bilinear "general" weights, D x D)
        w_enc_attn=nrm(ks[9], (D, D)),
        w_dec_attn=nrm(ks[10], (D, D)),
        # fc_vocab (3D -> V)
        fc_vocab_w=nrm(ks[11], (3 * D, dec_vocab)),
        fc_vocab_b=nrm(ks[12], (1, dec_vocab), jnp.float32),
        # fc_gen / sigmoid: present in the module, unused in forward.
        fc_gen_w=nrm(ks[13], (3 * D, 1)),
        fc_gen_b=nrm(ks[14], (1, 1), jnp.float32),
    )


# --------------------------------------------------------------------------
# Forward pass (mirrors IntraEncoderDecoder.forward)
# --------------------------------------------------------------------------
def forward(params, encoder_inputs, encoder_init_hidden, decoder_inputs,
            ext_oov_sizes=None, enc_idxes_on_ext_voc=None):
    del ext_oov_sizes, enc_idxes_on_ext_voc   # unused by the reference forward
    emb = params['embedding']
    E = emb.shape[1]
    H = params['enc_whh'].shape[1]
    D = 2 * H
    B, S = encoder_inputs.shape
    T = decoder_inputs.shape[1]

    # ---- encoder: bidirectional LSTM ---------------------------------------
    enc_embeds = emb[encoder_inputs]                              # (B, S, E) gather
    xproj_all = dense_bf16(enc_embeds.reshape(B * S, E).astype(jnp.bfloat16),
                           params['enc_wih'])                     # (B*S, 8H)
    xproj_all = xproj_all.reshape(B, S, 2, 4 * H)
    xp_f = jnp.transpose(xproj_all[:, :, 0, :], (1, 0, 2))        # (S, B, 4H)
    xp_b = jnp.transpose(xproj_all[:, :, 1, :], (1, 0, 2))[::-1]  # time-reversed
    xproj_enc = jnp.stack([xp_f, xp_b], axis=0)                   # (2, S, B, 4H)

    h0, c0 = encoder_init_hidden                                  # (2, B, H) each
    hseq, clast = encoder_lstm(xproj_enc, params['enc_whh'], params['enc_b'],
                               h0, c0)
    fwd_seq = jnp.transpose(hseq[0], (1, 0, 2))                   # (B, S, H)
    bwd_seq = jnp.transpose(hseq[1][::-1], (1, 0, 2))             # (B, S, H)
    encoder_outputs = jnp.concatenate([fwd_seq, bwd_seq], axis=-1)  # (B, S, 2H)

    dec_h0 = jnp.concatenate([hseq[0, -1], hseq[1, -1]], axis=-1)   # (B, 2H)
    dec_c0 = jnp.concatenate([clast[0], clast[1]], axis=-1)         # (B, 2H)

    # ---- decoder: fully fused per-step kernel ------------------------------
    dec_embeds = emb[decoder_inputs]                              # (B, T, E)
    dxp = dense_bf16(dec_embeds.reshape(B * T, E).astype(jnp.bfloat16),
                     params['dec_w_embed'])                       # (B*T, 4D)
    dxp = jnp.transpose(dxp.reshape(B, T, 4 * D), (1, 0, 2))      # (T, B, 4D)

    logp_tbv, h_n, c_n = decoder_run(dxp, encoder_outputs, dec_h0, dec_c0,
                                     params)
    output_dists = jnp.transpose(logp_tbv, (1, 0, 2))             # (B, T, V)
    last_hidden = (h_n[None, :, :], c_n[None, :, :])              # (1, B, 2H) each
    return output_dists, last_hidden


# --------------------------------------------------------------------------
if __name__ == "__main__":
    key = jax.random.PRNGKey(0)
    # Small but hardware-aligned demo shapes: batch multiple of 8 (sublanes),
    # hidden / gate / vocab dims multiples of 128 (lanes).
    B, S_enc, T_dec = 8, 8, 8
    enc_vocab, dec_vocab, E, H = 512, 256, 128, 128

    k_par, k_enc, k_dec = jax.random.split(key, 3)
    params = init_params(k_par, enc_vocab, dec_vocab, E, H)

    encoder_inputs = jax.random.randint(k_enc, (B, S_enc), 0, enc_vocab)
    # shared embedding => decoder token ids drawn from encoder vocab range
    decoder_inputs = jax.random.randint(k_dec, (B, T_dec), 0, enc_vocab)
    encoder_init_hidden = (jnp.zeros((2, B, H), jnp.float32),
                           jnp.zeros((2, B, H), jnp.float32))

    fwd = jax.jit(forward)
    output_dists, (h_n, c_n) = fwd(params, encoder_inputs, encoder_init_hidden,
                                   decoder_inputs)
    jax.block_until_ready(output_dists)
    jax.block_until_ready(h_n)
    jax.block_until_ready(c_n)

    assert output_dists.shape == (B, T_dec, dec_vocab)
    assert h_n.shape == (1, B, 2 * H) and c_n.shape == (1, B, 2 * H)
    # log_softmax sanity: each row sums to ~1 in prob space and is finite
    probs_sum = jnp.exp(output_dists).sum(-1)
    assert bool(jnp.all(jnp.abs(probs_sum - 1.0) < 1e-3))
    assert bool(jnp.all(jnp.isfinite(output_dists)))

    print("KERNEL_OK")
</pallas_src>

<mosaic_0001>
module attributes {stable_mosaic.version = 11 : i64} {
  func.func @_dense_kernel(%arg0: memref<64x128xbf16, #tpu.memory_space<vmem>>, %arg1: memref<128x1024xbf16, #tpu.memory_space<vmem>>, %arg2: memref<64x1024xf32, #tpu.memory_space<vmem>>) attributes {dimension_semantics = [], scalar_prefetch = 0 : i64, scratch_operands = 0 : i64, tpu.core_type = #tpu.core_type<tc>} {
    %c0 = arith.constant 0 : index
    %c0_0 = arith.constant 0 : index
    %0 = vector.load %arg0[%c0, %c0_0] : memref<64x128xbf16, #tpu.memory_space<vmem>>, vector<64x128xbf16>
    %c0_1 = arith.constant 0 : index
    %c0_2 = arith.constant 0 : index
    %1 = vector.load %arg1[%c0_1, %c0_2] : memref<128x1024xbf16, #tpu.memory_space<vmem>>, vector<128x1024xbf16>
    %cst = arith.constant dense<0.000000e+00> : vector<64x1024xf32>
    %2 = tpu.matmul %0, %1, %cst {dimension_numbers = #tpu.dot_dimension_numbers<[1], [0], [0], [1], [0, 0, 1, 1], [], []>} : vector<64x128xbf16>, vector<128x1024xbf16>, vector<64x1024xf32> -> vector<64x1024xf32>
    %c0_3 = arith.constant 0 : index
    %c0_4 = arith.constant 0 : index
    %3 = vector.load %arg2[%c0_3, %c0_4] : memref<64x1024xf32, #tpu.memory_space<vmem>>, vector<64x1024xf32>
    tpu.vector_store %arg2[%c0_3, %c0_4], %2 {strides = array<i32>} : memref<64x1024xf32, #tpu.memory_space<vmem>>, vector<64x1024xf32>,
    return
  }
}

module attributes {stable_mosaic.version = 11 : i64} {
  func.func @_enc_lstm_kernel(%arg0: i32, %arg1: i32, %arg2: memref<1x1x8x512xf32, #tpu.memory_space<vmem>>, %arg3: memref<1x128x512xbf16, #tpu.memory_space<vmem>>, %arg4: memref<1x1x512xf32, #tpu.memory_space<vmem>>, %arg5: memref<1x8x128xf32, #tpu.memory_space<vmem>>, %arg6: memref<1x8x128xf32, #tpu.memory_space<vmem>>, %arg7: memref<1x1x8x128xf32, #tpu.memory_space<vmem>>, %arg8: memref<1x8x128xf32, #tpu.memory_space<vmem>>, %arg9: memref<8x128xf32, #tpu.memory_space<vmem>>, %arg10: memref<8x128xf32, #tpu.memory_space<vmem>>) attributes {dimension_semantics = [#tpu.dimension_semantics<parallel>, #tpu.dimension_semantics<arbitrary>], iteration_bounds = array<i64: 2, 8>, scalar_prefetch = 0 : i64, scratch_operands = 2 : i64, tpu.core_type = #tpu.core_type<tc>, window_params = [{transform_indices = @transform_0, window_bounds = array<i64: 1, 1, 8, 512>}, {transform_indices = @transform_1, window_bounds = array<i64: 1, 128, 512>}, {transform_indices = @transform_2, window_bounds = array<i64: 1, 1, 512>}, {transform_indices = @transform_3, window_bounds = array<i64: 1, 8, 128>}, {transform_indices = @transform_4, window_bounds = array<i64: 1, 8, 128>}, {transform_indices = @transform_5, window_bounds = array<i64: 1, 1, 8, 128>}, {transform_indices = @transform_6, window_bounds = array<i64: 1, 8, 128>}]} {
    %c0_i32 = arith.constant 0 : i32
    %0 = arith.cmpi eq, %arg1, %c0_i32 : i32
    %1 = arith.extui %0 : i1 to i32
    %c0_i32_0 = arith.constant 0 : i32
    %2 = arith.cmpi ne, %1, %c0_i32_0 : i32
    scf.if %2 {
      %c0_28 = arith.constant 0 : index
      %c0_29 = arith.constant 0 : index
      %c0_30 = arith.constant 0 : index
      %49 = vector.load %arg5[%c0_28, %c0_29, %c0_30] : memref<1x8x128xf32, #tpu.memory_space<vmem>>, vector<1x8x128xf32>
      %50 = vector.shape_cast %49 : vector<1x8x128xf32> to vector<8x128xf32>
      %c0_31 = arith.constant 0 : index
      %c0_32 = arith.constant 0 : index
      %51 = vector.load %arg9[%c0_31, %c0_32] : memref<8x128xf32, #tpu.memory_space<vmem>>, vector<8x128xf32>
      tpu.vector_store %arg9[%c0_31, %c0_32], %50 {strides = array<i32>} : memref<8x128xf32, #tpu.memory_space<vmem>>, vector<8x128xf32>,
      %c0_33 = arith.constant 0 : index
      %c0_34 = arith.constant 0 : index
      %c0_35 = arith.constant 0 : index
      %52 = vector.load %arg6[%c0_33, %c0_34, %c0_35] : memref<1x8x128xf32, #tpu.memory_space<vmem>>, vector<1x8x128xf32>
      %53 = vector.shape_cast %52 : vector<1x8x128xf32> to vector<8x128xf32>
      %c0_36 = arith.constant 0 : index
      %c0_37 = arith.constant 0 : index
      %54 = vector.load %arg10[%c0_36, %c0_37] : memref<8x128xf32, #tpu.memory_space<vmem>>, vector<8x128xf32>
      tpu.vector_store %arg10[%c0_36, %c0_37], %53 {strides = array<i32>} : memref<8x128xf32, #tpu.memory_space<vmem>>, vector<8x128xf32>,
    } else {
    }
    %c0 = arith.constant 0 : index
    %c0_1 = arith.constant 0 : index
    %3 = vector.load %arg9[%c0, %c0_1] : memref<8x128xf32, #tpu.memory_space<vmem>>, vector<8x128xf32>
    %c0_2 = arith.constant 0 : index
    %c0_3 = arith.constant 0 : index
    %4 = vector.load %arg10[%c0_2, %c0_3] : memref<8x128xf32, #tpu.memory_space<vmem>>, vector<8x128xf32>
    %c0_4 = arith.constant 0 : index
    %c0_5 = arith.constant 0 : index
    %c0_6 = arith.constant 0 : index
    %c0_7 = arith.constant 0 : index
    %5 = vector.load %arg2[%c0_4, %c0_5, %c0_6, %c0_7] : memref<1x1x8x512xf32, #tpu.memory_space<vmem>>, vector<1x1x8x512xf32>
    %6 = vector.shape_cast %5 : vector<1x1x8x512xf32> to vector<8x512xf32>
    %7 = arith.truncf %3 : vector<8x128xf32> to vector<8x128xbf16>
    %c0_8 = arith.constant 0 : index
    %c0_9 = arith.constant 0 : index
    %c0_10 = arith.constant 0 : index
    %8 = vector.load %arg3[%c0_8, %c0_9, %c0_10] : memref<1x128x512xbf16, #tpu.memory_space<vmem>>, vector<1x128x512xbf16>
    %9 = vector.shape_cast %8 : vector<1x128x512xbf16> to vector<128x512xbf16>
    %cst = arith.constant dense<0.000000e+00> : vector<8x512xf32>
    %10 = tpu.matmul %7, %9, %cst {dimension_numbers = #tpu.dot_dimension_numbers<[1], [0], [0], [1], [0, 0, 1, 1], [], []>} : vector<8x128xbf16>, vector<128x512xbf16>, vector<8x512xf32> -> vector<8x512xf32>
    %11 = arith.addf %6, %10 : vector<8x512xf32>
    %c0_11 = arith.constant 0 : index
    %c0_12 = arith.constant 0 : index
    %c0_13 = arith.constant 0 : index
    %12 = vector.load %arg4[%c0_11, %c0_12, %c0_13] : memref<1x1x512xf32, #tpu.memory_space<vmem>>, vector<1x1x512xf32>
    %13 = vector.shape_cast %12 : vector<1x1x512xf32> to vector<1x512xf32>
    %14 = vector.broadcast %13 : vector<1x512xf32> to vector<8x512xf32>
    %15 = arith.addf %11, %14 : vector<8x512xf32>
    %16 = vector.extract_strided_slice %15 {offsets = [0, 0], sizes = [8, 128], strides = [1, 1]} : vector<8x512xf32> to vector<8x128xf32>
    %17 = arith.negf %16 : vector<8x128xf32>
    %18 = math.exp %17 : vector<8x128xf32>
    %cst_14 = arith.constant 1.000000e+00 : f32
    %19 = vector.broadcast %cst_14 : f32 to vector<8x128xf32>
    %20 = arith.addf %19, %18 : vector<8x128xf32>
    %21 = arith.divf %19, %20 : vector<8x128xf32>
    %22 = vector.extract_strided_slice %15 {offsets = [0, 128], sizes = [8, 128], strides = [1, 1]} : vector<8x512xf32> to vector<8x128xf32>
    %23 = arith.negf %22 : vector<8x128xf32>
    %24 = math.exp %23 : vector<8x128xf32>
    %cst_15 = arith.constant 1.000000e+00 : f32
    %25 = vector.broadcast %cst_15 : f32 to vector<8x128xf32>
    %26 = arith.addf %25, %24 : vector<8x128xf32>
    %27 = arith.divf %25, %26 : vector<8x128xf32>
    %28 = vector.extract_strided_slice %15 {offsets = [0, 256], sizes = [8, 128], strides = [1, 1]} : vector<8x512xf32> to vector<8x128xf32>
    %29 = math.tanh %28 : vector<8x128xf32>
    %30 = vector.extract_strided_slice %15 {offsets = [0, 384], sizes = [8, 128], strides = [1, 1]} : vector<8x512xf32> to vector<8x128xf32>
    %31 = arith.negf %30 : vector<8x128xf32>
    %32 = math.exp %31 : vector<8x128xf32>
    %cst_16 = arith.constant 1.000000e+00 : f32
    %33 = vector.broadcast %cst_16 : f32 to vector<8x128xf32>
    %34 = arith.addf %33, %32 : vector<8x128xf32>
    %35 = arith.divf %33, %34 : vector<8x128xf32>
    %36 = arith.mulf %27, %4 : vector<8x128xf32>
    %37 = arith.mulf %21, %29 : vector<8x128xf32>
    %38 = arith.addf %36, %37 : vector<8x128xf32>
    %39 = math.tanh %38 : vector<8x128xf32>
    %40 = arith.mulf %35, %39 : vector<8x128xf32>
    %c0_17 = arith.constant 0 : index
    %c0_18 = arith.constant 0 : index
    %41 = vector.load %arg9[%c0_17, %c0_18] : memref<8x128xf32, #tpu.memory_space<vmem>>, vector<8x128xf32>
    tpu.vector_store %arg9[%c0_17, %c0_18], %40 {strides = array<i32>} : memref<8x128xf32, #tpu.memory_space<vmem>>, vector<8x128xf32>,
    %c0_19 = arith.constant 0 : index
    %c0_20 = arith.constant 0 : index
    %42 = vector.load %arg10[%c0_19, %c0_20] : memref<8x128xf32, #tpu.memory_space<vmem>>, vector<8x128xf32>
    tpu.vector_store %arg10[%c0_19, %c0_20], %38 {strides = array<i32>} : memref<8x128xf32, #tpu.memory_space<vmem>>, vector<8x128xf32>,
    %c0_21 = arith.constant 0 : index
    %c0_22 = arith.constant 0 : index
    %c0_23 = arith.constant 0 : index
    %c0_24 = arith.constant 0 : index
    %43 = vector.load %arg7[%c0_21, %c0_22, %c0_23, %c0_24] : memref<1x1x8x128xf32, #tpu.memory_space<vmem>>, vector<1x1x8x128xf32>
    %44 = vector.shape_cast %43 : vector<1x1x8x128xf32> to vector<8x128xf32>
    %45 = vector.shape_cast %40 : vector<8x128xf32> to vector<1x1x8x128xf32>
    tpu.vector_store %arg7[%c0_21, %c0_22, %c0_23, %c0_24], %45 {strides = array<i32>} : memref<1x1x8x128xf32, #tpu.memory_space<vmem>>, vector<1x1x8x128xf32>,
    %c0_25 = arith.constant 0 : index
    %c0_26 = arith.constant 0 : index
    %c0_27 = arith.constant 0 : index
    %46 = vector.load %arg8[%c0_25, %c0_26, %c0_27] : memref<1x8x128xf32, #tpu.memory_space<vmem>>, vector<1x8x128xf32>
    %47 = vector.shape_cast %46 : vector<1x8x128xf32> to vector<8x128xf32>
    %48 = vector.shape_cast %38 : vector<8x128xf32> to vector<1x8x128xf32>
    tpu.vector_store %arg8[%c0_25, %c0_26, %c0_27], %48 {strides = array<i32>} : memref<1x8x128xf32, #tpu.memory_space<vmem>>, vector<1x8x128xf32>,
    return
  }
  func.func @transform_0(%arg0: i32, %arg1: i32) -> (i32, i32, i32, i32) {
    %c0_i32 = arith.constant 0 : i32
    %c0_i32_0 = arith.constant 0 : i32
    %c0_i32_1 = arith.constant 0 : i32
    return %arg0, %arg1, %c0_i32, %c0_i32_0 : i32, i32, i32, i32
  }
  func.func @transform_1(%arg0: i32, %arg1: i32) -> (i32, i32, i32) {
    %c0_i32 = arith.constant 0 : i32
    %c0_i32_0 = arith.constant 0 : i32
    %c0_i32_1 = arith.constant 0 : i32
    return %arg0, %c0_i32, %c0_i32_0 : i32, i32, i32
  }
  func.func @transform_2(%arg0: i32, %arg1: i32) -> (i32, i32, i32) {
    %c0_i32 = arith.constant 0 : i32
    %c0_i32_0 = arith.constant 0 : i32
    %c0_i32_1 = arith.constant 0 : i32
    return %arg0, %c0_i32, %c0_i32_0 : i32, i32, i32
  }
  func.func @transform_3(%arg0: i32, %arg1: i32) -> (i32, i32, i32) {
    %c0_i32 = arith.constant 0 : i32
    %c0_i32_0 = arith.constant 0 : i32
    %c0_i32_1 = arith.constant 0 : i32
    return %arg0, %c0_i32, %c0_i32_0 : i32, i32, i32
  }
  func.func @transform_4(%arg0: i32, %arg1: i32) -> (i32, i32, i32) {
    %c0_i32 = arith.constant 0 : i32
    %c0_i32_0 = arith.constant 0 : i32
    %c0_i32_1 = arith.constant 0 : i32
    return %arg0, %c0_i32, %c0_i32_0 : i32, i32, i32
  }
  func.func @transform_5(%arg0: i32, %arg1: i32) -> (i32, i32, i32, i32) {
    %c0_i32 = arith.constant 0 : i32
    %c0_i32_0 = arith.constant 0 : i32
    %c0_i32_1 = arith.constant 0 : i32
    return %arg0, %arg1, %c0_i32, %c0_i32_0 : i32, i32, i32, i32
  }
  func.func @transform_6(%arg0: i32, %arg1: i32) -> (i32, i32, i32) {
    %c0_i32 = arith.constant 0 : i32
    %c0_i32_0 = arith.constant 0 : i32
    %c0_i32_1 = arith.constant 0 : i32
    return %arg0, %c0_i32, %c0_i32_0 : i32, i32, i32
  }
}

module attributes {stable_mosaic.version = 11 : i64} {
  func.func @_decoder_kernel(%arg0: i32, %arg1: memref<1x8x1024xf32, #tpu.memory_space<vmem>>, %arg2: memref<8x8x256xf32, #tpu.memory_space<vmem>>, %arg3: memref<8x256xf32, #tpu.memory_space<vmem>>, %arg4: memref<8x256xf32, #tpu.memory_space<vmem>>, %arg5: memref<256x256xbf16, #tpu.memory_space<vmem>>, %arg6: memref<256x256xbf16, #tpu.memory_space<vmem>>, %arg7: memref<256x1024xbf16, #tpu.memory_space<vmem>>, %arg8: memref<256x1024xbf16, #tpu.memory_space<vmem>>, %arg9: memref<256x1024xbf16, #tpu.memory_space<vmem>>, %arg10: memref<1x1024xf32, #tpu.memory_space<vmem>>, %arg11: memref<768x256xbf16, #tpu.memory_space<vmem>>, %arg12: memref<1x256xf32, #tpu.memory_space<vmem>>, %arg13: memref<1x8x256xf32, #tpu.memory_space<vmem>>, %arg14: memref<8x256xf32, #tpu.memory_space<vmem>>, %arg15: memref<8x256xf32, #tpu.memory_space<vmem>>, %arg16: memref<8x256xf32, #tpu.memory_space<vmem>>, %arg17: memref<8x256xf32, #tpu.memory_space<vmem>>, %arg18: memref<8x8xf32, #tpu.memory_space<vmem>>, %arg19: memref<8x8x256xf32, #tpu.memory_space<vmem>>) attributes {dimension_semantics = [#tpu.dimension_semantics<arbitrary>], iteration_bounds = array<i64: 8>, scalar_prefetch = 0 : i64, scratch_operands = 4 : i64, tpu.core_type = #tpu.core_type<tc>, window_params = [{transform_indices = @transform_0, window_bounds = array<i64: 1, 8, 1024>}, {pipeline_mode = #tpu.pipeline_mode<synchronous>, transform_indices = @transform_1, window_bounds = array<i64: 8, 8, 256>}, {pipeline_mode = #tpu.pipeline_mode<synchronous>, transform_indices = @transform_2, window_bounds = array<i64: 8, 256>}, {pipeline_mode = #tpu.pipeline_mode<synchronous>, transform_indices = @transform_3, window_bounds = array<i64: 8, 256>}, {pipeline_mode = #tpu.pipeline_mode<synchronous>, transform_indices = @transform_4, window_bounds = array<i64: 256, 256>}, {pipeline_mode = #tpu.pipeline_mode<synchronous>, transform_indices = @transform_5, window_bounds = array<i64: 256, 256>}, {pipeline_mode = #tpu.pipeline_mode<synchronous>, transform_indices = @transform_6, window_bounds = array<i64: 256, 1024>}, {pipeline_mode = #tpu.pipeline_mode<synchronous>, transform_indices = @transform_7, window_bounds = array<i64: 256, 1024>}, {pipeline_mode = #tpu.pipeline_mode<synchronous>, transform_indices = @transform_8, window_bounds = array<i64: 256, 1024>}, {pipeline_mode = #tpu.pipeline_mode<synchronous>, transform_indices = @transform_9, window_bounds = array<i64: 1, 1024>}, {pipeline_mode = #tpu.pipeline_mode<synchronous>, transform_indices = @transform_10, window_bounds = array<i64: 768, 256>}, {pipeline_mode = #tpu.pipeline_mode<synchronous>, transform_indices = @transform_11, window_bounds = array<i64: 1, 256>}, {transform_indices = @transform_12, window_bounds = array<i64: 1, 8, 256>}, {pipeline_mode = #tpu.pipeline_mode<synchronous>, transform_indices = @transform_13, window_bounds = array<i64: 8, 256>}, {pipeline_mode = #tpu.pipeline_mode<synchronous>, transform_indices = @transform_14, window_bounds = array<i64: 8, 256>}]} {
    %c0_i32 = arith.constant 0 : i32
    %0 = arith.cmpi eq, %arg0, %c0_i32 : i32
    %1 = arith.extui %0 : i1 to i32
    %c0_i32_0 = arith.constant 0 : i32
    %2 = arith.cmpi ne, %1, %c0_i32_0 : i32
    scf.if %2 {
      %c0_75 = arith.constant 0 : index
      %c0_76 = arith.constant 0 : index
      %137 = vector.load %arg3[%c0_75, %c0_76] : memref<8x256xf32, #tpu.memory_space<vmem>>, vector<8x256xf32>
      %c0_77 = arith.constant 0 : index
      %c0_78 = arith.constant 0 : index
      %138 = vector.load %arg16[%c0_77, %c0_78] : memref<8x256xf32, #tpu.memory_space<vmem>>, vector<8x256xf32>
      tpu.vector_store %arg16[%c0_77, %c0_78], %137 {strides = array<i32>} : memref<8x256xf32, #tpu.memory_space<vmem>>, vector<8x256xf32>,
      %c0_79 = arith.constant 0 : index
      %c0_80 = arith.constant 0 : index
      %139 = vector.load %arg4[%c0_79, %c0_80] : memref<8x256xf32, #tpu.memory_space<vmem>>, vector<8x256xf32>
      %c0_81 = arith.constant 0 : index
      %c0_82 = arith.constant 0 : index
      %140 = vector.load %arg17[%c0_81, %c0_82] : memref<8x256xf32, #tpu.memory_space<vmem>>, vector<8x256xf32>
      tpu.vector_store %arg17[%c0_81, %c0_82], %139 {strides = array<i32>} : memref<8x256xf32, #tpu.memory_space<vmem>>, vector<8x256xf32>,
      %cst_83 = arith.constant 0.000000e+00 : f32
      %141 = vector.broadcast %cst_83 : f32 to vector<8x8xf32>
      %c0_84 = arith.constant 0 : index
      %c0_85 = arith.constant 0 : index
      %142 = vector.load %arg18[%c0_84, %c0_85] : memref<8x8xf32, #tpu.memory_space<vmem>>, vector<8x8xf32>
      tpu.vector_store %arg18[%c0_84, %c0_85], %141 {strides = array<i32>} : memref<8x8xf32, #tpu.memory_space<vmem>>, vector<8x8xf32>,
      %cst_86 = arith.constant 0.000000e+00 : f32
      %143 = vector.broadcast %cst_86 : f32 to vector<8x8x256xf32>
      %c0_87 = arith.constant 0 : index
      %c0_88 = arith.constant 0 : index
      %c0_89 = arith.constant 0 : index
      %144 = vector.load %arg19[%c0_87, %c0_88, %c0_89] : memref<8x8x256xf32, #tpu.memory_space<vmem>>, vector<8x8x256xf32>
      tpu.vector_store %arg19[%c0_87, %c0_88, %c0_89], %143 {strides = array<i32>} : memref<8x8x256xf32, #tpu.memory_space<vmem>>, vector<8x8x256xf32>,
    } else {
    }
    %c0 = arith.constant 0 : index
    %c0_1 = arith.constant 0 : index
    %3 = vector.load %arg16[%c0, %c0_1] : memref<8x256xf32, #tpu.memory_space<vmem>>, vector<8x256xf32>
    %c0_2 = arith.constant 0 : index
    %c0_3 = arith.constant 0 : index
    %4 = vector.load %arg17[%c0_2, %c0_3] : memref<8x256xf32, #tpu.memory_space<vmem>>, vector<8x256xf32>
    %5 = arith.truncf %3 : vector<8x256xf32> to vector<8x256xbf16>
    %c0_4 = arith.constant 0 : index
    %c0_5 = arith.constant 0 : index
    %c0_6 = arith.constant 0 : index
    %6 = vector.load %arg2[%c0_4, %c0_5, %c0_6] : memref<8x8x256xf32, #tpu.memory_space<vmem>>, vector<8x8x256xf32>
    %c0_7 = arith.constant 0 : index
    %c0_8 = arith.constant 0 : index
    %7 = vector.load %arg5[%c0_7, %c0_8] : memref<256x256xbf16, #tpu.memory_space<vmem>>, vector<256x256xbf16>
    %cst = arith.constant dense<0.000000e+00> : vector<8x256xf32>
    %8 = tpu.matmul %5, %7, %cst {dimension_numbers = #tpu.dot_dimension_numbers<[1], [0], [0], [1], [0, 0, 1, 1], [], []>} : vector<8x256xbf16>, vector<256x256xbf16>, vector<8x256xf32> -> vector<8x256xf32>
    %9 = vector.shape_cast %8 : vector<8x256xf32> to vector<8x1x256xf32>
    "tpu.trace_start"() <{level = 10 : i32, message = "bqd,bsd->bqs"}> : () -> ()
    %cst_9 = arith.constant dense<0.000000e+00> : vector<8x1x8xf32>
    %10 = tpu.matmul %9, %6, %cst_9 {dimension_numbers = #tpu.dot_dimension_numbers<[2], [2], [1], [1], [0, 0, 0, 1, 1, 1], [0], [0]>} : vector<8x1x256xf32>, vector<8x8x256xf32>, vector<8x1x8xf32> -> vector<8x1x8xf32>
    "tpu.trace_stop"() : () -> ()
    %11 = vector.shape_cast %10 : vector<8x1x8xf32> to vector<8x8xf32>
    %12 = math.exp %11 : vector<8x8xf32>
    %c0_i32_10 = arith.constant 0 : i32
    %13 = arith.cmpi eq, %arg0, %c0_i32_10 : i32
    %cst_11 = arith.constant 1.000000e+00 : f32
    %14 = vector.broadcast %cst_11 : f32 to vector<8x8xf32>
    %c0_12 = arith.constant 0 : index
    %c0_13 = arith.constant 0 : index
    %15 = vector.load %arg18[%c0_12, %c0_13] : memref<8x8xf32, #tpu.memory_space<vmem>>, vector<8x8xf32>
    %16 = arith.select %13, %14, %15 : vector<8x8xf32>
    %17 = tpu.reciprocal %16 {approx = true} : vector<8x8xf32> -> vector<8x8xf32>
    %18 = arith.mulf %12, %17 : vector<8x8xf32>
    %cst_14 = arith.constant dense<0.000000e+00> : vector<8xf32>
    %19 = vector.multi_reduction <add>, %18, %cst_14 [1] : vector<8x8xf32> to vector<8xf32>
    %20 = vector.shape_cast %19 : vector<8xf32> to vector<8x1xf32>
    %21 = tpu.reciprocal %20 {approx = true} : vector<8x1xf32> -> vector<8x1xf32>
    %22 = vector.broadcast %21 : vector<8x1xf32> to vector<8x8xf32>
    %23 = arith.mulf %18, %22 : vector<8x8xf32>
    %24 = vector.shape_cast %23 : vector<8x8xf32> to vector<8x1x8xf32>
    "tpu.trace_start"() <{level = 10 : i32, message = "bqs,bsd->bqd"}> : () -> ()
    %cst_15 = arith.constant dense<0.000000e+00> : vector<8x1x256xf32>
    %25 = tpu.matmul %24, %6, %cst_15 {dimension_numbers = #tpu.dot_dimension_numbers<[2], [1], [1], [2], [0, 0, 0, 1, 1, 2], [0], [0]>} : vector<8x1x8xf32>, vector<8x8x256xf32>, vector<8x1x256xf32> -> vector<8x1x256xf32>
    "tpu.trace_stop"() : () -> ()
    %26 = vector.shape_cast %25 : vector<8x1x256xf32> to vector<8x256xf32>
    %c0_16 = arith.constant 0 : index
    %c0_17 = arith.constant 0 : index
    %27 = vector.load %arg18[%c0_16, %c0_17] : memref<8x8xf32, #tpu.memory_space<vmem>>, vector<8x8xf32>
    %28 = arith.addf %27, %12 : vector<8x8xf32>
    %c0_18 = arith.constant 0 : index
    %c0_19 = arith.constant 0 : index
    %29 = vector.load %arg18[%c0_18, %c0_19] : memref<8x8xf32, #tpu.memory_space<vmem>>, vector<8x8xf32>
    tpu.vector_store %arg18[%c0_18, %c0_19], %28 {strides = array<i32>} : memref<8x8xf32, #tpu.memory_space<vmem>>, vector<8x8xf32>,
    %c0_20 = arith.constant 0 : index
    %c0_21 = arith.constant 0 : index
    %c0_22 = arith.constant 0 : index
    %30 = vector.load %arg19[%c0_20, %c0_21, %c0_22] : memref<8x8x256xf32, #tpu.memory_space<vmem>>, vector<8x8x256xf32>
    %c0_23 = arith.constant 0 : index
    %c0_24 = arith.constant 0 : index
    %31 = vector.load %arg6[%c0_23, %c0_24] : memref<256x256xbf16, #tpu.memory_space<vmem>>, vector<256x256xbf16>
    %cst_25 = arith.constant dense<0.000000e+00> : vector<8x256xf32>
    %32 = tpu.matmul %5, %31, %cst_25 {dimension_numbers = #tpu.dot_dimension_numbers<[1], [0], [0], [1], [0, 0, 1, 1], [], []>} : vector<8x256xbf16>, vector<256x256xbf16>, vector<8x256xf32> -> vector<8x256xf32>
    %33 = vector.shape_cast %32 : vector<8x256xf32> to vector<8x1x256xf32>
    "tpu.trace_start"() <{level = 10 : i32, message = "bqd,btd->bqt"}> : () -> ()
    %cst_26 = arith.constant dense<0.000000e+00> : vector<8x1x8xf32>
    %34 = tpu.matmul %33, %30, %cst_26 {dimension_numbers = #tpu.dot_dimension_numbers<[2], [2], [1], [1], [0, 0, 0, 1, 1, 1], [0], [0]>} : vector<8x1x256xf32>, vector<8x8x256xf32>, vector<8x1x8xf32> -> vector<8x1x8xf32>
    "tpu.trace_stop"() : () -> ()
    %35 = vector.shape_cast %34 : vector<8x1x8xf32> to vector<8x8xf32>
    %36 = tpu.iota {dimensions = array<i32: 1>} : vector<8x8xi32>
    %37 = vector.broadcast %arg0 : i32 to vector<8x8xi32>
    %38 = arith.cmpi slt, %36, %37 : vector<8x8xi32>
    %cst_27 = arith.constant -1.000000e+30 : f32
    %39 = vector.broadcast %cst_27 : f32 to vector<8x8xf32>
    %40 = arith.select %38, %35, %39 : vector<8x8xi1>, vector<8x8xf32>
    %cst_28 = arith.constant dense<0xFF800000> : vector<8xf32>
    %41 = vector.multi_reduction <maximumf>, %40, %cst_28 [1] : vector<8x8xf32> to vector<8xf32>
    %42 = vector.shape_cast %41 : vector<8xf32> to vector<8x1xf32>
    %43 = vector.broadcast %42 : vector<8x1xf32> to vector<8x8xf32>
    %44 = arith.subf %40, %43 : vector<8x8xf32>
    %45 = math.exp %44 : vector<8x8xf32>
    %cst_29 = arith.constant dense<0.000000e+00> : vector<8xf32>
    %46 = vector.multi_reduction <add>, %45, %cst_29 [1] : vector<8x8xf32> to vector<8xf32>
    %47 = vector.shape_cast %46 : vector<8xf32> to vector<8x1xf32>
    %48 = tpu.reciprocal %47 {approx = true} : vector<8x1xf32> -> vector<8x1xf32>
    %49 = vector.broadcast %48 : vector<8x1xf32> to vector<8x8xf32>
    %50 = arith.mulf %45, %49 : vector<8x8xf32>
    %51 = vector.shape_cast %50 : vector<8x8xf32> to vector<8x1x8xf32>
    "tpu.trace_start"() <{level = 10 : i32, message = "bqt,btd->bqd"}> : () -> ()
    %cst_30 = arith.constant dense<0.000000e+00> : vector<8x1x256xf32>
    %52 = tpu.matmul %51, %30, %cst_30 {dimension_numbers = #tpu.dot_dimension_numbers<[2], [1], [1], [2], [0, 0, 0, 1, 1, 2], [0], [0]>} : vector<8x1x8xf32>, vector<8x8x256xf32>, vector<8x1x256xf32> -> vector<8x1x256xf32>
    "tpu.trace_stop"() : () -> ()
    %53 = vector.shape_cast %52 : vector<8x1x256xf32> to vector<8x256xf32>
    %c0_i32_31 = arith.constant 0 : i32
    %54 = arith.cmpi sgt, %arg0, %c0_i32_31 : i32
    %cst_32 = arith.constant 0.000000e+00 : f32
    %55 = vector.broadcast %cst_32 : f32 to vector<8x256xf32>
    %56 = arith.select %54, %53, %55 : vector<8x256xf32>
    %c0_33 = arith.constant 0 : index
    %c0_34 = arith.constant 0 : index
    %c0_35 = arith.constant 0 : index
    %57 = vector.load %arg1[%c0_33, %c0_34, %c0_35] : memref<1x8x1024xf32, #tpu.memory_space<vmem>>, vector<1x8x1024xf32>
    %58 = vector.shape_cast %57 : vector<1x8x1024xf32> to vector<8x1024xf32>
    %59 = arith.truncf %26 : vector<8x256xf32> to vector<8x256xbf16>
    %c0_36 = arith.constant 0 : index
    %c0_37 = arith.constant 0 : index
    %60 = vector.load %arg7[%c0_36, %c0_37] : memref<256x1024xbf16, #tpu.memory_space<vmem>>, vector<256x1024xbf16>
    %cst_38 = arith.constant dense<0.000000e+00> : vector<8x1024xf32>
    %61 = tpu.matmul %59, %60, %cst_38 {dimension_numbers = #tpu.dot_dimension_numbers<[1], [0], [0], [1], [0, 0, 1, 1], [], []>} : vector<8x256xbf16>, vector<256x1024xbf16>, vector<8x1024xf32> -> vector<8x1024xf32>
    %62 = arith.addf %58, %61 : vector<8x1024xf32>
    %63 = arith.truncf %56 : vector<8x256xf32> to vector<8x256xbf16>
    %c0_39 = arith.constant 0 : index
    %c0_40 = arith.constant 0 : index
    %64 = vector.load %arg8[%c0_39, %c0_40] : memref<256x1024xbf16, #tpu.memory_space<vmem>>, vector<256x1024xbf16>
    %cst_41 = arith.constant dense<0.000000e+00> : vector<8x1024xf32>
    %65 = tpu.matmul %63, %64, %cst_41 {dimension_numbers = #tpu.dot_dimension_numbers<[1], [0], [0], [1], [0, 0, 1, 1], [], []>} : vector<8x256xbf16>, vector<256x1024xbf16>, vector<8x1024xf32> -> vector<8x1024xf32>
    %66 = arith.addf %62, %65 : vector<8x1024xf32>
    %c0_42 = arith.constant 0 : index
    %c0_43 = arith.constant 0 : index
    %67 = vector.load %arg9[%c0_42, %c0_43] : memref<256x1024xbf16, #tpu.memory_space<vmem>>, vector<256x1024xbf16>
    %cst_44 = arith.constant dense<0.000000e+00> : vector<8x1024xf32>
    %68 = tpu.matmul %5, %67, %cst_44 {dimension_numbers = #tpu.dot_dimension_numbers<[1], [0], [0], [1], [0, 0, 1, 1], [], []>} : vector<8x256xbf16>, vector<256x1024xbf16>, vector<8x1024xf32> -> vector<8x1024xf32>
    %69 = arith.addf %66, %68 : vector<8x1024xf32>
    %c0_45 = arith.constant 0 : index
    %c0_46 = arith.constant 0 : index
    %70 = vector.load %arg10[%c0_45, %c0_46] : memref<1x1024xf32, #tpu.memory_space<vmem>>, vector<1x1024xf32>
    %71 = vector.broadcast %70 : vector<1x1024xf32> to vector<8x1024xf32>
    %72 = arith.addf %69, %71 : vector<8x1024xf32>
    %73 = vector.extract_strided_slice %72 {offsets = [0, 0], sizes = [8, 256], strides = [1, 1]} : vector<8x1024xf32> to vector<8x256xf32>
    %74 = arith.negf %73 : vector<8x256xf32>
    %75 = math.exp %74 : vector<8x256xf32>
    %cst_47 = arith.constant 1.000000e+00 : f32
    %76 = vector.broadcast %cst_47 : f32 to vector<8x256xf32>
    %77 = arith.addf %76, %75 : vector<8x256xf32>
    %78 = arith.divf %76, %77 : vector<8x256xf32>
    %79 = vector.extract_strided_slice %72 {offsets = [0, 256], sizes = [8, 256], strides = [1, 1]} : vector<8x1024xf32> to vector<8x256xf32>
    %80 = arith.negf %79 : vector<8x256xf32>
    %81 = math.exp %80 : vector<8x256xf32>
    %cst_48 = arith.constant 1.000000e+00 : f32
    %82 = vector.broadcast %cst_48 : f32 to vector<8x256xf32>
    %83 = arith.addf %82, %81 : vector<8x256xf32>
    %84 = arith.divf %82, %83 : vector<8x256xf32>
    %85 = vector.extract_strided_slice %72 {offsets = [0, 512], sizes = [8, 256], strides = [1, 1]} : vector<8x1024xf32> to vector<8x256xf32>
    %86 = math.tanh %85 : vector<8x256xf32>
    %87 = vector.extract_strided_slice %72 {offsets = [0, 768], sizes = [8, 256], strides = [1, 1]} : vector<8x1024xf32> to vector<8x256xf32>
    %88 = arith.negf %87 : vector<8x256xf32>
    %89 = math.exp %88 : vector<8x256xf32>
    %cst_49 = arith.constant 1.000000e+00 : f32
    %90 = vector.broadcast %cst_49 : f32 to vector<8x256xf32>
    %91 = arith.addf %90, %89 : vector<8x256xf32>
    %92 = arith.divf %90, %91 : vector<8x256xf32>
    %93 = arith.mulf %84, %4 : vector<8x256xf32>
    %94 = arith.mulf %78, %86 : vector<8x256xf32>
    %95 = arith.addf %93, %94 : vector<8x256xf32>
    %96 = math.tanh %95 : vector<8x256xf32>
    %97 = arith.mulf %92, %96 : vector<8x256xf32>
    %c0_50 = arith.constant 0 : index
    %c0_51 = arith.constant 0 : index
    %98 = vector.load %arg16[%c0_50, %c0_51] : memref<8x256xf32, #tpu.memory_space<vmem>>, vector<8x256xf32>
    tpu.vector_store %arg16[%c0_50, %c0_51], %97 {strides = array<i32>} : memref<8x256xf32, #tpu.memory_space<vmem>>, vector<8x256xf32>,
    %c0_52 = arith.constant 0 : index
    %c0_53 = arith.constant 0 : index
    %99 = vector.load %arg17[%c0_52, %c0_53] : memref<8x256xf32, #tpu.memory_space<vmem>>, vector<8x256xf32>
    tpu.vector_store %arg17[%c0_52, %c0_53], %95 {strides = array<i32>} : memref<8x256xf32, #tpu.memory_space<vmem>>, vector<8x256xf32>,
    %100 = tpu.iota {dimensions = array<i32: 1>} : vector<8x8x256xi32>
    %101 = vector.broadcast %arg0 : i32 to vector<8x8x256xi32>
    %102 = arith.cmpi eq, %100, %101 : vector<8x8x256xi32>
    %103 = vector.shape_cast %97 : vector<8x256xf32> to vector<8x1x256xf32>
    %104 = vector.shape_cast %103 : vector<8x1x256xf32> to vector<8x1x256xf32>
    %105 = vector.broadcast %104 : vector<8x1x256xf32> to vector<8x8x256xf32>
    %106 = arith.select %102, %105, %30 : vector<8x8x256xi1>, vector<8x8x256xf32>
    %c0_54 = arith.constant 0 : index
    %c0_55 = arith.constant 0 : index
    %c0_56 = arith.constant 0 : index
    %107 = vector.load %arg19[%c0_54, %c0_55, %c0_56] : memref<8x8x256xf32, #tpu.memory_space<vmem>>, vector<8x8x256xf32>
    tpu.vector_store %arg19[%c0_54, %c0_55, %c0_56], %106 {strides = array<i32>} : memref<8x8x256xf32, #tpu.memory_space<vmem>>, vector<8x8x256xf32>,
    %108 = arith.truncf %97 : vector<8x256xf32> to vector<8x256xbf16>
    %c0_57 = arith.constant 0 : index
    %c0_58 = arith.constant 0 : index
    %109 = vector.load %arg11[%c0_57, %c0_58] : memref<768x256xbf16, #tpu.memory_space<vmem>>, vector<256x256xbf16>
    %cst_59 = arith.constant dense<0.000000e+00> : vector<8x256xf32>
    %110 = tpu.matmul %108, %109, %cst_59 {dimension_numbers = #tpu.dot_dimension_numbers<[1], [0], [0], [1], [0, 0, 1, 1], [], []>} : vector<8x256xbf16>, vector<256x256xbf16>, vector<8x256xf32> -> vector<8x256xf32>
    %111 = arith.truncf %26 : vector<8x256xf32> to vector<8x256xbf16>
    %c256 = arith.constant 256 : index
    %c0_60 = arith.constant 0 : index
    %112 = vector.load %arg11[%c256, %c0_60] : memref<768x256xbf16, #tpu.memory_space<vmem>>, vector<256x256xbf16>
    %cst_61 = arith.constant dense<0.000000e+00> : vector<8x256xf32>
    %113 = tpu.matmul %111, %112, %cst_61 {dimension_numbers = #tpu.dot_dimension_numbers<[1], [0], [0], [1], [0, 0, 1, 1], [], []>} : vector<8x256xbf16>, vector<256x256xbf16>, vector<8x256xf32> -> vector<8x256xf32>
    %114 = arith.addf %110, %113 : vector<8x256xf32>
    %115 = arith.truncf %56 : vector<8x256xf32> to vector<8x256xbf16>
    %c512 = arith.constant 512 : index
    %c0_62 = arith.constant 0 : index
    %116 = vector.load %arg11[%c512, %c0_62] : memref<768x256xbf16, #tpu.memory_space<vmem>>, vector<256x256xbf16>
    %cst_63 = arith.constant dense<0.000000e+00> : vector<8x256xf32>
    %117 = tpu.matmul %115, %116, %cst_63 {dimension_numbers = #tpu.dot_dimension_numbers<[1], [0], [0], [1], [0, 0, 1, 1], [], []>} : vector<8x256xbf16>, vector<256x256xbf16>, vector<8x256xf32> -> vector<8x256xf32>
    %118 = arith.addf %114, %117 : vector<8x256xf32>
    %c0_64 = arith.constant 0 : index
    %c0_65 = arith.constant 0 : index
    %119 = vector.load %arg12[%c0_64, %c0_65] : memref<1x256xf32, #tpu.memory_space<vmem>>, vector<1x256xf32>
    %120 = vector.broadcast %119 : vector<1x256xf32> to vector<8x256xf32>
    %121 = arith.addf %118, %120 : vector<8x256xf32>
    %cst_66 = arith.constant dense<0xFF800000> : vector<8xf32>
    %122 = vector.multi_reduction <maximumf>, %121, %cst_66 [1] : vector<8x256xf32> to vector<8xf32>
    %123 = vector.shape_cast %122 : vector<8xf32> to vector<8x1xf32>
    %124 = vector.broadcast %123 : vector<8x1xf32> to vector<8x256xf32>
    %125 = arith.subf %121, %124 : vector<8x256xf32>
    %126 = math.exp %125 : vector<8x256xf32>
    %cst_67 = arith.constant dense<0.000000e+00> : vector<8xf32>
    %127 = vector.multi_reduction <add>, %126, %cst_67 [1] : vector<8x256xf32> to vector<8xf32>
    %128 = vector.shape_cast %127 : vector<8xf32> to vector<8x1xf32>
    %129 = math.log %128 : vector<8x1xf32>
    %130 = vector.broadcast %129 : vector<8x1xf32> to vector<8x256xf32>
    %131 = arith.subf %125, %130 : vector<8x256xf32>
    %c0_68 = arith.constant 0 : index
    %c0_69 = arith.constant 0 : index
    %c0_70 = arith.constant 0 : index
    %132 = vector.load %arg13[%c0_68, %c0_69, %c0_70] : memref<1x8x256xf32, #tpu.memory_space<vmem>>, vector<1x8x256xf32>
    %133 = vector.shape_cast %132 : vector<1x8x256xf32> to vector<8x256xf32>
    %134 = vector.shape_cast %131 : vector<8x256xf32> to vector<1x8x256xf32>
    tpu.vector_store %arg13[%c0_68, %c0_69, %c0_70], %134 {strides = array<i32>} : memref<1x8x256xf32, #tpu.memory_space<vmem>>, vector<1x8x256xf32>,
    %c0_71 = arith.constant 0 : index
    %c0_72 = arith.constant 0 : index
    %135 = vector.load %arg14[%c0_71, %c0_72] : memref<8x256xf32, #tpu.memory_space<vmem>>, vector<8x256xf32>
    tpu.vector_store %arg14[%c0_71, %c0_72], %97 {strides = array<i32>} : memref<8x256xf32, #tpu.memory_space<vmem>>, vector<8x256xf32>,
    %c0_73 = arith.constant 0 : index
    %c0_74 = arith.constant 0 : index
    %136 = vector.load %arg15[%c0_73, %c0_74] : memref<8x256xf32, #tpu.memory_space<vmem>>, vector<8x256xf32>
    tpu.vector_store %arg15[%c0_73, %c0_74], %95 {strides = array<i32>} : memref<8x256xf32, #tpu.memory_space<vmem>>, vector<8x256xf32>,
    return
  }
  func.func @transform_0(%arg0: i32) -> (i32, i32, i32) {
    %c0_i32 = arith.constant 0 : i32
    %c0_i32_0 = arith.constant 0 : i32
    %c0_i32_1 = arith.constant 0 : i32
    return %arg0, %c0_i32, %c0_i32_0 : i32, i32, i32
  }
  func.func @transform_1(%arg0: i32) -> (i32, i32, i32) {
    %c0_i32 = arith.constant 0 : i32
    %c0_i32_0 = arith.constant 0 : i32
    %c0_i32_1 = arith.constant 0 : i32
    %c0_i32_2 = arith.constant 0 : i32
    return %c0_i32, %c0_i32_0, %c0_i32_1 : i32, i32, i32
  }
  func.func @transform_2(%arg0: i32) -> (i32, i32) {
    %c0_i32 = arith.constant 0 : i32
    %c0_i32_0 = arith.constant 0 : i32
    %c0_i32_1 = arith.constant 0 : i32
    return %c0_i32, %c0_i32_0 : i32, i32
  }
  func.func @transform_3(%arg0: i32) -> (i32, i32) {
    %c0_i32 = arith.constant 0 : i32
    %c0_i32_0 = arith.constant 0 : i32
    %c0_i32_1 = arith.constant 0 : i32
    return %c0_i32, %c0_i32_0 : i32, i32
  }
  func.func @transform_4(%arg0: i32) -> (i32, i32) {
    %c0_i32 = arith.constant 0 : i32
    %c0_i32_0 = arith.constant 0 : i32
    %c0_i32_1 = arith.constant 0 : i32
    return %c0_i32, %c0_i32_0 : i32, i32
  }
  func.func @transform_5(%arg0: i32) -> (i32, i32) {
    %c0_i32 = arith.constant 0 : i32
    %c0_i32_0 = arith.constant 0 : i32
    %c0_i32_1 = arith.constant 0 : i32
    return %c0_i32, %c0_i32_0 : i32, i32
  }
  func.func @transform_6(%arg0: i32) -> (i32, i32) {
    %c0_i32 = arith.constant 0 : i32
    %c0_i32_0 = arith.constant 0 : i32
    %c0_i32_1 = arith.constant 0 : i32
    return %c0_i32, %c0_i32_0 : i32, i32
  }
  func.func @transform_7(%arg0: i32) -> (i32, i32) {
    %c0_i32 = arith.constant 0 : i32
    %c0_i32_0 = arith.constant 0 : i32
    %c0_i32_1 = arith.constant 0 : i32
    return %c0_i32, %c0_i32_0 : i32, i32
  }
  func.func @transform_8(%arg0: i32) -> (i32, i32) {
    %c0_i32 = arith.constant 0 : i32
    %c0_i32_0 = arith.constant 0 : i32
    %c0_i32_1 = arith.constant 0 : i32
    return %c0_i32, %c0_i32_0 : i32, i32
  }
  func.func @transform_9(%arg0: i32) -> (i32, i32) {
    %c0_i32 = arith.constant 0 : i32
    %c0_i32_0 = arith.constant 0 : i32
    %c0_i32_1 = arith.constant 0 : i32
    return %c0_i32, %c0_i32_0 : i32, i32
  }
  func.func @transform_10(%arg0: i32) -> (i32, i32) {
    %c0_i32 = arith.constant 0 : i32
    %c0_i32_0 = arith.constant 0 : i32
    %c0_i32_1 = arith.constant 0 : i32
    return %c0_i32, %c0_i32_0 : i32, i32
  }
  func.func @transform_11(%arg0: i32) -> (i32, i32) {
    %c0_i32 = arith.constant 0 : i32
    %c0_i32_0 = arith.constant 0 : i32
    %c0_i32_1 = arith.constant 0 : i32
    return %c0_i32, %c0_i32_0 : i32, i32
  }
  func.func @transform_12(%arg0: i32) -> (i32, i32, i32) {
    %c0_i32 = arith.constant 0 : i32
    %c0_i32_0 = arith.constant 0 : i32
    %c0_i32_1 = arith.constant 0 : i32
    return %arg0, %c0_i32, %c0_i32_0 : i32, i32, i32
  }
  func.func @transform_13(%arg0: i32) -> (i32, i32) {
    %c0_i32 = arith.constant 0 : i32
    %c0_i32_0 = arith.constant 0 : i32
    %c0_i32_1 = arith.constant 0 : i32
    return %c0_i32, %c0_i32_0 : i32, i32
  }
  func.func @transform_14(%arg0: i32) -> (i32, i32) {
    %c0_i32 = arith.constant 0 : i32
    %c0_i32_0 = arith.constant 0 : i32
    %c0_i32_1 = arith.constant 0 : i32
    return %c0_i32, %c0_i32_0 : i32, i32
  }
}

</mosaic_0001>

<bundles_post_ra>
// kernel: forward.4
= control target key start
LH: loop header
LB: loop body
LE: loop exit
PB: predicated region body
PF: predicated region fallthrough
CT: control target
= control target key end

     0   :  { %v861_v3 = vmov 0   ;;  %s1301_s1 = inlined_call_operand.vmem [shape: bf16[128,1024], index: 1, kind: input, shape index: {}]   ;;  %s1302_s0 = inlined_call_operand.vmem [shape: bf16[64,128], index: 0, kind: input, shape index: {}]   ;;  %s1303_s2 = inlined_call_operand.vmem [shape: f32[64,1024], index: 2, kind: output, shape index: {}]  }
   0x1   :  { %v76_v0 = vld [vmem:[%s1301_s1 + $0x1c0] sm:$0xff]  ;;  %v77_v2 = vld [vmem:[%s1301_s1 + $0x1c8] sm:$0xff]  ;;  %460 = vmatprep.mubr.bf16.mxu0 %v861_v3  ;;  %533 = vmatprep.mubr.bf16.mxu1 %v861_v3  ;;  %v78_v63 = vld [vmem:[%s1301_s1 + $0x1d0] sm:$0xff] }
   0x2   :  { %v80_v1 = vld [vmem:[%s1301_s1 + $0x1e0] sm:$0xff]  ;;  %v81_v5 = vld [vmem:[%s1301_s1 + $0x1e8] sm:$0xff] }
   0x3   :  { %v849_v4 = vcombine.high %v76_v0, %v80_v1  ;;  %v848_v6 = vcombine.low %v76_v0, %v80_v1  ;;  %v68_v7 = vld [vmem:[%s1301_s1 + $0x180] sm:$0xff]  ;;  %v851_v9 = vcombine.high %v77_v2, %v81_v5  ;;  %v850_v10 = vcombine.low %v77_v2, %v81_v5  ;;  %v69_v12 = vld [vmem:[%s1301_s1 + $0x188] sm:$0xff]  ;;  %v82_v0 = vld [vmem:[%s1301_s1 + $0x1f0] sm:$0xff] }
   0x4   :  { %v72_v8 = vld [vmem:[%s1301_s1 + $0x1a0] sm:$0xff]  ;;  %v73_v13 = vld [vmem:[%s1301_s1 + $0x1a8] sm:$0xff]  ;;  %v79_v1 = vld [vmem:[%s1301_s1 + $0x1d8] sm:$0xff] }
   0x5   :  { %v841_v11 = vcombine.high %v68_v7, %v72_v8  ;;  %v60_v14 = vld [vmem:[%s1301_s1 + $0x140] sm:$0xff]  ;;  %428 = vmatprep.subr.bf16.mxu0 %v849_v4  ;;  %v843_v15 = vcombine.high %v69_v12, %v73_v13  ;;  %v61_v17 = vld [vmem:[%s1301_s1 + $0x148] sm:$0xff]  ;;  %501 = vmatprep.subr.bf16.mxu1 %v851_v9  ;;  %v840_v19 = vcombine.low %v68_v7, %v72_v8  ;;  %v83_v2 = vld [vmem:[%s1301_s1 + $0x1f8] sm:$0xff] }
   0x6   :  { %v64_v16 = vld [vmem:[%s1301_s1 + $0x160] sm:$0xff]  ;;  %v65_v18 = vld [vmem:[%s1301_s1 + $0x168] sm:$0xff]  ;;  %429 = vmatpush1.bf16.msra.mxu0 %v848_v6  ;;  %502 = vmatpush1.bf16.msra.mxu1 %v850_v10  ;;  %v842_v20 = vcombine.low %v69_v12, %v73_v13  ;;  %v853_v6 = vcombine.high %v78_v63, %v82_v0  ;;  %v855_v7 = vcombine.high %v79_v1, %v83_v2  ;;  %v70_v8 = vld [vmem:[%s1301_s1 + $0x190] sm:$0xff] }
   0x7   :  { %430 = vmatprep.subr.bf16.mxu0 %v841_v11  ;;  %v833_v21 = vcombine.high %v60_v14, %v64_v16  ;;  %503 = vmatprep.subr.bf16.mxu1 %v843_v15  ;;  %v835_v22 = vcombine.high %v61_v17, %v65_v18  ;;  %v52_v23 = vld [vmem:[%s1301_s1 + $0x100] sm:$0xff]  ;;  %v53_v25 = vld [vmem:[%s1301_s1 + $0x108] sm:$0xff]  ;;  %v832_v27 = vcombine.low %v60_v14, %v64_v16  ;;  %v74_v9 = vld [vmem:[%s1301_s1 + $0x1b0] sm:$0xff] }
   0x8   :  { %v56_v24 = vld [vmem:[%s1301_s1 + $0x120] sm:$0xff]  ;;  %v57_v26 = vld [vmem:[%s1301_s1 + $0x128] sm:$0xff]  ;;  %v834_v28 = vcombine.low %v61_v17, %v65_v18  ;;  %v71_v11 = vld [vmem:[%s1301_s1 + $0x198] sm:$0xff]  ;;  %v852_v13 = vcombine.low %v78_v63, %v82_v0  ;;  %v854_v14 = vcombine.low %v79_v1, %v83_v2  ;;  %v845_v15 = vcombine.high %v70_v8, %v74_v9 }
   0x9   :  { %v825_v29 = vcombine.high %v52_v23, %v56_v24  ;;  %v827_v30 = vcombine.high %v53_v25, %v57_v26  ;;  %v44_v31 = vld [vmem:[%s1301_s1 + $0xc0] sm:$0xff]  ;;  %v45_v33 = vld [vmem:[%s1301_s1 + $0xc8] sm:$0xff]  ;;  %v824_v35 = vcombine.low %v52_v23, %v56_v24  ;;  %v826_v36 = vcombine.low %v53_v25, %v57_v26  ;;  %v75_v12 = vld [vmem:[%s1301_s1 + $0x1b8] sm:$0xff] }
   0xa   :  { %431 = vmatpush1.bf16.msra.mxu0 %v840_v19  ;;  %504 = vmatpush1.bf16.msra.mxu1 %v842_v20  ;;  %v48_v32 = vld [vmem:[%s1301_s1 + $0xe0] sm:$0xff]  ;;  %v49_v34 = vld [vmem:[%s1301_s1 + $0xe8] sm:$0xff]  ;;  %v847_v16 = vcombine.high %v71_v11, %v75_v12  ;;  %v62_v17 = vld [vmem:[%s1301_s1 + $0x150] sm:$0xff] }
   0xb   :  { %432 = vmatprep.subr.bf16.mxu0 %v833_v21  ;;  %505 = vmatprep.subr.bf16.mxu1 %v835_v22  ;;  %v817_v37 = vcombine.high %v44_v31, %v48_v32  ;;  %v36_v38 = vld [vmem:[%s1301_s1 + $0x80] sm:$0xff]  ;;  %v819_v39 = vcombine.high %v45_v33, %v49_v34  ;;  %v37_v41 = vld [vmem:[%s1301_s1 + $0x88] sm:$0xff]  ;;  %v816_v43 = vcombine.low %v44_v31, %v48_v32  ;;  %v66_v18 = vld [vmem:[%s1301_s1 + $0x170] sm:$0xff] }
   0xc   :  { %v40_v40 = vld [vmem:[%s1301_s1 + $0xa0] sm:$0xff]  ;;  %v41_v42 = vld [vmem:[%s1301_s1 + $0xa8] sm:$0xff]  ;;  %v818_v44 = vcombine.low %v45_v33, %v49_v34  ;;  %v63_v19 = vld [vmem:[%s1301_s1 + $0x158] sm:$0xff]  ;;  %v844_v21 = vcombine.low %v70_v8, %v74_v9  ;;  %v846_v22 = vcombine.low %v71_v11, %v75_v12  ;;  %v837_v23 = vcombine.high %v62_v17, %v66_v18 }
   0xd   :  { %v809_v45 = vcombine.high %v36_v38, %v40_v40  ;;  %v28_v46 = vld [vmem:[%s1301_s1 + $0x40] sm:$0xff]  ;;  %v811_v47 = vcombine.high %v37_v41, %v41_v42  ;;  %v29_v49 = vld [vmem:[%s1301_s1 + $0x48] sm:$0xff]  ;;  %v808_v51 = vcombine.low %v36_v38, %v40_v40  ;;  %v810_v52 = vcombine.low %v37_v41, %v41_v42  ;;  %v67_v20 = vld [vmem:[%s1301_s1 + $0x178] sm:$0xff] }
   0xe   :  { %433 = vmatpush1.bf16.msra.mxu0 %v832_v27  ;;  %506 = vmatpush1.bf16.msra.mxu1 %v834_v28  ;;  %v32_v48 = vld [vmem:[%s1301_s1 + $0x60] sm:$0xff]  ;;  %v33_v50 = vld [vmem:[%s1301_s1 + $0x68] sm:$0xff]  ;;  %v839_v24 = vcombine.high %v63_v19, %v67_v20  ;;  %v54_v25 = vld [vmem:[%s1301_s1 + $0x110] sm:$0xff]  ;;  %v838_v31 = vcombine.low %v63_v19, %v67_v20 }
   0xf   :  { %434 = vmatprep.subr.bf16.mxu0 %v825_v29  ;;  %507 = vmatprep.subr.bf16.mxu1 %v827_v30  ;;  %v801_v53 = vcombine.high %v28_v46, %v32_v48  ;;  %v803_v54 = vcombine.high %v29_v49, %v33_v50  ;;  %v20_v55 = vld [vmem:[%s1301_s1] sm:$0xff]  ;;  %v21_v57 = vld [vmem:[%s1301_s1 + $0x8] sm:$0xff]  ;;  %v800_v59 = vcombine.low %v28_v46, %v32_v48  ;;  %v58_v26 = vld [vmem:[%s1301_s1 + $0x130] sm:$0xff] }
  0x10   :  { %v24_v56 = vld [vmem:[%s1301_s1 + $0x20] sm:$0xff]  ;;  %v25_v58 = vld [vmem:[%s1301_s1 + $0x28] sm:$0xff]  ;;  %v802_v60 = vcombine.low %v29_v49, %v33_v50  ;;  %v55_v28 = vld [vmem:[%s1301_s1 + $0x118] sm:$0xff]  ;;  %v836_v30 = vcombine.low %v62_v17, %v66_v18  ;;  %v829_v32 = vcombine.high %v54_v25, %v58_v26  ;;  %v828_v38 = vcombine.low %v54_v25, %v58_v26 }
  0x11   :  { %v793_v61 = vcombine.high %v20_v55, %v24_v56  ;;  %v795_v62 = vcombine.high %v21_v57, %v25_v58  ;;  %v792_v4 = vcombine.low %v20_v55, %v24_v56  ;;  %v794_v5 = vcombine.low %v21_v57, %v25_v58  ;;  %v996_v10 = vld [vmem:[%s1302_s0] sm:$0xff]   ;;  %v1029_v27 = vld [vmem:[%s1302_s0 + $0x8] sm:$0xff]   ;;  %v59_v29 = vld [vmem:[%s1301_s1 + $0x138] sm:$0xff] }
  0x12   :  { %435 = vmatpush1.bf16.msra.mxu0 %v824_v35  ;;  %508 = vmatpush1.bf16.msra.mxu1 %v826_v36  ;;  %v831_v33 = vcombine.high %v55_v28, %v59_v29  ;;  %v46_v34 = vld [vmem:[%s1301_s1 + $0xd0] sm:$0xff]  ;;  %v47_v36 = vld [vmem:[%s1301_s1 + $0xd8] sm:$0xff] }
  0x13   :  { %436 = vmatprep.subr.bf16.mxu0 %v817_v37  ;;  %509 = vmatprep.subr.bf16.mxu1 %v819_v39  ;;  %v50_v35 = vld [vmem:[%s1301_s1 + $0xf0] sm:$0xff]  ;;  %v51_v37 = vld [vmem:[%s1301_s1 + $0xf8] sm:$0xff]  ;;  %v830_v39 = vcombine.low %v55_v28, %v59_v29 }
  0x14   :  { %v821_v40 = vcombine.high %v46_v34, %v50_v35  ;;  %v823_v41 = vcombine.high %v47_v36, %v51_v37  ;;  %v38_v42 = vld [vmem:[%s1301_s1 + $0x90] sm:$0xff]  ;;  %v43_v46 = vld [vmem:[%s1301_s1 + $0xb8] sm:$0xff]  ;;  %v822_v48 = vcombine.low %v47_v36, %v51_v37 }
  0x15   :  { %v27_v63 = vld [vmem:[%s1301_s1 + $0x38] sm:$0xff] }
  0x16   :  { %437 = vmatpush1.bf16.msra.mxu0 %v816_v43  ;;  %510 = vmatpush1.bf16.msra.mxu1 %v818_v44  ;;  %v42_v43 = vld [vmem:[%s1301_s1 + $0xb0] sm:$0xff] }
  0x17   :  { %438 = vmatprep.subr.bf16.mxu0 %v809_v45  ;;  %511 = vmatprep.subr.bf16.mxu1 %v811_v47  ;;  %v859_v44 = vld [vmem:[%s1302_s0 + $0x10] sm:$0xff]   ;;  %v39_v45 = vld [vmem:[%s1301_s1 + $0x98] sm:$0xff]  ;;  %v820_v47 = vcombine.low %v46_v34, %v50_v35  ;;  %v813_v49 = vcombine.high %v38_v42, %v42_v43  ;;  %v812_v55 = vcombine.low %v38_v42, %v42_v43 }
  0x18   :  { %v815_v50 = vcombine.high %v39_v45, %v43_v46  ;;  %v814_v56 = vcombine.low %v39_v45, %v43_v46 }
  0x1a   :  { %439 = vmatpush1.bf16.msra.mxu0 %v808_v51  ;;  %512 = vmatpush1.bf16.msra.mxu1 %v810_v52  ;;  %v30_v51 = vld [vmem:[%s1301_s1 + $0x50] sm:$0xff] }
  0x1b   :  { %440 = vmatprep.subr.bf16.mxu0 %v801_v53  ;;  %513 = vmatprep.subr.bf16.mxu1 %v803_v54  ;;  %v34_v52 = vld [vmem:[%s1301_s1 + $0x70] sm:$0xff]  ;;  %v31_v53 = vld [vmem:[%s1301_s1 + $0x58] sm:$0xff] }
  0x1c   :  { %v35_v54 = vld [vmem:[%s1301_s1 + $0x78] sm:$0xff]  ;;  %v805_v57 = vcombine.high %v30_v51, %v34_v52  ;;  %v804_v0 = vcombine.low %v30_v51, %v34_v52 }
  0x1d   :  { %v807_v58 = vcombine.high %v31_v53, %v35_v54  ;;  %v806_v1 = vcombine.low %v31_v53, %v35_v54 }
  0x1e   :  { %441 = vmatpush1.bf16.msra.mxu0 %v800_v59  ;;  %514 = vmatpush1.bf16.msra.mxu1 %v802_v60  ;;  %v22_v59 = vld [vmem:[%s1301_s1 + $0x10] sm:$0xff] }
  0x1f   :  { %442 = vmatprep.subr.bf16.mxu0 %v793_v61  ;;  %515 = vmatprep.subr.bf16.mxu1 %v795_v62  ;;  %v26_v60 = vld [vmem:[%s1301_s1 + $0x30] sm:$0xff]  ;;  %v860_v61 = vld [vmem:[%s1302_s0 + $0x18] sm:$0xff]  }
  0x20   :  { %v23_v62 = vld [vmem:[%s1301_s1 + $0x18] sm:$0xff]  ;;  %v797_v2 = vcombine.high %v22_v59, %v26_v60 }
  0x22   :  { %443 = vmatpush1.bf16.msra.mxu0 %v792_v4  ;;  %516 = vmatpush1.bf16.msra.mxu1 %v794_v5  ;;  %v799_v4 = vcombine.high %v23_v62, %v27_v63  ;;  %v796_v5 = vcombine.low %v22_v59, %v26_v60 }
  0x23   :  { %574 = vmatprep.subr.bf16.mxu0 %v853_v6  ;;  %647 = vmatprep.subr.bf16.mxu1 %v855_v7  ;;  %v798_v6 = vcombine.low %v23_v62, %v27_v63 }
  0x25   :  { %461 = vmatmul.mubr.bf16.vlgmr.msra.gmra.mxu0 %v996_v10  ;;  %534 = vmatmul.mubr.bf16.vlgmr.msra.gmra.mxu1 %v996_v10 }
  0x26   :  { %575 = vmatpush1.bf16.msra.mxu0 %v852_v13  ;;  %648 = vmatpush1.bf16.msra.mxu1 %v854_v14 }
  0x27   :  { %576 = vmatprep.subr.bf16.mxu0 %v845_v15  ;;  %649 = vmatprep.subr.bf16.mxu1 %v847_v16 }
  0x28   :  { %470 = vmatprep.mubr.bf16.mxu0 %v861_v3  ;;  %543 = vmatprep.mubr.bf16.mxu1 %v861_v3 }
  0x2a   :  { %577 = vmatpush1.bf16.msra.mxu0 %v844_v21  ;;  %650 = vmatpush1.bf16.msra.mxu1 %v846_v22 }
  0x2b   :  { %578 = vmatprep.subr.bf16.mxu0 %v837_v23  ;;  %651 = vmatprep.subr.bf16.mxu1 %v839_v24 }
  0x2d   :  { %471 = vmatmul.mubr.bf16.gmra.mxu0 %v1029_v27  ;;  %544 = vmatmul.mubr.bf16.gmra.mxu1 %v1029_v27 }
  0x2e   :  { %579 = vmatpush1.bf16.msra.mxu0 %v836_v30  ;;  %652 = vmatpush1.bf16.msra.mxu1 %v838_v31 }
  0x2f   :  { %580 = vmatprep.subr.bf16.mxu0 %v829_v32  ;;  %653 = vmatprep.subr.bf16.mxu1 %v831_v33 }
  0x30   :  { %480 = vmatprep.mubr.bf16.mxu0 %v861_v3  ;;  %553 = vmatprep.mubr.bf16.mxu1 %v861_v3 }
  0x32   :  { %581 = vmatpush1.bf16.msra.mxu0 %v828_v38  ;;  %654 = vmatpush1.bf16.msra.mxu1 %v830_v39 }
  0x33   :  { %582 = vmatprep.subr.bf16.mxu0 %v821_v40  ;;  %655 = vmatprep.subr.bf16.mxu1 %v823_v41 }
  0x35   :  { %481 = vmatmul.mubr.bf16.gmra.mxu0 %v859_v44  ;;  %554 = vmatmul.mubr.bf16.gmra.mxu1 %v859_v44 }
  0x36   :  { %583 = vmatpush1.bf16.msra.mxu0 %v820_v47  ;;  %656 = vmatpush1.bf16.msra.mxu1 %v822_v48 }
  0x37   :  { %584 = vmatprep.subr.bf16.mxu0 %v813_v49  ;;  %657 = vmatprep.subr.bf16.mxu1 %v815_v50 }
  0x38   :  { %490 = vmatprep.mubr.bf16.mxu0 %v861_v3  ;;  %563 = vmatprep.mubr.bf16.mxu1 %v861_v3 }
  0x3a   :  { %585 = vmatpush1.bf16.msra.mxu0 %v812_v55  ;;  %658 = vmatpush1.bf16.msra.mxu1 %v814_v56 }
  0x3b   :  { %586 = vmatprep.subr.bf16.mxu0 %v805_v57  ;;  %659 = vmatprep.subr.bf16.mxu1 %v807_v58 }
  0x3d   :  { %491 = vmatmul.mubr.bf16.gmra.mxu0 %v860_v61  ;;  %564 = vmatmul.mubr.bf16.gmra.mxu1 %v860_v61 }
  0x3e   :  { %587 = vmatpush1.bf16.msra.mxu0 %v804_v0  ;;  %660 = vmatpush1.bf16.msra.mxu1 %v806_v1 }
  0x3f   :  { %588 = vmatprep.subr.bf16.mxu0 %v797_v2  ;;  %661 = vmatprep.subr.bf16.mxu1 %v799_v4 }
  0x40   :  { %606 = vmatprep.mubr.bf16.mxu0 %v861_v3  ;;  %679 = vmatprep.mubr.bf16.mxu1 %v861_v3 }
  0x42   :  { %589 = vmatpush1.bf16.msra.mxu0 %v796_v5  ;;  %662 = vmatpush1.bf16.msra.mxu1 %v798_v6 }
  0x45   :  { %607 = vmatmul.mubr.bf16.vlgmr.msra.gmra.mxu0 %v996_v10  ;;  %680 = vmatmul.mubr.bf16.vlgmr.msra.gmra.mxu1 %v996_v10 }
  0x46   :  { %616 = vmatprep.mubr.bf16.mxu0 %v861_v3  ;;  %689 = vmatprep.mubr.bf16.mxu1 %v861_v3 }
  0x4d   :  { %617 = vmatmul.mubr.bf16.gmra.mxu0 %v1029_v27  ;;  %690 = vmatmul.mubr.bf16.gmra.mxu1 %v1029_v27 }
  0x4e   :  { %626 = vmatprep.mubr.bf16.mxu0 %v861_v3  ;;  %699 = vmatprep.mubr.bf16.mxu1 %v861_v3 }
  0x55   :  { %627 = vmatmul.mubr.bf16.gmra.mxu0 %v859_v44  ;;  %700 = vmatmul.mubr.bf16.gmra.mxu1 %v859_v44 }
  0x56   :  { %636 = vmatprep.mubr.bf16.mxu0 %v861_v3  ;;  %709 = vmatprep.mubr.bf16.mxu1 %v861_v3 }
  0x5d   :  { %637 = vmatmul.mubr.bf16.gmra.mxu0 %v860_v61  ;;  %710 = vmatmul.mubr.bf16.gmra.mxu1 %v860_v61 }
  0xe5   :  { %v462_v7 = vpop.f32.mrf.mxu0  ;;  %v535_v8 = vpop.f32.mrf.mxu1 }
  0xe6   :  { %720 = vst [vmem:[%s1303_s2] sm:$0xff] %v462_v7  ;;  %722 = vst [vmem:[%s1303_s2 + $0x10] sm:$0xff] %v535_v8 }
  0xe7   :  { %v464_v9 = vpop.f32.mrf.mxu0  ;;  %v537_v10 = vpop.f32.mrf.mxu1 }
  0xe8   :  { %721 = vst [vmem:[%s1303_s2 + $0x8] sm:$0xff] %v464_v9  ;;  %723 = vst [vmem:[%s1303_s2 + $0x18] sm:$0xff] %v537_v10 }
  0xe9   :  { %v466_v3 = vpop.f32.mrf.mxu0  ;;  %v539_v11 = vpop.f32.mrf.mxu1 }
  0xea   :  { %728 = vst [vmem:[%s1303_s2 + $0x40] sm:$0xff] %v466_v3  ;;  %730 = vst [vmem:[%s1303_s2 + $0x50] sm:$0xff] %v539_v11 }
  0xeb   :  { %v468_v12 = vpop.f32.mrf.mxu0  ;;  %v541_v13 = vpop.f32.mrf.mxu1 }
  0xec   :  { %729 = vst [vmem:[%s1303_s2 + $0x48] sm:$0xff] %v468_v12  ;;  %731 = vst [vmem:[%s1303_s2 + $0x58] sm:$0xff] %v541_v13 }
  0xed   :  { %v472_v14 = vpop.f32.mrf.mxu0  ;;  %v545_v15 = vpop.f32.mrf.mxu1 }
  0xee   :  { %736 = vst [vmem:[%s1303_s2 + $0x80] sm:$0xff] %v472_v14  ;;  %738 = vst [vmem:[%s1303_s2 + $0x90] sm:$0xff] %v545_v15 }
  0xef   :  { %v474_v16 = vpop.f32.mrf.mxu0  ;;  %v547_v17 = vpop.f32.mrf.mxu1 }
  0xf0   :  { %737 = vst [vmem:[%s1303_s2 + $0x88] sm:$0xff] %v474_v16  ;;  %739 = vst [vmem:[%s1303_s2 + $0x98] sm:$0xff] %v547_v17 }
  0xf1   :  { %v476_v18 = vpop.f32.mrf.mxu0  ;;  %v549_v19 = vpop.f32.mrf.mxu1 }
  0xf2   :  { %744 = vst [vmem:[%s1303_s2 + $0xc0] sm:$0xff] %v476_v18  ;;  %746 = vst [vmem:[%s1303_s2 + $0xd0] sm:$0xff] %v549_v19 }
  0xf3   :  { %v478_v20 = vpop.f32.mrf.mxu0  ;;  %v551_v21 = vpop.f32.mrf.mxu1 }
  0xf4   :  { %745 = vst [vmem:[%s1303_s2 + $0xc8] sm:$0xff] %v478_v20  ;;  %747 = vst [vmem:[%s1303_s2 + $0xd8] sm:$0xff] %v551_v21 }
  0xf5   :  { %v482_v22 = vpop.f32.mrf.mxu0  ;;  %v555_v23 = vpop.f32.mrf.mxu1 }
  0xf6   :  { %752 = vst [vmem:[%s1303_s2 + $0x100] sm:$0xff] %v482_v22  ;;  %754 = vst [vmem:[%s1303_s2 + $0x110] sm:$0xff] %v555_v23 }
  0xf7   :  { %v484_v24 = vpop.f32.mrf.mxu0  ;;  %v557_v25 = vpop.f32.mrf.mxu1 }
  0xf8   :  { %753 = vst [vmem:[%s1303_s2 + $0x108] sm:$0xff] %v484_v24  ;;  %755 = vst [vmem:[%s1303_s2 + $0x118] sm:$0xff] %v557_v25 }
  0xf9   :  { %v486_v26 = vpop.f32.mrf.mxu0  ;;  %v559_v27 = vpop.f32.mrf.mxu1 }
  0xfa   :  { %760 = vst [vmem:[%s1303_s2 + $0x140] sm:$0xff] %v486_v26  ;;  %762 = vst [vmem:[%s1303_s2 + $0x150] sm:$0xff] %v559_v27 }
  0xfb   :  { %v488_v28 = vpop.f32.mrf.mxu0  ;;  %v561_v29 = vpop.f32.mrf.mxu1 }
  0xfc   :  { %761 = vst [vmem:[%s1303_s2 + $0x148] sm:$0xff] %v488_v28  ;;  %763 = vst [vmem:[%s1303_s2 + $0x158] sm:$0xff] %v561_v29 }
  0xfd   :  { %v492_v30 = vpop.f32.mrf.mxu0  ;;  %v565_v31 = vpop.f32.mrf.mxu1 }
  0xfe   :  { %768 = vst [vmem:[%s1303_s2 + $0x180] sm:$0xff] %v492_v30  ;;  %770 = vst [vmem:[%s1303_s2 + $0x190] sm:$0xff] %v565_v31 }
  0xff   :  { %v494_v32 = vpop.f32.mrf.mxu0  ;;  %v567_v33 = vpop.f32.mrf.mxu1 }
 0x100   :  { %769 = vst [vmem:[%s1303_s2 + $0x188] sm:$0xff] %v494_v32  ;;  %771 = vst [vmem:[%s1303_s2 + $0x198] sm:$0xff] %v567_v33 }
 0x101   :  { %v496_v34 = vpop.f32.mrf.mxu0  ;;  %v569_v35 = vpop.f32.mrf.mxu1 }
 0x102   :  { %776 = vst [vmem:[%s1303_s2 + $0x1c0] sm:$0xff] %v496_v34  ;;  %778 = vst [vmem:[%s1303_s2 + $0x1d0] sm:$0xff] %v569_v35 }
 0x103   :  { %v498_v36 = vpop.f32.mrf.mxu0  ;;  %v571_v37 = vpop.f32.mrf.mxu1 }
 0x104   :  { %777 = vst [vmem:[%s1303_s2 + $0x1c8] sm:$0xff] %v498_v36  ;;  %779 = vst [vmem:[%s1303_s2 + $0x1d8] sm:$0xff] %v571_v37 }
 0x105   :  { %v608_v38 = vpop.f32.mrf.mxu0  ;;  %v681_v39 = vpop.f32.mrf.mxu1 }
 0x106   :  { %724 = vst [vmem:[%s1303_s2 + $0x20] sm:$0xff] %v608_v38  ;;  %726 = vst [vmem:[%s1303_s2 + $0x30] sm:$0xff] %v681_v39 }
 0x107   :  { %v610_v40 = vpop.f32.mrf.mxu0  ;;  %v683_v41 = vpop.f32.mrf.mxu1 }
 0x108   :  { %725 = vst [vmem:[%s1303_s2 + $0x28] sm:$0xff] %v610_v40  ;;  %727 = vst [vmem:[%s1303_s2 + $0x38] sm:$0xff] %v683_v41 }
 0x109   :  { %v612_v42 = vpop.f32.mrf.mxu0  ;;  %v685_v43 = vpop.f32.mrf.mxu1 }
 0x10a   :  { %732 = vst [vmem:[%s1303_s2 + $0x60] sm:$0xff] %v612_v42  ;;  %734 = vst [vmem:[%s1303_s2 + $0x70] sm:$0xff] %v685_v43 }
 0x10b   :  { %v614_v44 = vpop.f32.mrf.mxu0  ;;  %v687_v45 = vpop.f32.mrf.mxu1 }
 0x10c   :  { %733 = vst [vmem:[%s1303_s2 + $0x68] sm:$0xff] %v614_v44  ;;  %735 = vst [vmem:[%s1303_s2 + $0x78] sm:$0xff] %v687_v45 }
 0x10d   :  { %v618_v46 = vpop.f32.mrf.mxu0  ;;  %v691_v47 = vpop.f32.mrf.mxu1 }
 0x10e   :  { %740 = vst [vmem:[%s1303_s2 + $0xa0] sm:$0xff] %v618_v46  ;;  %742 = vst [vmem:[%s1303_s2 + $0xb0] sm:$0xff] %v691_v47 }
 0x10f   :  { %v620_v48 = vpop.f32.mrf.mxu0  ;;  %v693_v49 = vpop.f32.mrf.mxu1 }
 0x110   :  { %741 = vst [vmem:[%s1303_s2 + $0xa8] sm:$0xff] %v620_v48  ;;  %743 = vst [vmem:[%s1303_s2 + $0xb8] sm:$0xff] %v693_v49 }
 0x111   :  { %v622_v50 = vpop.f32.mrf.mxu0  ;;  %v695_v51 = vpop.f32.mrf.mxu1 }
 0x112   :  { %748 = vst [vmem:[%s1303_s2 + $0xe0] sm:$0xff] %v622_v50  ;;  %750 = vst [vmem:[%s1303_s2 + $0xf0] sm:$0xff] %v695_v51 }
 0x113   :  { %v624_v52 = vpop.f32.mrf.mxu0  ;;  %v697_v53 = vpop.f32.mrf.mxu1 }
 0x114   :  { %749 = vst [vmem:[%s1303_s2 + $0xe8] sm:$0xff] %v624_v52  ;;  %751 = vst [vmem:[%s1303_s2 + $0xf8] sm:$0xff] %v697_v53 }
 0x115   :  { %v628_v54 = vpop.f32.mrf.mxu0  ;;  %v701_v55 = vpop.f32.mrf.mxu1 }
 0x116   :  { %756 = vst [vmem:[%s1303_s2 + $0x120] sm:$0xff] %v628_v54  ;;  %758 = vst [vmem:[%s1303_s2 + $0x130] sm:$0xff] %v701_v55 }
 0x117   :  { %v630_v56 = vpop.f32.mrf.mxu0  ;;  %v703_v57 = vpop.f32.mrf.mxu1 }
 0x118   :  { %757 = vst [vmem:[%s1303_s2 + $0x128] sm:$0xff] %v630_v56  ;;  %759 = vst [vmem:[%s1303_s2 + $0x138] sm:$0xff] %v703_v57 }
 0x119   :  { %v632_v58 = vpop.f32.mrf.mxu0  ;;  %v705_v59 = vpop.f32.mrf.mxu1 }
 0x11a   :  { %764 = vst [vmem:[%s1303_s2 + $0x160] sm:$0xff] %v632_v58  ;;  %766 = vst [vmem:[%s1303_s2 + $0x170] sm:$0xff] %v705_v59 }
 0x11b   :  { %v634_v60 = vpop.f32.mrf.mxu0  ;;  %v707_v61 = vpop.f32.mrf.mxu1 }
 0x11c   :  { %765 = vst [vmem:[%s1303_s2 + $0x168] sm:$0xff] %v634_v60  ;;  %767 = vst [vmem:[%s1303_s2 + $0x178] sm:$0xff] %v707_v61 }
 0x11d   :  { %v638_v62 = vpop.f32.mrf.mxu0  ;;  %v711_v63 = vpop.f32.mrf.mxu1 }
 0x11e   :  { %772 = vst [vmem:[%s1303_s2 + $0x1a0] sm:$0xff] %v638_v62  ;;  %774 = vst [vmem:[%s1303_s2 + $0x1b0] sm:$0xff] %v711_v63 }
 0x11f   :  { %v640_v0 = vpop.f32.mrf.mxu0  ;;  %v713_v1 = vpop.f32.mrf.mxu1 }
 0x120   :  { %773 = vst [vmem:[%s1303_s2 + $0x1a8] sm:$0xff] %v640_v0  ;;  %775 = vst [vmem:[%s1303_s2 + $0x1b8] sm:$0xff] %v713_v1 }
 0x121   :  { %v642_v2 = vpop.f32.mrf.mxu0  ;;  %v715_v4 = vpop.f32.mrf.mxu1 }
 0x122   :  { %780 = vst [vmem:[%s1303_s2 + $0x1e0] sm:$0xff] %v642_v2  ;;  %782 = vst [vmem:[%s1303_s2 + $0x1f0] sm:$0xff] %v715_v4 }
 0x123   :  { %v644_v5 = vpop.f32.mrf.mxu0  ;;  %v717_v6 = vpop.f32.mrf.mxu1 }
 0x124   :  { %781 = vst [vmem:[%s1303_s2 + $0x1e8] sm:$0xff] %v644_v5  ;;  %783 = vst [vmem:[%s1303_s2 + $0x1f8] sm:$0xff] %v717_v6 }

// kernel: forward.5
= control target key start
LH: loop header
LB: loop body
LE: loop exit
PB: predicated region body
PF: predicated region fallthrough
CT: control target
= control target key end

     0   :  { %s1120_s21 = smov 0   ;;  %s1122_s22 = smov 0   ;;  %s1253_s0 = inlined_call_operand.vmem [shape: f32[2,8,8,512], index: 0, kind: input, shape index: {}]   ;;  %s1254_s1 = inlined_call_operand.vmem [shape: bf16[2,128,512], index: 1, kind: input, shape index: {}]   ;;  %s1255_s2 = inlined_call_operand.vmem [shape: f32[2,1,512], index: 2, kind: input, shape index: {}]   ;;  %s1256_s3 = inlined_call_operand.vmem [shape: f32[2,8,128], index: 3, kind: input, shape index: {}]   ;;  %s1257_s4 = inlined_call_operand.vmem [shape: f32[2,8,128], index: 4, kind: input, shape index: {}]   ;;  %s1258_s5 = inlined_call_operand.vmem [shape: f32[2,8,8,128], index: 5, kind: output, shape index: {0}]   ;;  %s1259_s6 = inlined_call_operand.vmem [shape: f32[2,8,128], index: 6, kind: output, shape index: {1}]  }
   0x1   :  { %s1124_s23 = smov 0   ;;  %s1126_s24 = smov 0  }
   0x2   :  { %s1128_s25 = smov 0  }
   0x3 LB: > { %s26_s26 = sadd.s32 1, %s1074_s23  ;;  %s29_s27 = sadd.s32 1, %s1078_s24  ;;  %s1082_s25 = sphi %s1128_s25, %s17_s25   ;;  %s1078_s24 = sphi %s1126_s24, %s1265_s24   ;;  %s1074_s23 = sphi %s1124_s23, %s1264_s23   ;;  %s1070_s22 = sphi %s1122_s22, %s1263_s22   ;;  %s1066_s21 = sphi %s1120_s21, %s1262_s21  }
   0x4   : > { %p27_p0 = scmp.ge.s32.totalorder %s26_s26, 8  ;;  %p888_p1 = scmp.ge.s32.totalorder %s1082_s25, 1 }
   0x5   : > { %p272_p2 = scmp.lt.s32.totalorder %s1082_s25, 17 }
   0x6   : > { %s1267_s26 = smov (%p27_p0, %s26_s26), 0  ;;  %s1269_s27 = smov (!%p27_p0, %s29_s27), %s1078_s24 }
   0x7   : > { %p273_p3 = pnand %p888_p1, %p272_p2  ;;  %p31_p4 = scmp.ge.s32.totalorder %s1269_s27, 2 }
   0x8   : > { %p330_p5 = scmp.lt.s32.totalorder (!%p273_p3), %s1070_s22, 1  ;;  %p332_p6 = scmp.lt.s32.totalorder (!%p273_p3), %s1066_s21, 7 }
   0x9   : > { %s1271_s27 = smov (%p31_p4, %s1269_s27), 0  ;;  %276 = sbr.rel (%p273_p3) target bundleno = 317 (0x13d), region = 40 }
   0xa   : > { %1260 = sst [smem:[#allocation4_spill]] %s1271_s27  ;;  %p900_p7 = scmp.ne.s32.totalorder (!%p273_p3), %s1066_s21, 0 }
   0xe   : > { %s1273_s22 = smov (!%p330_p5, %s1070_s22), 1 }
   0xf   : > { %s333_s28 = scalar_select %p332_p6, %s1066_s21, 7 }
  0x10   : > { %s890_s29 = sshll.u32 %s1273_s22, 5  ;;  %s938_s30 = sshll.u32 %s1273_s22, 8 }
  0x11   : > { %s889_s7 = sshll.u32 %s333_s28, 2  ;;  %s1157_s10 = scalar_lea.vmem %s1254_s1, %s938_s30 }
  0x12   : > { %s336_s11 = sadd.s32 %s890_s29, %s889_s7  ;;  %s894_s12 = sshll.u32 %s1273_s22, 2 }
  0x13   : > { %s891_s13 = sshll.u32 %s336_s11, 3  ;;  %s1162_s16 = scalar_lea.vmem %s1255_s2, %s894_s12 }
  0x14   : > { %s1167_s19 = scalar_lea.vmem %s1253_s0, %s891_s13  ;;  %s1169_s20 = sshll.u32 %s1273_s22, 3 }
  0x15   : > { %s351_s29 = scalar_lea.vmem %s1256_s3, %s1169_s20  ;;  %s355_s9 = scalar_lea.vmem %s1257_s4, %s1169_s20 }
  0x16   : > { %s361_s11 = sadd.s32 %s1169_s20, %s333_s28  ;;  %s367_s13 = scalar_lea.vmem %s1259_s6, %s1169_s20 }
  0x17   : > { %s1184_s15 = sshll.u32 %s361_s11, 3  ;;  %372 = sbr.rel (%p900_p7) target bundleno = 31 (0x1f), region = 44 }
  0x18   : > { %s363_s27 = scalar_lea.vmem %s1258_s5, %s1184_s15 }
  0x1c   : > { %v373_v0 = vld [vmem:[%s351_s29] sm:$0xff] }
  0x1d   : > { %v375_v1 = vld [vmem:[%s355_s9] sm:$0xff]  ;;  %374 = vst [vmem:[#allocation2] sm:$0xff] %v373_v0 }
  0x1e   : > { %376 = vst [vmem:[#allocation3] sm:$0xff] %v375_v1 }
  0x1f PF: > { %v980_v2 = vld [vmem:[%s1157_s10 + $0xe4] ss:$16 sps:$4 sm:$0xff]   ;;  %v982_v3 = vld [vmem:[%s1157_s10 + $0xe0] ss:$16 sps:$4 sm:$0xff]   ;;  %v1084_v4 = vmov 0   ;;  %v664_v37 = vlaneseq  ;;  %v380_v45 = vld [vmem:[%s1167_s19 + $0x8] sm:$0xff] }
  0x20   : > { %608 = vmatprep.mubr.bf16.mxu0 %v1084_v4  ;;  %649 = vmatprep.mubr.bf16.mxu1 %v1084_v4  ;;  %v983_v5 = vld [vmem:[%s1157_s10 + $0xc4] ss:$16 sps:$4 sm:$0xff]   ;;  %v985_v6 = vld [vmem:[%s1157_s10 + $0xc0] ss:$16 sps:$4 sm:$0xff]   ;;  %v991_v8 = vld [vmem:[%s1157_s10 + $0xec] ss:$16 sps:$4 sm:$0xff]  }
  0x21   : > { %576 = vmatprep.subr.bf16.mxu0 %v980_v2  ;;  %v986_v7 = vld [vmem:[%s1157_s10 + $0xa4] ss:$16 sps:$4 sm:$0xff]   ;;  %v994_v9 = vld [vmem:[%s1157_s10 + $0xe8] ss:$16 sps:$4 sm:$0xff]   ;;  %v988_v10 = vld [vmem:[%s1157_s10 + $0xa0] ss:$16 sps:$4 sm:$0xff]   ;;  %617 = vmatprep.subr.bf16.mxu1 %v991_v8 }
  0x22   : > { %577 = vmatpush1.bf16.msra.mxu0 %v982_v3  ;;  %v989_v11 = vld [vmem:[%s1157_s10 + $0x84] ss:$16 sps:$4 sm:$0xff]   ;;  %618 = vmatpush1.bf16.msra.mxu1 %v994_v9  ;;  %v997_v12 = vld [vmem:[%s1157_s10 + $0xcc] ss:$16 sps:$4 sm:$0xff]   ;;  %v1000_v13 = vld [vmem:[%s1157_s10 + $0xc8] ss:$16 sps:$4 sm:$0xff]  }
  0x23   : > { %578 = vmatprep.subr.bf16.mxu0 %v983_v5  ;;  %619 = vmatprep.subr.bf16.mxu1 %v997_v12  ;;  %v993_v14 = vld [vmem:[%s1157_s10 + $0x80] ss:$16 sps:$4 sm:$0xff]   ;;  %v995_v15 = vld [vmem:[%s1157_s10 + $0x64] ss:$16 sps:$4 sm:$0xff]   ;;  %v1003_v16 = vld [vmem:[%s1157_s10 + $0xac] ss:$16 sps:$4 sm:$0xff]  }
  0x24   : > { %v1006_v17 = vld [vmem:[%s1157_s10 + $0xa8] ss:$16 sps:$4 sm:$0xff]   ;;  %v1009_v18 = vld [vmem:[%s1157_s10 + $0x8c] ss:$16 sps:$4 sm:$0xff]   ;;  %v999_v19 = vld [vmem:[%s1157_s10 + $0x60] ss:$16 sps:$4 sm:$0xff]  }
  0x25   : > { %v1001_v20 = vld [vmem:[%s1157_s10 + $0x44] ss:$16 sps:$4 sm:$0xff]   ;;  %v1012_v21 = vld [vmem:[%s1157_s10 + $0x88] ss:$16 sps:$4 sm:$0xff]   ;;  %v1015_v22 = vld [vmem:[%s1157_s10 + $0x6c] ss:$16 sps:$4 sm:$0xff]  }
  0x26   : > { %579 = vmatpush1.bf16.msra.mxu0 %v985_v6  ;;  %620 = vmatpush1.bf16.msra.mxu1 %v1000_v13  ;;  %v1005_v23 = vld [vmem:[%s1157_s10 + $0x40] ss:$16 sps:$4 sm:$0xff]   ;;  %v1007_v24 = vld [vmem:[%s1157_s10 + $0x24] ss:$16 sps:$4 sm:$0xff]   ;;  %v1018_v25 = vld [vmem:[%s1157_s10 + $0x68] ss:$16 sps:$4 sm:$0xff]  }
  0x27   : > { %580 = vmatprep.subr.bf16.mxu0 %v986_v7  ;;  %621 = vmatprep.subr.bf16.mxu1 %v1003_v16  ;;  %v1019_v26 = vld [vmem:[%s1157_s10 + $0x4c] ss:$16 sps:$4 sm:$0xff]   ;;  %v1011_v27 = vld [vmem:[%s1157_s10 + $0x20] ss:$16 sps:$4 sm:$0xff]   ;;  %v1013_v28 = vld [vmem:[%s1157_s10 + $0x4] ss:$16 sps:$4 sm:$0xff]  }
  0x28   : > { %v1021_v29 = vld [vmem:[%s1157_s10 + $0x48] ss:$16 sps:$4 sm:$0xff]   ;;  %v1022_v30 = vld [vmem:[%s1157_s10 + $0x2c] ss:$16 sps:$4 sm:$0xff]   ;;  %v1017_v31 = vld [vmem:[%s1157_s10] ss:$16 sps:$4 sm:$0xff]  }
  0x29   : > { %v377_v32 = vld [vmem:[#allocation2] sm:$0xff]  ;;  %v1024_v33 = vld [vmem:[%s1157_s10 + $0x28] ss:$16 sps:$4 sm:$0xff]   ;;  %v1025_v34 = vld [vmem:[%s1157_s10 + $0xc] ss:$16 sps:$4 sm:$0xff]   ;;  %v665_v38 = vshrl.u32 %v664_v37, 7 }
  0x2a   : > { %581 = vmatpush1.bf16.msra.mxu0 %v988_v10  ;;  %622 = vmatpush1.bf16.msra.mxu1 %v1006_v17  ;;  %v383_v35 = vpack.c.bf16 %v377_v32, %v377_v32  ;;  %v1027_v36 = vld [vmem:[%s1157_s10 + $0x8] ss:$16 sps:$4 sm:$0xff]   ;;  %v662_v40 = vld [vmem:[%s1162_s16] sm:$0xf]  ;;  %v381_v62 = vld [vmem:[%s1167_s19 + $0x10] sm:$0xff] }
  0x2b   : > { %582 = vmatprep.subr.bf16.mxu0 %v989_v11  ;;  %623 = vmatprep.subr.bf16.mxu1 %v1009_v18  ;;  %v666_v39 = vsub.s32 0, %v665_v38  ;;  %v670_v41 = vsub.s32 1, %v665_v38  ;;  %v379_v42 = vld [vmem:[%s1167_s19] sm:$0xff]  ;;  %v678_v56 = vsub.s32 3, %v665_v38  ;;  %v382_v58 = vld [vmem:[%s1167_s19 + $0x18] sm:$0xff]  ;;  %v674_v60 = vsub.s32 2, %v665_v38 }
  0x2d   : > { %v667_v43 = vrot.slane %v662_v40, %v666_v39  ;;  %v671_v47 = vrot.slane %v662_v40, %v670_v41  ;;  %v679_v0 = vrot.slane %v662_v40, %v678_v56  ;;  %v675_v3 = vrot.slane %v662_v40, %v674_v60 }
  0x2e   : > { %583 = vmatpush1.bf16.msra.mxu0 %v993_v14  ;;  %624 = vmatpush1.bf16.msra.mxu1 %v1012_v21  ;;  %v378_v14 = vld [vmem:[#allocation3] sm:$0xff] }
  0x2f   : > { %584 = vmatprep.subr.bf16.mxu0 %v995_v15  ;;  %625 = vmatprep.subr.bf16.mxu1 %v1015_v22 }
  0x32   : > { %585 = vmatpush1.bf16.msra.mxu0 %v999_v19  ;;  %626 = vmatpush1.bf16.msra.mxu1 %v1018_v25 }
  0x33   : > { %586 = vmatprep.subr.bf16.mxu0 %v1001_v20  ;;  %627 = vmatprep.subr.bf16.mxu1 %v1019_v26 }
  0x36   : > { %587 = vmatpush1.bf16.msra.mxu0 %v1005_v23  ;;  %628 = vmatpush1.bf16.msra.mxu1 %v1021_v29 }
  0x37   : > { %588 = vmatprep.subr.bf16.mxu0 %v1007_v24  ;;  %629 = vmatprep.subr.bf16.mxu1 %v1022_v30 }
  0x3a   : > { %589 = vmatpush1.bf16.msra.mxu0 %v1011_v27  ;;  %630 = vmatpush1.bf16.msra.mxu1 %v1024_v33 }
  0x3b   : > { %590 = vmatprep.subr.bf16.mxu0 %v1013_v28  ;;  %631 = vmatprep.subr.bf16.mxu1 %v1025_v34 }
  0x3e   : > { %591 = vmatpush1.bf16.msra.mxu0 %v1017_v31  ;;  %632 = vmatpush1.bf16.msra.mxu1 %v1027_v36 }
  0x41   : > { %609 = vmatmul.mubr.bf16.vlgmr.msra.gmra.mxu0 %v383_v35  ;;  %650 = vmatmul.mubr.bf16.vlgmr.msra.gmra.mxu1 %v383_v35 }
 0x101   : > { %v610_v44 = vpop.f32.mrf.mxu0  ;;  %v651_v54 = vpop.f32.mrf.mxu1 }
 0x102   : > { %v658_v46 = vadd.f32 %v610_v44, %v379_v42  ;;  %v660_v2 = vadd.f32 %v651_v54, %v381_v62 }
 0x103   : > { %v612_v48 = vpop.f32.mrf.mxu0  ;;  %v653_v59 = vpop.f32.mrf.mxu1 }
 0x104   : > { %v684_v49 = vadd.f32 %v667_v43, %v658_v46  ;;  %v659_v50 = vadd.f32 %v612_v48, %v380_v45  ;;  %v661_v63 = vadd.f32 %v653_v59, %v382_v58  ;;  %v686_v5 = vadd.f32 %v675_v3, %v660_v2 }
 0x105   : > { %v614_v51 = vpop.f32.mrf.mxu0  ;;  %v655_v61 = vpop.f32.mrf.mxu1 }
 0x106   : > { %v933_v52 = vmul.f32 -1.442695, %v684_v49  ;;  %v685_v53 = vadd.f32 %v671_v47, %v659_v50  ;;  %v687_v4 = vadd.f32 %v679_v0, %v661_v63 }
 0x107   : > { %v615_v55 = vpop.f32.mrf.mxu0  ;;  %v656_v1 = vpop.f32.mrf.mxu1 }
 0x108   : > { %1028 = vpow2.f32 %v933_v52  ;;  %v934_v57 = vmul.f32 -1.442695, %v685_v53  ;;  %v935_v6 = vmul.f32 -1.442695, %v687_v4 }
 0x10a   : > { %1030 = vpow2.f32 %v934_v57 }
 0x10b   : > { %1032 = vtanh.f32 %v686_v5 }
 0x10c   : > { %1034 = vpow2.f32 %v935_v6 }
 0x115   : > { %v1029_v7 = vpop.eup %1028 }
 0x116   : > { %v691_v8 = vadd.f32 1.0, %v1029_v7 }
 0x117   : > { %v1031_v9 = vpop.eup %1030 }
 0x118   : > { %1036 = vrcp.f32 %v691_v8  ;;  %v697_v10 = vadd.f32 1.0, %v1031_v9  ;;  %v1033_v11 = vpop.eup %1032 }
 0x119   : > { %v1035_v12 = vpop.eup %1034 }
 0x11a   : > { %1038 = vrcp.f32 %v697_v10  ;;  %v704_v16 = vadd.f32 1.0, %v1035_v12 }
 0x11c   : > { %1040 = vrcp.f32 %v704_v16 }
 0x125   : > { %v1037_v13 = vpop.eup %1036 }
 0x126   : > { %v708_v18 = vmul.f32 %v1037_v13, %v1033_v11 }
 0x127   : > { %v1039_v15 = vpop.eup %1038 }
 0x128   : > { %v707_v17 = vmul.f32 %v1039_v15, %v378_v14 }
 0x129   : > { %v1041_v20 = vpop.eup %1040 }
 0x12a   : > { %v709_v19 = vadd.f32 %v708_v18, %v707_v17 }
 0x12c   : > { %1042 = vtanh.f32 %v709_v19  ;;  %713 = vst [vmem:[#allocation3] sm:$0xff] %v709_v19  ;;  %715 = vst [vmem:[%s367_s13] sm:$0xff] %v709_v19 }
 0x139   : > { %v1043_v21 = vpop.eup %1042 }
 0x13a   : > { %v711_v22 = vmul.f32 %v1043_v21, %v1041_v20 }
 0x13c   : > { %712 = vst [vmem:[#allocation2] sm:$0xff] %v711_v22  ;;  %714 = vst [vmem:[%s363_s27] sm:$0xff] %v711_v22 }
 0x13d PF: > { %s17_s25 = sadd.s32 1, %s1082_s25   ;;  %s1261_s18 = sld [smem:[#allocation4_spill]] }
 0x13e   : > { %p14_p8 = scmp.ge.s32.totalorder %s17_s25, 18   ;;  %s1262_s21 = smov %s1074_s23 }
 0x13f   : > { %s1263_s22 = smov %s1078_s24  ;;  %s1264_s23 = smov %s1267_s26 }
 0x140   :  { %16 = sbr.rel (!%p14_p8) target bundleno = 3 (0x3), region = 98 }
 0x143   : > { %s1265_s24 = smov %s1261_s18 }

// kernel: forward.7
= control target key start
LH: loop header
LB: loop body
LE: loop exit
PB: predicated region body
PF: predicated region fallthrough
CT: control target
= control target key end

     0   :  { %20 = vsyncpa [#allocation7], 0  ;;  %s11289_s0 = inlined_call_operand.vmem [shape: f32[8,8,1024], index: 0, kind: input, shape index: {}]   ;;  %s11290_s1 = inlined_call_operand.vmem [shape: f32[8,8,256], index: 1, kind: input, shape index: {}]   ;;  %s11291_s2 = inlined_call_operand.vmem [shape: f32[8,256], index: 2, kind: input, shape index: {}]   ;;  %s11292_s3 = inlined_call_operand.vmem [shape: f32[8,256], index: 3, kind: input, shape index: {}]   ;;  %s11293_s4 = inlined_call_operand.vmem [shape: bf16[256,256], index: 4, kind: input, shape index: {}]   ;;  %s11294_s5 = inlined_call_operand.vmem [shape: bf16[256,256], index: 5, kind: input, shape index: {}]   ;;  %s11295_s6 = inlined_call_operand.vmem [shape: bf16[256,1024], index: 6, kind: input, shape index: {}]   ;;  %s11296_s7 = inlined_call_operand.vmem [shape: bf16[256,1024], index: 7, kind: input, shape index: {}]   ;;  %s11297_s8 = inlined_call_operand.vmem [shape: bf16[256,1024], index: 8, kind: input, shape index: {}]   ;;  %s11298_s9 = inlined_call_operand.vmem [shape: f32[1,1024], index: 9, kind: input, shape index: {}]   ;;  %s11299_s10 = inlined_call_operand.vmem [shape: bf16[768,256], index: 10, kind: input, shape index: {}]   ;;  %s11300_s11 = inlined_call_operand.vmem [shape: f32[1,256], index: 11, kind: input, shape index: {}]   ;;  %s11301_s12 = inlined_call_operand.vmem [shape: f32[8,8,256], index: 12, kind: output, shape index: {0}]   ;;  %s11302_s13 = inlined_call_operand.hbm [shape: f32[8,256], index: 13, kind: output, shape index: {1}]   ;;  %s11303_s14 = inlined_call_operand.hbm [shape: f32[8,256], index: 14, kind: output, shape index: {2}]  }
   0x1   :  { %21 = vsyncpa [#allocation9], 0  ;;  %s8967_s29 = smov 0  }
   0x2 LB: > { %s8973_s30 = sadd.s32 4294967295, %s8885_s29   ;;  %p7900_p0 = scmp.ge.s32.totalorder %s8885_s29, 1  ;;  %s8885_s29 = sphi %s8967_s29, %s27_s29  }
   0x3   : > { %p409_p1 = scmp.lt.s32.totalorder %s8885_s29, 9 }
   0x5   : > { %p410_p2 = pnand %p7900_p0, %p409_p1 }
   0x6   : > { %p455_p3 = scmp.lt.s32.totalorder (!%p410_p2), %s8973_s30, 7  ;;  %p465_p4 = scmp.eq.s32.totalorder (!%p410_p2), %s8973_s30, 0 }
   0x7   : > { %413 = sbr.rel (%p410_p2) target bundleno = 2455 (0x997), region = 68  ;;  %p7905_p5 = scmp.ne.s32.totalorder (!%p410_p2), %s8973_s30, 0 }
   0xc   : > { %s456_s15 = scalar_select %p455_p3, %s8973_s30, 7 }
   0xd   : > { %468 = sbr.rel (%p7905_p5) target bundleno = 30 (0x1e), region = 72 }
   0xe   : > { %s8478_s16 = sshll.u32 %s456_s15, 6  ;;  %s8479_s17 = sshll.u32 %s456_s15, 4 }
   0xf   : > { %s8983_s20 = scalar_lea.vmem %s11289_s0, %s8478_s16  ;;  %s8988_s23 = scalar_lea.vmem %s11301_s12, %s8479_s17 }
  0x12   : > { %v469_v0 = vld [vmem:[%s11291_s2] sm:$0xff]  ;;  %v470_v1 = vld [vmem:[%s11291_s2 + $0x8] sm:$0xff]  ;;  %vm477_vm0 = vcmask 64512   ;;  %v8887_v4 = vmov 0.0  }
  0x13   : > { %v473_v2 = vld [vmem:[%s11292_s3] sm:$0xff]  ;;  %471 = vst [vmem:[#allocation2] sm:$0xff] %v469_v0  ;;  %472 = vst [vmem:[#allocation2 + $0x8] sm:$0xff] %v470_v1  ;;  %v474_v3 = vld [vmem:[%s11292_s3 + $0x8] sm:$0xff] }
  0x14   : > { %475 = vst [vmem:[#allocation3 + $0x8] sm:$0xff] %v473_v2  ;;  %478 = vst.msk [vmem:[#allocation4] sm:$0xff] %vm477_vm0, %v8887_v4 }
  0x15   : > { %479 = vst [vmem:[#allocation5 + $0x48] sm:$0xff] %v8887_v4  ;;  %480 = vst [vmem:[#allocation5 + $0x8] sm:$0xff] %v8887_v4 }
  0x16   : > { %481 = vst [vmem:[#allocation5 + $0x40] sm:$0xff] %v8887_v4  ;;  %482 = vst [vmem:[#allocation5 + $0x58] sm:$0xff] %v8887_v4 }
  0x17   : > { %483 = vst [vmem:[#allocation5 + $0x20] sm:$0xff] %v8887_v4  ;;  %484 = vst [vmem:[#allocation5 + $0x38] sm:$0xff] %v8887_v4 }
  0x18   : > { %485 = vst [vmem:[#allocation5 + $0x70] sm:$0xff] %v8887_v4  ;;  %486 = vst [vmem:[#allocation5 + $0x78] sm:$0xff] %v8887_v4 }
  0x19   : > { %487 = vst [vmem:[#allocation5 + $0x10] sm:$0xff] %v8887_v4  ;;  %488 = vst [vmem:[#allocation5 + $0x30] sm:$0xff] %v8887_v4 }
  0x1a   : > { %489 = vst [vmem:[#allocation5 + $0x68] sm:$0xff] %v8887_v4  ;;  %490 = vst [vmem:[#allocation5 + $0x28] sm:$0xff] %v8887_v4 }
  0x1b   : > { %491 = vst [vmem:[#allocation5 + $0x60] sm:$0xff] %v8887_v4  ;;  %492 = vst [vmem:[#allocation5] sm:$0xff] %v8887_v4 }
  0x1c   : > { %493 = vst [vmem:[#allocation5 + $0x18] sm:$0xff] %v8887_v4  ;;  %494 = vst [vmem:[#allocation5 + $0x50] sm:$0xff] %v8887_v4 }
  0x1d   : > { %476 = vst [vmem:[#allocation3] sm:$0xff] %v474_v3 }
  0x1e PF: > { %v8505_v5 = vld [vmem:[%s11293_s4 + $0x74] ss:$8 sps:$4 sm:$0xff]   ;;  %v8507_v6 = vld [vmem:[%s11293_s4 + $0x70] ss:$8 sps:$4 sm:$0xff]   ;;  %v8508_v7 = vld [vmem:[%s11293_s4 + $0x64] ss:$8 sps:$4 sm:$0xff]   ;;  %v757_v2 = vlaneseq }
  0x1f   : > { %709 = vmatprep.subr.bf16.mxu0 %v8505_v5  ;;  %v8510_v8 = vld [vmem:[%s11293_s4 + $0x60] ss:$8 sps:$4 sm:$0xff]   ;;  %v8511_v9 = vld [vmem:[%s11293_s4 + $0x54] ss:$8 sps:$4 sm:$0xff]   ;;  %v8513_v10 = vld [vmem:[%s11293_s4 + $0x50] ss:$8 sps:$4 sm:$0xff]  }
  0x20   : > { %710 = vmatpush1.bf16.msra.mxu0 %v8507_v6  ;;  %v8514_v11 = vld [vmem:[%s11293_s4 + $0x44] ss:$8 sps:$4 sm:$0xff]   ;;  %v8516_v12 = vld [vmem:[%s11293_s4 + $0x40] ss:$8 sps:$4 sm:$0xff]   ;;  %v8517_v13 = vld [vmem:[%s11293_s4 + $0x34] ss:$8 sps:$4 sm:$0xff]  }
  0x21   : > { %711 = vmatprep.subr.bf16.mxu0 %v8508_v7  ;;  %v8519_v14 = vld [vmem:[%s11293_s4 + $0x30] ss:$8 sps:$4 sm:$0xff]   ;;  %v8520_v15 = vld [vmem:[%s11293_s4 + $0x24] ss:$8 sps:$4 sm:$0xff]   ;;  %v8522_v16 = vld [vmem:[%s11293_s4 + $0x20] ss:$8 sps:$4 sm:$0xff]  }
  0x22   : > { %v8523_v17 = vld [vmem:[%s11293_s4 + $0x14] ss:$8 sps:$4 sm:$0xff]   ;;  %v8525_v18 = vld [vmem:[%s11293_s4 + $0x10] ss:$8 sps:$4 sm:$0xff]   ;;  %v496_v19 = vld [vmem:[#allocation2 + $0x8] sm:$0xff]  ;;  %v9185_v4 = vshrl.u32 %v757_v2, 7 }
  0x23   : > { %v8526_v20 = vld [vmem:[%s11293_s4 + $0x4] ss:$8 sps:$4 sm:$0xff]   ;;  %v9048_v21 = vpack.c.bf16 %v496_v19, %v496_v19  ;;  %v8528_v22 = vld [vmem:[%s11293_s4] ss:$8 sps:$4 sm:$0xff]   ;;  %v8529_v23 = vld [vmem:[%s11293_s4 + $0xf4] ss:$8 sps:$4 sm:$0xff]  }
  0x24   : > { %712 = vmatpush1.bf16.msra.mxu0 %v8510_v8  ;;  %v8531_v24 = vld [vmem:[%s11293_s4 + $0xf0] ss:$8 sps:$4 sm:$0xff]   ;;  %v8532_v25 = vld [vmem:[%s11293_s4 + $0xe4] ss:$8 sps:$4 sm:$0xff]   ;;  %v8534_v26 = vld [vmem:[%s11293_s4 + $0xe0] ss:$8 sps:$4 sm:$0xff]  }
  0x25   : > { %713 = vmatprep.subr.bf16.mxu0 %v8511_v9  ;;  %741 = vmatprep.mubr.bf16.mxu0 %v9048_v21  ;;  %v8535_v27 = vld [vmem:[%s11293_s4 + $0xd4] ss:$8 sps:$4 sm:$0xff]   ;;  %v8537_v28 = vld [vmem:[%s11293_s4 + $0xd0] ss:$8 sps:$4 sm:$0xff]   ;;  %v8538_v29 = vld [vmem:[%s11293_s4 + $0xc4] ss:$8 sps:$4 sm:$0xff]  }
  0x26   : > { %v8540_v30 = vld [vmem:[%s11293_s4 + $0xc0] ss:$8 sps:$4 sm:$0xff]   ;;  %v8541_v31 = vld [vmem:[%s11293_s4 + $0xb4] ss:$8 sps:$4 sm:$0xff]   ;;  %v8543_v32 = vld [vmem:[%s11293_s4 + $0xb0] ss:$8 sps:$4 sm:$0xff]  }
  0x27   : > { %v8544_v33 = vld [vmem:[%s11293_s4 + $0xa4] ss:$8 sps:$4 sm:$0xff]   ;;  %v8546_v34 = vld [vmem:[%s11293_s4 + $0xa0] ss:$8 sps:$4 sm:$0xff]   ;;  %v8547_v35 = vld [vmem:[%s11293_s4 + $0x94] ss:$8 sps:$4 sm:$0xff]  }
  0x28   : > { %714 = vmatpush1.bf16.msra.mxu0 %v8513_v10  ;;  %v8549_v36 = vld [vmem:[%s11293_s4 + $0x90] ss:$8 sps:$4 sm:$0xff]   ;;  %v8550_v37 = vld [vmem:[%s11293_s4 + $0x84] ss:$8 sps:$4 sm:$0xff]   ;;  %v8552_v38 = vld [vmem:[%s11293_s4 + $0x80] ss:$8 sps:$4 sm:$0xff]  }
  0x29   : > { %715 = vmatprep.subr.bf16.mxu0 %v8514_v11  ;;  %v495_v39 = vld [vmem:[#allocation2] sm:$0xff]  ;;  %v9109_v41 = vld [vmem:[%s11290_s1 + $0x8] sm:$0xff]  ;;  %v9121_v43 = vld [vmem:[%s11290_s1 + $0x18] sm:$0xff]  ;;  %v8888_v0 = vmov 1966171168   ;;  %v9192_v11 = vsub.s32 1, %v9185_v4 }
  0x2a   : > { %v9102_v40 = vpack.c.bf16 %v495_v39, %v495_v39  ;;  %842 = vmatprep.subr.mxu1 %v9109_v41  ;;  %v9115_v42 = vld [vmem:[%s11290_s1] sm:$0xff]  ;;  %v8553_v44 = vld [vmem:[%s11294_s5 + $0x70] ss:$8 sps:$4 sm:$0xff]   ;;  %v8555_v45 = vld [vmem:[%s11294_s5 + $0x74] ss:$8 sps:$4 sm:$0xff]   ;;  %v755_v1 = vunpack.c.l.s4 %v8888_v0  ;;  %vm1497_vm2 = vcmask 1041409  }
  0x2b   : > { %843 = vmatpush1.xpose.msra.mxu1 %v9115_v42  ;;  %v8558_v46 = vld [vmem:[%s11294_s5 + $0x64] ss:$8 sps:$4 sm:$0xff]   ;;  %v8556_v47 = vld [vmem:[%s11294_s5 + $0x60] ss:$8 sps:$4 sm:$0xff]   ;;  %v8561_v48 = vld [vmem:[%s11294_s5 + $0x54] ss:$8 sps:$4 sm:$0xff]  }
  0x2c   : > { %716 = vmatpush1.bf16.msra.mxu0 %v8516_v12  ;;  %922 = vmatprep.subr.mxu1 %v9121_v43  ;;  %v8559_v49 = vld [vmem:[%s11294_s5 + $0x50] ss:$8 sps:$4 sm:$0xff]   ;;  %v8564_v50 = vld [vmem:[%s11294_s5 + $0x44] ss:$8 sps:$4 sm:$0xff]   ;;  %v8562_v51 = vld [vmem:[%s11294_s5 + $0x40] ss:$8 sps:$4 sm:$0xff]   ;;  %v756_v3 = vunpack.c.0.s8 %v755_v1 }
  0x2d   : > { %717 = vmatprep.subr.bf16.mxu0 %v8517_v13  ;;  %v8567_v52 = vld [vmem:[%s11294_s5 + $0x34] ss:$8 sps:$4 sm:$0xff]   ;;  %v8565_v53 = vld [vmem:[%s11294_s5 + $0x30] ss:$8 sps:$4 sm:$0xff]   ;;  %v8570_v54 = vld [vmem:[%s11294_s5 + $0x24] ss:$8 sps:$4 sm:$0xff]  }
  0x2e   : > { %v8568_v55 = vld [vmem:[%s11294_s5 + $0x20] ss:$8 sps:$4 sm:$0xff]   ;;  %v8573_v56 = vld [vmem:[%s11294_s5 + $0x14] ss:$8 sps:$4 sm:$0xff]   ;;  %v8571_v57 = vld [vmem:[%s11294_s5 + $0x10] ss:$8 sps:$4 sm:$0xff]   ;;  %v9188_v6 = vsub.s32 %v756_v3, %v9185_v4 }
  0x2f   : > { %v8576_v58 = vld [vmem:[%s11294_s5 + $0x4] ss:$8 sps:$4 sm:$0xff]   ;;  %v8574_v59 = vld [vmem:[%s11294_s5] ss:$8 sps:$4 sm:$0xff]   ;;  %v8579_v60 = vld [vmem:[%s11294_s5 + $0xf4] ss:$8 sps:$4 sm:$0xff]  }
  0x30   : > { %718 = vmatpush1.bf16.msra.mxu0 %v8519_v14  ;;  %v8577_v61 = vld [vmem:[%s11294_s5 + $0xf0] ss:$8 sps:$4 sm:$0xff]   ;;  %v8582_v62 = vld [vmem:[%s11294_s5 + $0xe4] ss:$8 sps:$4 sm:$0xff]   ;;  %v8580_v63 = vld [vmem:[%s11294_s5 + $0xe0] ss:$8 sps:$4 sm:$0xff]  }
  0x31   : > { %719 = vmatprep.subr.bf16.mxu0 %v8520_v15  ;;  %v9195_v12 = vsub.s32 0, %v9185_v4  ;;  %v9204_v19 = vld [vmem:[%s11290_s1 + $0x10] sm:$0xff]  ;;  %v8592_v0 = vld [vmem:[%s11294_s5 + $0xa0] ss:$8 sps:$4 sm:$0xff]   ;;  %s1459_s24 = scalar_select %p465_p4, 1, 0 }
  0x32   : > { %v8597_v1 = vld [vmem:[%s11294_s5 + $0x94] ss:$8 sps:$4 sm:$0xff]   ;;  %v8595_v3 = vld [vmem:[%s11294_s5 + $0x90] ss:$8 sps:$4 sm:$0xff]   ;;  %vm1500_vm3 = vcmask 1042434   ;;  %vm1503_vm4 = vcmask 1043459  }
  0x33   : > { %vm1506_vm5 = vcmask 1044484   ;;  %vm1509_vm6 = vcmask 1045509   ;;  %vm1512_vm7 = vcmask 1046534   ;;  %vm1515_vm8 = vcmask 1047559   ;;  %p3779_p6 = scmp.gt.s32.totalorder %s8973_s30, 0  ;;  %p8488_p7 = scmp.eq.s32.totalorder %s8973_s30, 7 }
  0x34   : > { %720 = vmatpush1.bf16.msra.mxu0 %v8522_v16  ;;  %vm1518_vm9 = vcmask 64512   ;;  %s8891_s22 = smov [#allocation8]  }
  0x35   : > { %721 = vmatprep.subr.bf16.mxu0 %v8523_v17  ;;  %s3780_s15 = scalar_select %p3779_p6, 1, 0 }
  0x38   : > { %722 = vmatpush1.bf16.msra.mxu0 %v8525_v18 }
  0x39   : > { %723 = vmatprep.subr.bf16.mxu0 %v8526_v20 }
  0x3c   : > { %724 = vmatpush1.bf16.msra.mxu0 %v8528_v22 }
  0x3d   : > { %725 = vmatprep.subr.bf16.mxu0 %v8529_v23  ;;  %v9210_v23 = vld [vmem:[%s11290_s1 + $0x28] sm:$0xff] }
  0x40   : > { %726 = vmatpush2.bf16.msra.mxu0 %v8531_v24 }
  0x41   : > { %727 = vmatprep.subr.bf16.mxu0 %v8532_v25 }
  0x44   : > { %728 = vmatpush2.bf16.msra.mxu0 %v8534_v26  ;;  %v9218_v26 = vld [vmem:[%s11290_s1 + $0x20] sm:$0xff] }
  0x45   : > { %729 = vmatprep.subr.bf16.mxu0 %v8535_v27 }
  0x48   : > { %730 = vmatpush2.bf16.msra.mxu0 %v8537_v28 }
  0x49   : > { %731 = vmatprep.subr.bf16.mxu0 %v8538_v29  ;;  %v9225_v29 = vld [vmem:[%s11290_s1 + $0x38] sm:$0xff] }
  0x4c   : > { %732 = vmatpush2.bf16.msra.mxu0 %v8540_v30 }
  0x4d   : > { %733 = vmatprep.subr.bf16.mxu0 %v8541_v31 }
  0x50   : > { %734 = vmatpush2.bf16.msra.mxu0 %v8543_v32  ;;  %v9233_v32 = vld [vmem:[%s11290_s1 + $0x30] sm:$0xff] }
  0x51   : > { %735 = vmatprep.subr.bf16.mxu0 %v8544_v33 }
  0x54   : > { %736 = vmatpush2.bf16.msra.mxu0 %v8546_v34 }
  0x55   : > { %737 = vmatprep.subr.bf16.mxu0 %v8547_v35 }
  0x58   : > { %738 = vmatpush2.bf16.msra.mxu0 %v8549_v36  ;;  %v9240_v36 = vld [vmem:[%s11290_s1 + $0x48] sm:$0xff] }
  0x59   : > { %739 = vmatprep.subr.bf16.mxu0 %v8550_v37 }
  0x5c   : > { %740 = vmatpush2.bf16.msra.mxu0 %v8552_v38  ;;  %v9248_v38 = vld [vmem:[%s11290_s1 + $0x40] sm:$0xff] }
  0x5d   : > { %2373 = vmatprep.subr.bf16.mxu0 %v8555_v45  ;;  %v9255_v45 = vld [vmem:[%s11290_s1 + $0x58] sm:$0xff] }
  0x5f   : > { %742 = vmatmul.mubr.bf16.vlgmr.msra.gmra.mxu0 %v9102_v40 }
  0x60   : > { %2405 = vmatprep.mubr.bf16.mxu0 %v9048_v21  ;;  %2374 = vmatpush1.bf16.msra.mxu0 %v8553_v44 }
  0x61   : > { %2375 = vmatprep.subr.bf16.mxu0 %v8558_v46 }
  0x64   : > { %2376 = vmatpush1.bf16.msra.mxu0 %v8556_v47  ;;  %v9263_v47 = vld [vmem:[%s11290_s1 + $0x50] sm:$0xff] }
  0x65   : > { %2377 = vmatprep.subr.bf16.mxu0 %v8561_v48 }
  0x68   : > { %2378 = vmatpush1.bf16.msra.mxu0 %v8559_v49  ;;  %v9269_v49 = vld [vmem:[%s11290_s1 + $0x68] sm:$0xff] }
  0x69   : > { %2379 = vmatprep.subr.bf16.mxu0 %v8564_v50 }
  0x6c   : > { %2380 = vmatpush1.bf16.msra.mxu0 %v8562_v51 }
  0x6d   : > { %2381 = vmatprep.subr.bf16.mxu0 %v8567_v52  ;;  %v9277_v52 = vld [vmem:[%s11290_s1 + $0x60] sm:$0xff] }
  0x70   : > { %2382 = vmatpush1.bf16.msra.mxu0 %v8565_v53 }
  0x71   : > { %2383 = vmatprep.subr.bf16.mxu0 %v8570_v54  ;;  %v9283_v54 = vld [vmem:[%s11290_s1 + $0x78] sm:$0xff] }
  0x74   : > { %2384 = vmatpush1.bf16.msra.mxu0 %v8568_v55 }
  0x75   : > { %2385 = vmatprep.subr.bf16.mxu0 %v8573_v56 }
  0x78   : > { %2386 = vmatpush1.bf16.msra.mxu0 %v8571_v57  ;;  %v9291_v57 = vld [vmem:[%s11290_s1 + $0x70] sm:$0xff] }
  0x79   : > { %2387 = vmatprep.subr.bf16.mxu0 %v8576_v58 }
  0x7c   : > { %2388 = vmatpush1.bf16.msra.mxu0 %v8574_v59 }
  0x7d   : > { %2389 = vmatprep.subr.bf16.mxu0 %v8579_v60  ;;  %v8585_v60 = vld [vmem:[%s11294_s5 + $0xd4] ss:$8 sps:$4 sm:$0xff]  }
  0x80   : > { %2390 = vmatpush2.bf16.msra.mxu0 %v8577_v61  ;;  %v8583_v61 = vld [vmem:[%s11294_s5 + $0xd0] ss:$8 sps:$4 sm:$0xff]  }
  0x81   : > { %2391 = vmatprep.subr.bf16.mxu0 %v8582_v62  ;;  %v8588_v62 = vld [vmem:[%s11294_s5 + $0xc4] ss:$8 sps:$4 sm:$0xff]  }
  0x84   : > { %2392 = vmatpush2.bf16.msra.mxu0 %v8580_v63  ;;  %v8594_v63 = vld [vmem:[%s11294_s5 + $0xa4] ss:$8 sps:$4 sm:$0xff]  }
  0x85   : > { %2393 = vmatprep.subr.bf16.mxu0 %v8585_v60 }
  0x88   : > { %2394 = vmatpush2.bf16.msra.mxu0 %v8583_v61 }
  0x89   : > { %2395 = vmatprep.subr.bf16.mxu0 %v8588_v62 }
 0x11f   : > { %v743_v5 = vpop.f32.mrf.mxu0 }
 0x121   : > { %v745_v7 = vpop.f32.mrf.mxu0 }
 0x122   : > { %v752_v8 = vcombine.low %v743_v5, %v745_v7  ;;  %v753_v20 = vcombine.high %v743_v5, %v745_v7  ;;  %v8600_v5 = vld [vmem:[%s11294_s5 + $0x84] ss:$8 sps:$4 sm:$0xff]   ;;  %v8598_v7 = vld [vmem:[%s11294_s5 + $0x80] ss:$8 sps:$4 sm:$0xff]  }
 0x123   : > { %v747_v9 = vpop.f32.mrf.mxu0 }
 0x124   : > { %v760_v10 = vrot.slane %v752_v8, %v9188_v6  ;;  %v767_v27 = vrot.slane %v753_v20, %v9188_v6 }
 0x125   : > { %v748_v13 = vpop.f32.mrf.mxu0 }
 0x126   : > { %v768_v14 = vcombine.high %v760_v10, %v760_v10  ;;  %v776_v15 = vrot.slane %v760_v10, %v9188_v6  ;;  %v769_v33 = vcombine.high %v767_v27, %v767_v27  ;;  %v783_v34 = vrot.slane %v767_v27, %v9188_v6 }
 0x128   : > { %v790_v16 = vrot.slane %v768_v14, %v9188_v6  ;;  %v809_v17 = vrot.slane %v776_v15, %v9192_v11  ;;  %v805_v18 = vrot.slane %v776_v15, %v9195_v12  ;;  %v798_v24 = vcombine.high %v776_v15, %v776_v15 }
 0x129   : > { %v797_v39 = vrot.slane %v769_v33, %v9188_v6  ;;  %v1129_v44 = vrot.slane %v783_v34, %v9192_v11  ;;  %v1125_v46 = vrot.slane %v783_v34, %v9195_v12  ;;  %v799_v50 = vcombine.high %v783_v34, %v783_v34 }
 0x12a   : > { %876 = vmatprep.mubr.f32.mxu1 %v809_v17  ;;  %v889_v22 = vrot.slane %v790_v16, %v9192_v11  ;;  %v885_v25 = vrot.slane %v790_v16, %v9195_v12  ;;  %v969_v28 = vrot.slane %v798_v24, %v9192_v11  ;;  %v800_v30 = vcombine.high %v790_v16, %v790_v16  ;;  %v9338_v17 = vld [vmem:[#allocation4] sm:$0xff] }
 0x12b   : > { %877 = vmatmul.mubr.f32.vlgmr.msra.gmra.mxu1 %v805_v18  ;;  %v965_v31 = vrot.slane %v798_v24, %v9195_v12  ;;  %v1209_v48 = vrot.slane %v797_v39, %v9192_v11  ;;  %v1205_v51 = vrot.slane %v797_v39, %v9195_v12  ;;  %v1289_v53 = vrot.slane %v799_v50, %v9192_v11 }
 0x12c   : > { %923 = vmatpush1.xpose.msra.mxu1 %v9204_v19  ;;  %956 = vmatprep.mubr.f32.mxu1 %v889_v22  ;;  %v1049_v35 = vrot.slane %v800_v30, %v9192_v11  ;;  %v1045_v37 = vrot.slane %v800_v30, %v9195_v12  ;;  %v801_v55 = vcombine.high %v797_v39, %v797_v39  ;;  %v1460_v14 = vstv %s1459_s24  ;;  %s7821_s24 = sshll.u32 %s8891_s22, 4  ;;  %s7822_s24 = int_to_ptr.vmem [resolvable:$true] %s7821_s24 }
 0x12d   : > { %1002 = vmatprep.subr.mxu1 %v9210_v23  ;;  %v1285_v56 = vrot.slane %v799_v50, %v9195_v12  ;;  %vm1461_vm1 = vcmp.eq.s32.totalorder %v1460_v14, 1 }
 0x12e   : > { %v1369_v58 = vrot.slane %v801_v55, %v9192_v11  ;;  %v1365_v59 = vrot.slane %v801_v55, %v9195_v12  ;;  %v1462_v20 = vsel %vm1461_vm1, 1.0, %v9338_v17 }
 0x12f   : > { %957 = vmatmul.mubr.f32.vlgmr.msra.gmra.mxu1 %v885_v25  ;;  %8745 = vrcp.f32 %v1462_v20 }
 0x130   : > { %1003 = vmatpush1.xpose.msra.mxu1 %v9218_v26  ;;  %1036 = vmatprep.mubr.f32.mxu1 %v969_v28 }
 0x131   : > { %1082 = vmatprep.subr.mxu1 %v9225_v29 }
 0x133   : > { %1037 = vmatmul.mubr.f32.vlgmr.msra.gmra.mxu1 %v965_v31 }
 0x134   : > { %1083 = vmatpush1.xpose.msra.mxu1 %v9233_v32  ;;  %1116 = vmatprep.mubr.f32.mxu1 %v1049_v35 }
 0x135   : > { %1162 = vmatprep.subr.mxu1 %v9240_v36 }
 0x137   : > { %1117 = vmatmul.mubr.f32.vlgmr.msra.gmra.mxu1 %v1045_v37 }
 0x138   : > { %1163 = vmatpush1.xpose.msra.mxu1 %v9248_v38  ;;  %1196 = vmatprep.mubr.f32.mxu1 %v1129_v44 }
 0x139   : > { %1242 = vmatprep.subr.mxu1 %v9255_v45 }
 0x13b   : > { %1197 = vmatmul.mubr.f32.vlgmr.msra.gmra.mxu1 %v1125_v46 }
 0x13c   : > { %1243 = vmatpush1.xpose.msra.mxu1 %v9263_v47  ;;  %1276 = vmatprep.mubr.f32.mxu1 %v1209_v48 }
 0x13d   : > { %1322 = vmatprep.subr.mxu1 %v9269_v49 }
 0x13f   : > { %1277 = vmatmul.mubr.f32.vlgmr.msra.gmra.mxu1 %v1205_v51  ;;  %v8746_v51 = vpop.eup %8745 }
 0x140   : > { %1323 = vmatpush1.xpose.msra.mxu1 %v9277_v52  ;;  %1356 = vmatprep.mubr.f32.mxu1 %v1289_v53  ;;  %v1465_v55 = vrot.slane %v8746_v51, 1  ;;  %v1467_v60 = vrot.slane %v8746_v51, 3  ;;  %v1468_v62 = vrot.slane %v8746_v51, 4  ;;  %v1471_v20 = vrot.slane %v8746_v51, 7 }
 0x141   : > { %1402 = vmatprep.subr.mxu1 %v9283_v54 }
 0x143   : > { %1357 = vmatmul.mubr.f32.vlgmr.msra.gmra.mxu1 %v1285_v56 }
 0x144   : > { %1403 = vmatpush1.xpose.msra.mxu1 %v9291_v57  ;;  %1436 = vmatprep.mubr.f32.mxu1 %v1369_v58  ;;  %v1466_v58 = vrot.slane %v8746_v51, 2 }
 0x145   : > { %1580 = vmatprep.subr.mxu1 %v9109_v41  ;;  %v8586_v41 = vld [vmem:[%s11294_s5 + $0xc0] ss:$8 sps:$4 sm:$0xff]  }
 0x146   : > { %2396 = vmatpush2.bf16.msra.mxu0 %v8586_v41 }
 0x147   : > { %1437 = vmatmul.mubr.f32.vlgmr.msra.gmra.mxu1 %v1365_v59 }
 0x148   : > { %1581 = vmatpush1.msra.mxu1 %v9115_v42  ;;  %v8591_v42 = vld [vmem:[%s11294_s5 + $0xb4] ss:$8 sps:$4 sm:$0xff]  }
 0x149   : > { %1654 = vmatprep.subr.mxu1 %v9121_v43  ;;  %v8589_v43 = vld [vmem:[%s11294_s5 + $0xb0] ss:$8 sps:$4 sm:$0xff]   ;;  %2397 = vmatprep.subr.bf16.mxu0 %v8591_v42 }
 0x14a   : > { %2398 = vmatpush2.bf16.msra.mxu0 %v8589_v43  ;;  %v1469_v43 = vrot.slane %v8746_v51, 5 }
 0x14b   : > { %2399 = vmatprep.subr.bf16.mxu0 %v8594_v63 }
 0x14e   : > { %2400 = vmatpush2.bf16.msra.mxu0 %v8592_v0 }
 0x14f   : > { %2401 = vmatprep.subr.bf16.mxu0 %v8597_v1 }
 0x152   : > { %2402 = vmatpush2.bf16.msra.mxu0 %v8595_v3 }
 0x153   : > { %2403 = vmatprep.subr.bf16.mxu0 %v8600_v5 }
 0x156   : > { %2404 = vmatpush2.bf16.msra.mxu0 %v8598_v7  ;;  %v1470_v7 = vrot.slane %v8746_v51, 6 }
 0x159   : > { %2406 = vmatmul.mubr.bf16.vlgmr.msra.gmra.mxu0 %v9102_v40 }
 0x1eb   : > { %v878_v8 = vpop.f32.mrf.mxu1 }
 0x1ec   : > { %v1442_v33 = vmul.f32 1.442695, %v878_v8 }
 0x1ed   : > { %v880_v9 = vpop.f32.mrf.mxu1 }
 0x1ef   : > { %v958_v10 = vpop.f32.mrf.mxu1 }
 0x1f0   : > { %v1444_v24 = vmul.f32 1.442695, %v958_v10 }
 0x1f1   : > { %v960_v13 = vpop.f32.mrf.mxu1 }
 0x1f2   : > { %8747 = vpow2.f32 %v1444_v24 }
 0x1f3   : > { %v1038_v15 = vpop.f32.mrf.mxu1 }
 0x1f4   : > { %v1446_v25 = vmul.f32 1.442695, %v1038_v15 }
 0x1f5   : > { %v1040_v16 = vpop.f32.mrf.mxu1 }
 0x1f6   : > { %8749 = vpow2.f32 %v1446_v25 }
 0x1f7   : > { %v1118_v18 = vpop.f32.mrf.mxu1 }
 0x1f8   : > { %v1448_v28 = vmul.f32 1.442695, %v1118_v18 }
 0x1f9   : > { %v1120_v22 = vpop.f32.mrf.mxu1 }
 0x1fa   : > { %8751 = vpow2.f32 %v1448_v28 }
 0x1fb   : > { %v1198_v27 = vpop.f32.mrf.mxu1 }
 0x1fc   : > { %v1450_v30 = vmul.f32 1.442695, %v1198_v27 }
 0x1fd   : > { %v1200_v31 = vpop.f32.mrf.mxu1 }
 0x1fe   : > { %8753 = vpow2.f32 %v1450_v30 }
 0x1ff   : > { %v1278_v34 = vpop.f32.mrf.mxu1  ;;  %v8748_v56 = vpop.eup %8747 }
 0x200   : > { %v1452_v35 = vmul.f32 1.442695, %v1278_v34  ;;  %v9341_v42 = vmul.f32 %v8748_v56, %v1465_v55  ;;  %v2148_v3 = vrot.slane %v8748_v56, 7 }
 0x201   : > { %v1280_v37 = vpop.f32.mrf.mxu1 }
 0x202   : > { %8755 = vpow2.f32 %v1452_v35  ;;  %v1496_v10 = vrot.slane %v9341_v42, 7 }
 0x203   : > { %8757 = vpow2.f32 %v1442_v33  ;;  %v1358_v39 = vpop.f32.mrf.mxu1  ;;  %v8750_v59 = vpop.eup %8749 }
 0x204   : > { %v1454_v44 = vmul.f32 1.442695, %v1358_v39  ;;  %v9343_v0 = vmul.f32 %v8750_v59, %v1466_v58  ;;  %v2150_v8 = vrot.slane %v8750_v59, 6 }
 0x205   : > { %v1360_v46 = vpop.f32.mrf.mxu1 }
 0x206   : > { %8759 = vpow2.f32 %v1454_v44  ;;  %v1499_v22 = vrot.slane %v9343_v0, 6 }
 0x207   : > { %v1438_v48 = vpop.f32.mrf.mxu1  ;;  %v8752_v61 = vpop.eup %8751 }
 0x208   : > { %v1456_v50 = vmul.f32 1.442695, %v1438_v48  ;;  %v9345_v5 = vmul.f32 %v8752_v61, %v1467_v60  ;;  %v2152_v13 = vrot.slane %v8752_v61, 5 }
 0x209   : > { %v1440_v53 = vpop.f32.mrf.mxu1 }
 0x20a   : > { %8761 = vpow2.f32 %v1456_v50  ;;  %v1502_v28 = vrot.slane %v9345_v5, 5 }
 0x20b   : > { %v8754_v41 = vpop.eup %8753 }
 0x20c   : > { %v9347_v9 = vmul.f32 %v8754_v41, %v1468_v62  ;;  %v2154_v18 = vrot.slane %v8754_v41, 4 }
 0x20e   : > { %v1505_v33 = vrot.slane %v9347_v9, 4 }
 0x20f   : > { %v8756_v63 = vpop.eup %8755 }
 0x210   : > { %v8758_v1 = vpop.eup %8757  ;;  %v9350_v14 = vmul.f32 %v8756_v63, %v1469_v43  ;;  %v2156_v25 = vrot.slane %v8756_v63, 3 }
 0x211   : > { %v9352_v16 = vmul.f32 %v8758_v1, %v8746_v51  ;;  %v2149_v24 = vsel %vm1497_vm2, %v2148_v3, %v8758_v1  ;;  %v8889_v1 = vmov 0.0  }
 0x212   : > { %v2151_v30 = vsel %vm1500_vm3, %v2150_v8, %v2149_v24  ;;  %v1508_v37 = vrot.slane %v9350_v14, 3  ;;  %1614 = vmatprep.mubr.f32.mxu1 %v8889_v1 }
 0x213   : > { %v8760_v15 = vpop.eup %8759  ;;  %v2153_v34 = vsel %vm1503_vm4, %v2152_v13, %v2151_v30  ;;  %v1498_v35 = vsel %vm1497_vm2, %v1496_v10, %v9352_v16  ;;  %v3863_v30 = vld [vmem:[%s11295_s6 + $0x140] sm:$0xff] }
 0x214   : > { %v9356_v27 = vmul.f32 %v8760_v15, %v1470_v7  ;;  %v2158_v31 = vrot.slane %v8760_v15, 2  ;;  %v2155_v44 = vsel %vm1506_vm5, %v2154_v18, %v2153_v34  ;;  %v1501_v46 = vsel %vm1500_vm3, %v1499_v22, %v1498_v35  ;;  %v3879_v15 = vld [vmem:[%s11295_s6 + $0x1c0] sm:$0xff] }
 0x215   : > { %v1504_v53 = vsel %vm1503_vm4, %v1502_v28, %v1501_v46  ;;  %v2157_v55 = vsel %vm1509_vm6, %v2156_v25, %v2155_v44  ;;  %v3883_v18 = vld [vmem:[%s11295_s6 + $0x1e0] sm:$0xff] }
 0x216   : > { %v1511_v48 = vrot.slane %v9356_v27, 2  ;;  %v1507_v56 = vsel %vm1506_vm5, %v1505_v33, %v1504_v53  ;;  %v2159_v58 = vsel %vm1512_vm7, %v2158_v31, %v2157_v55  ;;  %v8042_v22 = vcombine.low %v3879_v15, %v3883_v18  ;;  %v3875_v25 = vld [vmem:[%s11295_s6 + $0x1a0] sm:$0xff] }
 0x217   : > { %v8762_v39 = vpop.eup %8761  ;;  %v1510_v59 = vsel %vm1509_vm6, %v1508_v37, %v1507_v56  ;;  %v8043_v24 = vcombine.high %v3879_v15, %v3883_v18  ;;  %v3867_v31 = vld [vmem:[%s11295_s6 + $0x160] sm:$0xff] }
 0x218   : > { %v2160_v50 = vrot.slane %v8762_v39, 1  ;;  %v9368_v51 = vmul.f32 %v8762_v39, %v1471_v20  ;;  %v1513_v62 = vsel %vm1512_vm7, %v1511_v48, %v1510_v59  ;;  %v3871_v20 = vld [vmem:[%s11295_s6 + $0x180] sm:$0xff]  ;;  %v8027_v34 = vcombine.high %v3863_v30, %v3867_v31 }
 0x219   : > { %v9383_v3 = vpop.f32.mrf.mxu0  ;;  %v8035_v28 = vcombine.high %v3871_v20, %v3875_v25  ;;  %4655 = vmatprep.subr.bf16.mxu0 %v8043_v24  ;;  %v8034_v33 = vcombine.low %v3871_v20, %v3875_v25  ;;  %v3855_v35 = vld [vmem:[%s11295_s6 + $0x100] sm:$0xff]  ;;  %v8026_v39 = vcombine.low %v3863_v30, %v3867_v31  ;;  %v9488_v20 = vld [vmem:[#allocation5 + $0x20] sm:$0xff]  ;;  %v9500_v31 = vld [vmem:[#allocation5 + $0x70] sm:$0xff] }
 0x21a   : > { %v1514_v60 = vrot.slane %v9368_v51, 1  ;;  %v2161_v61 = vsel %vm1515_vm8, %v2160_v50, %v2159_v58  ;;  %4656 = vmatpush1.bf16.msra.mxu0 %v8042_v22  ;;  %v3859_v37 = vld [vmem:[%s11295_s6 + $0x120] sm:$0xff] }
 0x21b   : > { %v2163_v41 = vadd.f32 %v2161_v61, %v9338_v17  ;;  %v9385_v7 = vpop.f32.mrf.mxu0  ;;  %4657 = vmatprep.subr.bf16.mxu0 %v8035_v28  ;;  %v8019_v44 = vcombine.high %v3855_v35, %v3859_v37  ;;  %v3847_v46 = vld [vmem:[%s11295_s6 + $0xc0] sm:$0xff]  ;;  %v8018_v50 = vcombine.low %v3855_v35, %v3859_v37  ;;  %v9509_v35 = vld [vmem:[#allocation5 + $0x10] sm:$0xff] }
 0x21c   : > { %v1516_v43 = vsel %vm1515_vm8, %v1514_v60, %v1513_v62  ;;  %v2416_v8 = vcombine.low %v9383_v3, %v9385_v7  ;;  %v2417_v17 = vcombine.high %v9383_v3, %v9385_v7  ;;  %v3851_v48 = vld [vmem:[%s11295_s6 + $0xe0] sm:$0xff]  ;;  %v9504_v7 = vld [vmem:[#allocation5 + $0x30] sm:$0xff] }
 0x21d   : > { %v1519_v63 = vsel %vm1518_vm9, %v1516_v43, 0.0  ;;  %2164 = vst.msk [vmem:[#allocation4] sm:$0xff] %vm1518_vm9, %v2163_v41  ;;  %v2411_v10 = vpop.f32.mrf.mxu0  ;;  %v8011_v53 = vcombine.high %v3847_v46, %v3851_v48  ;;  %v3839_v55 = vld [vmem:[%s11295_s6 + $0x80] sm:$0xff]  ;;  %v8010_v58 = vcombine.low %v3847_v46, %v3851_v48  ;;  %v9518_v48 = vld [vmem:[#allocation5 + $0x68] sm:$0xff] }
 0x21e   : > { %1520 = vadd.xlane.f32.xlu0 %v1519_v63  ;;  %4658 = vmatpush1.bf16.msra.mxu0 %v8034_v33  ;;  %v3843_v56 = vld [vmem:[%s11295_s6 + $0xa0] sm:$0xff]  ;;  %v2431_v22 = vrot.slane %v2417_v17, %v9188_v6 }
 0x21f   : > { %v2412_v13 = vpop.f32.mrf.mxu0  ;;  %4659 = vmatprep.subr.bf16.mxu0 %v8027_v34  ;;  %v8003_v59 = vcombine.high %v3839_v55, %v3843_v56  ;;  %v8002_v60 = vcombine.low %v3839_v55, %v3843_v56  ;;  %v9495_v25 = vld [vmem:[#allocation5 + $0x78] sm:$0xff] }
 0x220   : > { %v2433_v33 = vcombine.high %v2431_v22, %v2431_v22  ;;  %v2447_v34 = vrot.slane %v2431_v22, %v9188_v6  ;;  %v3911_v22 = vld [vmem:[%s11295_s6 + $0x2c0] sm:$0xff] }
 0x222   : > { %4660 = vmatpush1.bf16.msra.mxu0 %v8026_v39  ;;  %v2461_v37 = vrot.slane %v2433_v33, %v9188_v6  ;;  %v2793_v39 = vrot.slane %v2447_v34, %v9192_v11  ;;  %v2789_v46 = vrot.slane %v2447_v34, %v9195_v12  ;;  %v2463_v55 = vcombine.high %v2447_v34, %v2447_v34  ;;  %v3903_v33 = vld [vmem:[%s11295_s6 + $0x280] sm:$0xff] }
 0x223   : > { %4661 = vmatprep.subr.bf16.mxu0 %v8019_v44  ;;  %v9513_v44 = vld [vmem:[#allocation5 + $0x28] sm:$0xff]  ;;  %v3907_v34 = vld [vmem:[%s11295_s6 + $0x2a0] sm:$0xff] }
 0x224   : > { %v2869_v56 = vrot.slane %v2461_v37, %v9195_v12 }
 0x226   : > { %4662 = vmatpush1.bf16.msra.mxu0 %v8018_v50  ;;  %v2873_v50 = vrot.slane %v2461_v37, %v9192_v11 }
 0x227   : > { %4663 = vmatprep.subr.bf16.mxu0 %v8011_v53  ;;  %v9521_v53 = vld [vmem:[#allocation5] sm:$0xff] }
 0x22a   : > { %4664 = vmatpush1.bf16.msra.mxu0 %v8010_v58  ;;  %v9526_v58 = vld [vmem:[#allocation5 + $0x60] sm:$0xff] }
 0x22b   : > { %4665 = vmatprep.subr.bf16.mxu0 %v8003_v59  ;;  %v2953_v59 = vrot.slane %v2463_v55, %v9192_v11 }
 0x22e   : > { %4666 = vmatpush1.bf16.msra.mxu0 %v8002_v60  ;;  %v9529_v60 = vld [vmem:[#allocation5 + $0x50] sm:$0xff] }
 0x2a7   : > { %v1521_v61 = vpop.xlane.xlu0 %1520 }
 0x2a8   : > { %8763 = vrcp.f32 %v1521_v61  ;;  %v2465_v61 = vcombine.high %v2461_v37, %v2461_v37  ;;  %v3895_v37 = vld [vmem:[%s11295_s6 + $0x240] sm:$0xff] }
 0x2b5   : > { %v8764_v62 = vpop.eup %8763 }
 0x2b6   : > { %v1539_v41 = vmul.f32 %v8764_v62, %v9352_v16  ;;  %v1524_v43 = vrot.slane %v8764_v62, 1  ;;  %v1525_v10 = vrot.slane %v8764_v62, 2  ;;  %v1526_v13 = vrot.slane %v8764_v62, 3 }
 0x2b8   : > { %7938 = vmatmul.mubr.msk.f32.vlgmr.msra.gmra.mxu1 %vm1518_vm9, %v1539_v41  ;;  %v1540_v63 = vmul.f32 %v1524_v43, %v9341_v42  ;;  %v1541_v16 = vmul.f32 %v1525_v10, %v9343_v0  ;;  %v1530_v42 = vrot.slane %v8764_v62, 7  ;;  %v9534_v41 = vld [vmem:[#allocation5 + $0x18] sm:$0xff]  ;;  %v3033_v43 = vrot.slane %v2465_v61, %v9192_v11 }
 0x2b9   : > { %1655 = vmatpush1.msra.mxu1 %v9204_v19  ;;  %1688 = vmatprep.mubr.f32.mxu1 %v8889_v1  ;;  %v1542_v19 = vmul.f32 %v1526_v13, %v9345_v5  ;;  %v9463_v5 = vld [vmem:[#allocation5 + $0x8] sm:$0xff]  ;;  %v3831_v10 = vld [vmem:[%s11295_s6 + $0x40] sm:$0xff] }
 0x2ba   : > { %1728 = vmatprep.subr.mxu1 %v9210_v23  ;;  %v1527_v23 = vrot.slane %v8764_v62, 4 }
 0x2bc   : > { %7939 = vmatmul.mubr.msk.f32.vlgmr.msra.gmra.mxu1 %vm1518_vm9, %v1540_v63  ;;  %v3029_v63 = vrot.slane %v2465_v61, %v9195_v12 }
 0x2bd   : > { %1729 = vmatpush1.msra.mxu1 %v9218_v26  ;;  %1762 = vmatprep.mubr.f32.mxu1 %v8889_v1  ;;  %v1543_v26 = vmul.f32 %v1527_v23, %v9347_v9  ;;  %v9471_v9 = vld [vmem:[#allocation5 + $0x48] sm:$0xff]  ;;  %v3823_v23 = vld [vmem:[%s11295_s6] sm:$0xff] }
 0x2be   : > { %1802 = vmatprep.subr.mxu1 %v9225_v29  ;;  %v1528_v29 = vrot.slane %v8764_v62, 5 }
 0x2c0   : > { %7940 = vmatmul.mubr.msk.f32.vlgmr.msra.gmra.mxu1 %vm1518_vm9, %v1541_v16  ;;  %v3835_v16 = vld [vmem:[%s11295_s6 + $0x60] sm:$0xff] }
 0x2c1   : > { %1803 = vmatpush1.msra.mxu1 %v9233_v32  ;;  %1836 = vmatprep.mubr.f32.mxu1 %v8889_v1  ;;  %v2424_v32 = vrot.slane %v2416_v8, %v9188_v6  ;;  %v7995_v13 = vcombine.high %v3831_v10, %v3835_v16 }
 0x2c2   : > { %1876 = vmatprep.subr.mxu1 %v9240_v36  ;;  %v1544_v36 = vmul.f32 %v1528_v29, %v9350_v14  ;;  %v9474_v14 = vld [vmem:[#allocation5 + $0x58] sm:$0xff] }
 0x2c3   : > { %v2432_v0 = vcombine.high %v2424_v32, %v2424_v32  ;;  %4667 = vmatprep.subr.bf16.mxu0 %v7995_v13 }
 0x2c4   : > { %7941 = vmatmul.mubr.msk.f32.vlgmr.msra.gmra.mxu1 %vm1518_vm9, %v1542_v19  ;;  %v7994_v19 = vcombine.low %v3831_v10, %v3835_v16 }
 0x2c5   : > { %1877 = vmatpush1.msra.mxu1 %v9248_v38  ;;  %1910 = vmatprep.mubr.f32.mxu1 %v8889_v1  ;;  %v1529_v38 = vrot.slane %v8764_v62, 6  ;;  %v2949_v62 = vrot.slane %v2463_v55, %v9195_v12  ;;  %v3887_v55 = vld [vmem:[%s11295_s6 + $0x200] sm:$0xff] }
 0x2c6   : > { %1950 = vmatprep.subr.mxu1 %v9255_v45  ;;  %v2440_v45 = vrot.slane %v2424_v32, %v9188_v6  ;;  %4668 = vmatpush1.bf16.msra.mxu0 %v7994_v19 }
 0x2c8   : > { %7942 = vmatmul.mubr.msk.f32.vlgmr.msra.gmra.mxu1 %vm1518_vm9, %v1543_v26  ;;  %v2462_v15 = vcombine.high %v2440_v45, %v2440_v45  ;;  %v3827_v26 = vld [vmem:[%s11295_s6 + $0x20] sm:$0xff] }
 0x2c9   : > { %1951 = vmatpush1.msra.mxu1 %v9263_v47  ;;  %1984 = vmatprep.mubr.f32.mxu1 %v8889_v1  ;;  %v1545_v47 = vmul.f32 %v1529_v38, %v9356_v27  ;;  %v9480_v27 = vld [vmem:[#allocation5 + $0x40] sm:$0xff]  ;;  %v7987_v29 = vcombine.high %v3823_v23, %v3827_v26  ;;  %v7986_v32 = vcombine.low %v3823_v23, %v3827_v26  ;;  %v3947_v38 = vld [vmem:[%s11295_s6 + $0x3e0] sm:$0xff] }
 0x2ca   : > { %2024 = vmatprep.subr.mxu1 %v9269_v49  ;;  %v2473_v49 = vrot.slane %v2440_v45, %v9192_v11  ;;  %v2633_v24 = vrot.slane %v2462_v15, %v9192_v11  ;;  %v2629_v30 = vrot.slane %v2462_v15, %v9195_v12 }
 0x2cb   : > { %4669 = vmatprep.subr.bf16.mxu0 %v7987_v29 }
 0x2cc   : > { %7943 = vmatmul.mubr.msk.f32.vlgmr.msra.gmra.mxu1 %vm1518_vm9, %v1544_v36  ;;  %4670 = vmatpush1.bf16.msra.mxu0 %v7986_v32  ;;  %v3943_v36 = vld [vmem:[%s11295_s6 + $0x3c0] sm:$0xff] }
 0x2cd   : > { %2025 = vmatpush1.msra.mxu1 %v9277_v52  ;;  %2058 = vmatprep.mubr.f32.mxu1 %v8889_v1  ;;  %v1546_v52 = vmul.f32 %v1530_v42, %v9368_v51  ;;  %v9483_v51 = vld [vmem:[#allocation5 + $0x38] sm:$0xff] }
 0x2ce   : > { %2098 = vmatprep.subr.mxu1 %v9283_v54  ;;  %v2454_v54 = vrot.slane %v2432_v0, %v9188_v6  ;;  %v3935_v42 = vld [vmem:[%s11295_s6 + $0x380] sm:$0xff] }
 0x2cf   : > { %v3939_v0 = vld [vmem:[%s11295_s6 + $0x3a0] sm:$0xff] }
 0x2d0   : > { %7944 = vmatmul.mubr.msk.f32.vlgmr.msra.gmra.mxu1 %vm1518_vm9, %v1545_v47  ;;  %v2553_v8 = vrot.slane %v2454_v54, %v9192_v11  ;;  %v2549_v18 = vrot.slane %v2454_v54, %v9195_v12  ;;  %v2464_v28 = vcombine.high %v2454_v54, %v2454_v54  ;;  %v8106_v47 = vcombine.low %v3943_v36, %v3947_v38 }
 0x2d1   : > { %2099 = vmatpush1.msra.mxu1 %v9291_v57  ;;  %2132 = vmatprep.mubr.f32.mxu1 %v8889_v1  ;;  %v2469_v57 = vrot.slane %v2440_v45, %v9195_v12  ;;  %v8107_v45 = vcombine.high %v3943_v36, %v3947_v38 }
 0x2d2   : > { %2506 = vmatprep.subr.mxu1 %v9463_v5  ;;  %v2713_v3 = vrot.slane %v2464_v28, %v9192_v11  ;;  %v2709_v17 = vrot.slane %v2464_v28, %v9195_v12 }
 0x2d3   : > { %4671 = vmatprep.subr.bf16.mxu0 %v8107_v45 }
 0x2d4   : > { %7945 = vmatmul.mubr.msk.f32.vlgmr.msra.gmra.mxu1 %vm1518_vm9, %v1546_v52  ;;  %4672 = vmatpush2.bf16.msra.mxu0 %v8106_v47  ;;  %v3927_v52 = vld [vmem:[%s11295_s6 + $0x340] sm:$0xff] }
 0x2d5   : > { %2507 = vmatpush1.xpose.msra.mxu1 %v9471_v9  ;;  %2540 = vmatprep.mubr.f32.mxu1 %v2473_v49  ;;  %v8098_v49 = vcombine.low %v3935_v42, %v3939_v0 }
 0x2d6   : > { %2586 = vmatprep.subr.mxu1 %v9474_v14 }
 0x2d8   : > { %2541 = vmatmul.mubr.f32.vlgmr.msra.gmra.mxu1 %v2469_v57  ;;  %v3919_v57 = vld [vmem:[%s11295_s6 + $0x300] sm:$0xff] }
 0x2d9   : > { %2587 = vmatpush1.xpose.msra.mxu1 %v9480_v27  ;;  %2620 = vmatprep.mubr.f32.mxu1 %v2553_v8  ;;  %v3923_v8 = vld [vmem:[%s11295_s6 + $0x320] sm:$0xff] }
 0x2da   : > { %2666 = vmatprep.subr.mxu1 %v9483_v51  ;;  %v8083_v15 = vcombine.high %v3919_v57, %v3923_v8 }
 0x2dc   : > { %2621 = vmatmul.mubr.f32.vlgmr.msra.gmra.mxu1 %v2549_v18  ;;  %v8082_v18 = vcombine.low %v3919_v57, %v3923_v8 }
 0x2dd   : > { %2667 = vmatpush1.xpose.msra.mxu1 %v9488_v20  ;;  %2700 = vmatprep.mubr.f32.mxu1 %v2633_v24  ;;  %v3915_v24 = vld [vmem:[%s11295_s6 + $0x2e0] sm:$0xff] }
 0x2de   : > { %2746 = vmatprep.subr.mxu1 %v9495_v25  ;;  %v8075_v28 = vcombine.high %v3911_v22, %v3915_v24 }
 0x2e0   : > { %2701 = vmatmul.mubr.f32.vlgmr.msra.gmra.mxu1 %v2629_v30  ;;  %v8074_v30 = vcombine.low %v3911_v22, %v3915_v24 }
 0x2e1   : > { %2747 = vmatpush1.xpose.msra.mxu1 %v9500_v31  ;;  %2780 = vmatprep.mubr.f32.mxu1 %v2713_v3  ;;  %v8067_v3 = vcombine.high %v3903_v33, %v3907_v34 }
 0x2e2   : > { %2826 = vmatprep.subr.mxu1 %v9504_v7 }
 0x2e4   : > { %2781 = vmatmul.mubr.f32.vlgmr.msra.gmra.mxu1 %v2709_v17  ;;  %v8066_v17 = vcombine.low %v3903_v33, %v3907_v34 }
 0x2e5   : > { %2827 = vmatpush1.xpose.msra.mxu1 %v9509_v35  ;;  %2860 = vmatprep.mubr.f32.mxu1 %v2793_v39  ;;  %v3899_v39 = vld [vmem:[%s11295_s6 + $0x260] sm:$0xff] }
 0x2e6   : > { %2906 = vmatprep.subr.mxu1 %v9513_v44 }
 0x2e8   : > { %2861 = vmatmul.mubr.f32.vlgmr.msra.gmra.mxu1 %v2789_v46  ;;  %v8059_v46 = vcombine.high %v3895_v37, %v3899_v39 }
 0x2e9   : > { %2907 = vmatpush1.xpose.msra.mxu1 %v9518_v48  ;;  %2940 = vmatprep.mubr.f32.mxu1 %v2873_v50  ;;  %v8058_v50 = vcombine.low %v3895_v37, %v3899_v39 }
 0x2ea   : > { %2986 = vmatprep.subr.mxu1 %v9521_v53 }
 0x2ec   : > { %2941 = vmatmul.mubr.f32.vlgmr.msra.gmra.mxu1 %v2869_v56  ;;  %v3891_v56 = vld [vmem:[%s11295_s6 + $0x220] sm:$0xff] }
 0x2ed   : > { %2987 = vmatpush1.xpose.msra.mxu1 %v9526_v58  ;;  %3020 = vmatprep.mubr.f32.mxu1 %v2953_v59  ;;  %v8051_v59 = vcombine.high %v3887_v55, %v3891_v56  ;;  %v8050_v61 = vcombine.low %v3887_v55, %v3891_v56 }
 0x2ee   : > { %3066 = vmatprep.subr.mxu1 %v9529_v60 }
 0x2f0   : > { %3021 = vmatmul.mubr.f32.vlgmr.msra.gmra.mxu1 %v2949_v62  ;;  %v9606_v62 = vld [vmem:[%s11295_s6 + $0x1d0] sm:$0xff] }
 0x2f1   : > { %3067 = vmatpush1.xpose.msra.mxu1 %v9534_v41  ;;  %3100 = vmatprep.mubr.f32.mxu1 %v3033_v43  ;;  %v9611_v43 = vld [vmem:[%s11295_s6 + $0x1f0] sm:$0xff] }
 0x2f2   : > { %3227 = vmatprep.subr.mxu1 %v9463_v5  ;;  %v8099_v5 = vcombine.high %v3935_v42, %v3939_v0  ;;  %v8046_v10 = vcombine.low %v9606_v62, %v9611_v43 }
 0x2f4   : > { %3101 = vmatmul.mubr.f32.vlgmr.msra.gmra.mxu1 %v3029_v63  ;;  %4673 = vmatprep.subr.bf16.mxu0 %v8099_v5  ;;  %v8047_v63 = vcombine.high %v9606_v62, %v9611_v43 }
 0x2f5   : > { %3228 = vmatpush1.msra.mxu1 %v9471_v9  ;;  %3261 = vmatprep.mubr.f32.mxu1 %v8889_v1  ;;  %v3931_v9 = vld [vmem:[%s11295_s6 + $0x360] sm:$0xff] }
 0x2f6   : > { %3300 = vmatprep.subr.mxu1 %v9474_v14  ;;  %4674 = vmatpush2.bf16.msra.mxu0 %v8098_v49  ;;  %v8091_v54 = vcombine.high %v3927_v52, %v3931_v9  ;;  %v8090_v14 = vcombine.low %v3927_v52, %v3931_v9 }
 0x2f8   : > { %4675 = vmatprep.subr.bf16.mxu0 %v8091_v54 }
 0x2fa   : > { %4676 = vmatpush2.bf16.msra.mxu0 %v8090_v14 }
 0x2fb   : > { %4677 = vmatprep.subr.bf16.mxu0 %v8083_v15 }
 0x2fe   : > { %4678 = vmatpush2.bf16.msra.mxu0 %v8082_v18 }
 0x2ff   : > { %4679 = vmatprep.subr.bf16.mxu0 %v8075_v28 }
 0x302   : > { %4680 = vmatpush2.bf16.msra.mxu0 %v8074_v30 }
 0x303   : > { %4681 = vmatprep.subr.bf16.mxu0 %v8067_v3 }
 0x306   : > { %4682 = vmatpush2.bf16.msra.mxu0 %v8066_v17 }
 0x307   : > { %4683 = vmatprep.subr.bf16.mxu0 %v8059_v46 }
 0x30a   : > { %4684 = vmatpush2.bf16.msra.mxu0 %v8058_v50 }
 0x30b   : > { %4685 = vmatprep.subr.bf16.mxu0 %v8051_v59 }
 0x30e   : > { %4686 = vmatpush2.bf16.msra.mxu0 %v8050_v61 }
 0x30f   : > { %4737 = vmatprep.subr.bf16.mxu0 %v8047_v63 }
 0x378   : > { %v1616_v16 = vpop.f32.mrf.mxu1 }
 0x379   : > { %v3807_v54 = vpack.c.bf16 %v1616_v16, %v1616_v16 }
 0x37a   : > { %v1618_v13 = vpop.f32.mrf.mxu1 }
 0x37b   : > { %v3808_v30 = vpack.c.bf16 %v1618_v13, %v1618_v13  ;;  %v3967_v37 = vunpack.c.l.b16 %v3807_v54 }
 0x37c   : > { %v1690_v19 = vpop.f32.mrf.mxu1 }
 0x37d   : > { %v3809_v38 = vpack.c.bf16 %v1690_v19, %v1690_v19 }
 0x37e   : > { %v1692_v23 = vpop.f32.mrf.mxu1 }
 0x37f   : > { %v3810_v47 = vpack.c.bf16 %v1692_v23, %v1692_v23  ;;  %v3969_v5 = vunpack.c.l.b16 %v3809_v38 }
 0x380   : > { %v1764_v26 = vpop.f32.mrf.mxu1 }
 0x381   : > { %v3811_v42 = vpack.c.bf16 %v1764_v26, %v1764_v26  ;;  %v3970_v8 = vunpack.c.l.b16 %v3810_v47  ;;  %v3983_v33 = vrot.slane %v3969_v5, 7  ;;  %v3968_v26 = vunpack.c.l.b16 %v3808_v30 }
 0x382   : > { %v1766_v29 = vpop.f32.mrf.mxu1 }
 0x383   : > { %v3812_v49 = vpack.c.bf16 %v1766_v29, %v1766_v29  ;;  %v3971_v15 = vunpack.c.l.b16 %v3811_v42  ;;  %v3997_v55 = vrot.slane %v3970_v8, 7  ;;  %v3984_v29 = vsel %vm1497_vm2, %v3983_v33, %v3967_v37 }
 0x384   : > { %v1838_v32 = vpop.f32.mrf.mxu1 }
 0x385   : > { %v3813_v52 = vpack.c.bf16 %v1838_v32, %v1838_v32  ;;  %v3972_v34 = vunpack.c.l.b16 %v3812_v49  ;;  %v3985_v56 = vrot.slane %v3971_v15, 6 }
 0x386   : > { %v1840_v36 = vpop.f32.mrf.mxu1 }
 0x387   : > { %v3814_v14 = vpack.c.bf16 %v1840_v36, %v1840_v36  ;;  %v3973_v3 = vunpack.c.l.b16 %v3813_v52  ;;  %v3999_v13 = vrot.slane %v3972_v34, 6  ;;  %v3986_v5 = vsel %vm1500_vm3, %v3985_v56, %v3984_v29 }
 0x388   : > { %v1912_v45 = vpop.f32.mrf.mxu1 }
 0x389   : > { %v3815_v57 = vpack.c.bf16 %v1912_v45, %v1912_v45  ;;  %v3974_v39 = vunpack.c.l.b16 %v3814_v14  ;;  %v3987_v32 = vrot.slane %v3973_v3, 5 }
 0x38a   : > { %v1914_v0 = vpop.f32.mrf.mxu1 }
 0x38b   : > { %v3816_v18 = vpack.c.bf16 %v1914_v0, %v1914_v0  ;;  %v3975_v46 = vunpack.c.l.b16 %v3815_v57  ;;  %v4001_v38 = vrot.slane %v3974_v39, 5  ;;  %v3998_v0 = vsel %vm1497_vm2, %v3997_v55, %v3968_v26 }
 0x38c   : > { %v1986_v9 = vpop.f32.mrf.mxu1  ;;  %v4000_v15 = vsel %vm1500_vm3, %v3999_v13, %v3998_v0  ;;  %v3857_v0 = vld [vmem:[%s11295_s6 + $0x110] sm:$0xff] }
 0x38d   : > { %v3817_v22 = vpack.c.bf16 %v1986_v9, %v1986_v9  ;;  %v3976_v59 = vunpack.c.l.b16 %v3816_v18  ;;  %v3989_v45 = vrot.slane %v3975_v46, 4  ;;  %v3988_v18 = vsel %vm1503_vm4, %v3987_v32, %v3986_v5  ;;  %v3865_v32 = vld [vmem:[%s11295_s6 + $0x150] sm:$0xff] }
 0x38e   : > { %v1988_v24 = vpop.f32.mrf.mxu1  ;;  %v3861_v5 = vld [vmem:[%s11295_s6 + $0x130] sm:$0xff] }
 0x38f   : > { %v3818_v28 = vpack.c.bf16 %v1988_v24, %v1988_v24  ;;  %v3977_v61 = vunpack.c.l.b16 %v3817_v22  ;;  %v4003_v49 = vrot.slane %v3976_v59, 4  ;;  %v3990_v30 = vsel %vm1506_vm5, %v3989_v45, %v3988_v18  ;;  %v3845_v18 = vld [vmem:[%s11295_s6 + $0xb0] sm:$0xff] }
 0x390   : > { %v2060_v17 = vpop.f32.mrf.mxu1  ;;  %v8023_v62 = vcombine.high %v3857_v0, %v3861_v5 }
 0x391   : > { %v3819_v50 = vpack.c.bf16 %v2060_v17, %v2060_v17  ;;  %v3978_v16 = vunpack.c.l.b16 %v3818_v28  ;;  %v3991_v52 = vrot.slane %v3977_v61, 3  ;;  %v4002_v28 = vsel %vm1503_vm4, %v4001_v38, %v4000_v15  ;;  %v3873_v61 = vld [vmem:[%s11295_s6 + $0x190] sm:$0xff] }
 0x392   : > { %v2062_v63 = vpop.f32.mrf.mxu1  ;;  %v4004_v3 = vsel %vm1506_vm5, %v4003_v49, %v4002_v28  ;;  %v3841_v15 = vld [vmem:[%s11295_s6 + $0x90] sm:$0xff] }
 0x393   : > { %v3979_v19 = vunpack.c.l.b16 %v3819_v50  ;;  %v3820_v23 = vpack.c.bf16 %v2062_v63, %v2062_v63  ;;  %v4005_v54 = vrot.slane %v3978_v16, 3  ;;  %v3992_v17 = vsel %vm1509_vm6, %v3991_v52, %v3990_v30  ;;  %v3877_v63 = vld [vmem:[%s11295_s6 + $0x1b0] sm:$0xff] }
 0x394   : > { %v2134_v36 = vpop.f32.mrf.mxu1  ;;  %v8039_v29 = vcombine.high %v3873_v61, %v3877_v63  ;;  %v8038_v45 = vcombine.low %v3873_v61, %v3877_v63 }
 0x395   : > { %v3980_v47 = vunpack.c.l.b16 %v3820_v23  ;;  %v3821_v42 = vpack.c.bf16 %v2134_v36, %v2134_v36  ;;  %v3993_v14 = vrot.slane %v3979_v19, 2  ;;  %v4006_v39 = vsel %vm1509_vm6, %v4005_v54, %v4004_v3  ;;  %v3869_v36 = vld [vmem:[%s11295_s6 + $0x170] sm:$0xff] }
 0x396   : > { %v2136_v9 = vpop.f32.mrf.mxu1  ;;  %v8030_v52 = vcombine.low %v3865_v32, %v3869_v36  ;;  %v8007_v3 = vcombine.high %v3841_v15, %v3845_v18 }
 0x397   : > { %v3981_v57 = vunpack.c.l.b16 %v3821_v42  ;;  %v3822_v8 = vpack.c.bf16 %v2136_v9, %v2136_v9  ;;  %v4007_v22 = vrot.slane %v3980_v47, 2  ;;  %v3994_v46 = vsel %vm1512_vm7, %v3993_v14, %v3992_v17  ;;  %v3853_v9 = vld [vmem:[%s11295_s6 + $0xf0] sm:$0xff] }
 0x398   : > { %v9622_v24 = vpop.f32.mrf.mxu1  ;;  %v8031_v47 = vcombine.high %v3865_v32, %v3869_v36  ;;  %v8022_v14 = vcombine.low %v3857_v0, %v3861_v5 }
 0x399   : > { %v3995_v33 = vrot.slane %v3981_v57, 1  ;;  %v3982_v34 = vunpack.c.l.b16 %v3822_v8  ;;  %v4008_v55 = vsel %vm1512_vm7, %v4007_v22, %v4006_v39  ;;  %v3833_v39 = vld [vmem:[%s11295_s6 + $0x50] sm:$0xff] }
 0x39a   : > { %v2544_v37 = vpop.f32.mrf.mxu1 }
 0x39b   : > { %v4009_v50 = vrot.slane %v3982_v34, 1  ;;  %v3996_v56 = vsel %vm1515_vm8, %v3995_v33, %v3994_v46  ;;  %v3837_v46 = vld [vmem:[%s11295_s6 + $0x70] sm:$0xff] }
 0x39c   : > { %v2622_v59 = vpop.f32.mrf.mxu1  ;;  %v9641_v26 = vpack.c.b16 %v3996_v56, %v3996_v56  ;;  %v3107_v56 = vand.u32 127, %v757_v2  ;;  %v3829_v2 = vld [vmem:[%s11295_s6 + $0x30] sm:$0xff] }
 0x39d   : > { %v4010_v16 = vsel %vm1515_vm8, %v4009_v50, %v4008_v55  ;;  %v3118_v22 = vrot.slane %v2622_v59, 7 }
 0x39e   : > { %v9639_v19 = vpack.c.b16 %v4010_v16, %v4010_v16  ;;  %v2624_v23 = vpop.f32.mrf.mxu1  ;;  %v8006_v16 = vcombine.low %v3841_v15, %v3845_v18  ;;  %v3929_v18 = vld [vmem:[%s11295_s6 + $0x350] sm:$0xff] }
 0x39f   : > { %v3119_v50 = vsel %vm1497_vm2, %v3118_v22, %v9622_v24  ;;  %v3108_v23 = vstv %s8973_s30  ;;  %v3825_v24 = vld [vmem:[%s11295_s6 + $0x10] sm:$0xff] }
 0x3a0   : > { %v2702_v13 = vpop.f32.mrf.mxu1  ;;  %4687 = vmatprep.mubr.bf16.mxu0 %v9639_v19  ;;  %vm3109_vm10 = vcmp.lt.s32.totalorder %v3107_v56, %v3108_v23  ;;  %v3933_v22 = vld [vmem:[%s11295_s6 + $0x370] sm:$0xff]  ;;  %vm11202_vm12 = vcmp.eq.s32.totalorder %v9185_v4, %v3108_v23 }
 0x3a1   : > { %4688 = vmatmul.mubr.bf16.vlgmr.msra.gmra.mxu0 %v9641_v26  ;;  %v3120_v28 = vrot.slane %v2702_v13, 6  ;;  %v7999_v13 = vcombine.high %v3833_v39, %v3837_v46  ;;  %v3909_v56 = vld [vmem:[%s11295_s6 + $0x2b0] sm:$0xff] }
 0x3a2   : > { %4738 = vmatpush1.bf16.msra.mxu0 %v8046_v10  ;;  %v2704_v38 = vpop.f32.mrf.mxu1  ;;  %4769 = vmatprep.mubr.bf16.mxu0 %v9639_v19  ;;  %v3849_v10 = vld [vmem:[%s11295_s6 + $0xd0] sm:$0xff] }
 0x3a3   : > { %4739 = vmatprep.subr.bf16.mxu0 %v8039_v29  ;;  %v8015_v57 = vcombine.high %v3849_v10, %v3853_v9  ;;  %v8014_v33 = vcombine.low %v3849_v10, %v3853_v9  ;;  %v3121_v59 = vsel %vm1500_vm3, %v3120_v28, %v3119_v50  ;;  %v7990_v9 = vcombine.low %v3825_v24, %v3829_v2 }
 0x3a4   : > { %v2782_v42 = vpop.f32.mrf.mxu1 }
 0x3a5   : > { %v3122_v34 = vrot.slane %v2782_v42, 5  ;;  %v7998_v42 = vcombine.low %v3833_v39, %v3837_v46  ;;  %v3917_v39 = vld [vmem:[%s11295_s6 + $0x2f0] sm:$0xff] }
 0x3a6   : > { %4740 = vmatpush1.bf16.msra.mxu0 %v8038_v45  ;;  %v2784_v49 = vpop.f32.mrf.mxu1 }
 0x3a7   : > { %4741 = vmatprep.subr.bf16.mxu0 %v8031_v47  ;;  %v3123_v29 = vsel %vm1503_vm4, %v3122_v34, %v3121_v59  ;;  %v7991_v49 = vcombine.high %v3825_v24, %v3829_v2  ;;  %v3925_v34 = vld [vmem:[%s11295_s6 + $0x330] sm:$0xff] }
 0x3a8   : > { %v2862_v43 = vpop.f32.mrf.mxu1 }
 0x3a9   : > { %v3124_v17 = vrot.slane %v2862_v43, 4  ;;  %v3949_v43 = vld [vmem:[%s11295_s6 + $0x3f0] sm:$0xff] }
 0x3aa   : > { %4742 = vmatpush1.bf16.msra.mxu0 %v8030_v52  ;;  %v2864_v54 = vpop.f32.mrf.mxu1 }
 0x3ab   : > { %4743 = vmatprep.subr.bf16.mxu0 %v8023_v62  ;;  %v3125_v32 = vsel %vm1506_vm5, %v3124_v17, %v3123_v29  ;;  %v3945_v62 = vld [vmem:[%s11295_s6 + $0x3d0] sm:$0xff] }
 0x3ac   : > { %v2942_v8 = vpop.f32.mrf.mxu1  ;;  %v8111_v54 = vcombine.high %v3945_v62, %v3949_v43 }
 0x3ad   : > { %v3126_v55 = vrot.slane %v2942_v8, 3  ;;  %v8110_v8 = vcombine.low %v3945_v62, %v3949_v43 }
 0x3ae   : > { %4744 = vmatpush1.bf16.msra.mxu0 %v8022_v14  ;;  %v2944_v30 = vpop.f32.mrf.mxu1  ;;  %v3937_v14 = vld [vmem:[%s11295_s6 + $0x390] sm:$0xff] }
 0x3af   : > { %4745 = vmatprep.subr.bf16.mxu0 %v8015_v57  ;;  %v3127_v38 = vsel %vm1509_vm6, %v3126_v55, %v3125_v32  ;;  %v3941_v57 = vld [vmem:[%s11295_s6 + $0x3b0] sm:$0xff]  ;;  %v8095_v30 = vcombine.high %v3929_v18, %v3933_v22 }
 0x3b0   : > { %v3022_v37 = vpop.f32.mrf.mxu1  ;;  %v8103_v15 = vcombine.high %v3937_v14, %v3941_v57  ;;  %v8102_v28 = vcombine.low %v3937_v14, %v3941_v57  ;;  %v3905_v55 = vld [vmem:[%s11295_s6 + $0x290] sm:$0xff] }
 0x3b1   : > { %v3128_v61 = vrot.slane %v3022_v37, 2  ;;  %v3913_v37 = vld [vmem:[%s11295_s6 + $0x2d0] sm:$0xff]  ;;  %v8070_v29 = vcombine.low %v3905_v55, %v3909_v56 }
 0x3b2   : > { %4746 = vmatpush1.bf16.msra.mxu0 %v8014_v33  ;;  %v3024_v63 = vpop.f32.mrf.mxu1  ;;  %v3921_v33 = vld [vmem:[%s11295_s6 + $0x310] sm:$0xff]  ;;  %v8079_v50 = vcombine.high %v3913_v37, %v3917_v39  ;;  %v8078_v59 = vcombine.low %v3913_v37, %v3917_v39  ;;  %v3864_v37 = vld [vmem:[%s11295_s6 + $0x148] sm:$0xff] }
 0x3b3   : > { %4747 = vmatprep.subr.bf16.mxu0 %v8007_v3  ;;  %v3129_v0 = vsel %vm1512_vm7, %v3128_v61, %v3127_v38  ;;  %v8094_v3 = vcombine.low %v3929_v18, %v3933_v22  ;;  %v8087_v17 = vcombine.high %v3921_v33, %v3925_v34  ;;  %v8086_v46 = vcombine.low %v3921_v33, %v3925_v34  ;;  %v3897_v63 = vld [vmem:[%s11295_s6 + $0x250] sm:$0xff]  ;;  %v3868_v39 = vld [vmem:[%s11295_s6 + $0x168] sm:$0xff] }
 0x3b4   : > { %v3102_v36 = vpop.f32.mrf.mxu1  ;;  %v8071_v61 = vcombine.high %v3905_v55, %v3909_v56  ;;  %v3889_v32 = vld [vmem:[%s11295_s6 + $0x210] sm:$0xff]  ;;  %v4891_v56 = vld [vmem:[%s11296_s7 + $0x180] sm:$0xff] }
 0x3b5   : > { %v3130_v45 = vrot.slane %v3102_v36, 1  ;;  %v3893_v36 = vld [vmem:[%s11295_s6 + $0x230] sm:$0xff] }
 0x3b6   : > { %4748 = vmatpush1.bf16.msra.mxu0 %v8006_v16  ;;  %v3104_v47 = vpop.f32.mrf.mxu1  ;;  %v3901_v16 = vld [vmem:[%s11295_s6 + $0x270] sm:$0xff]  ;;  %v8055_v2 = vcombine.high %v3889_v32, %v3893_v36  ;;  %v8054_v38 = vcombine.low %v3889_v32, %v3893_v36  ;;  %v8028_v32 = vcombine.low %v3864_v37, %v3868_v39  ;;  %v4883_v36 = vld [vmem:[%s11296_s7 + $0x140] sm:$0xff] }
 0x3b7   : > { %4749 = vmatprep.subr.bf16.mxu0 %v7999_v13  ;;  %v3131_v5 = vsel %vm1515_vm8, %v3130_v45, %v3129_v0  ;;  %v8063_v13 = vcombine.high %v3897_v63, %v3901_v16  ;;  %v8062_v24 = vcombine.low %v3897_v63, %v3901_v16  ;;  %v3856_v16 = vld [vmem:[%s11295_s6 + $0x108] sm:$0xff] }
 0x3b8   : > { %v3133_v52 = vsel %vm3109_vm10, %v3131_v5, -1e+30 }
 0x3b9   : > { %v3134_v10 = vsel %vm1518_vm9, %v3133_v52, -inf }
 0x3ba   : > { %4750 = vmatpush1.bf16.msra.mxu0 %v7998_v42  ;;  %3135 = vmax.xlane.f32.xlu0 %v3134_v10 }
 0x3bb   : > { %4751 = vmatprep.subr.bf16.mxu0 %v7991_v49 }
 0x3be   : > { %4752 = vmatpush1.bf16.msra.mxu0 %v7990_v9 }
 0x3bf   : > { %4753 = vmatprep.subr.bf16.mxu0 %v8111_v54 }
 0x3c2   : > { %4754 = vmatpush2.bf16.msra.mxu0 %v8110_v8 }
 0x3c3   : > { %4755 = vmatprep.subr.bf16.mxu0 %v8103_v15 }
 0x3c6   : > { %4756 = vmatpush2.bf16.msra.mxu0 %v8102_v28 }
 0x3c7   : > { %4757 = vmatprep.subr.bf16.mxu0 %v8095_v30 }
 0x3ca   : > { %4758 = vmatpush2.bf16.msra.mxu0 %v8094_v3  ;;  %v3876_v3 = vld [vmem:[%s11295_s6 + $0x1a8] sm:$0xff] }
 0x3cb   : > { %4759 = vmatprep.subr.bf16.mxu0 %v8087_v17 }
 0x3ce   : > { %4760 = vmatpush2.bf16.msra.mxu0 %v8086_v46 }
 0x3cf   : > { %4761 = vmatprep.subr.bf16.mxu0 %v8079_v50 }
 0x3d2   : > { %4762 = vmatpush2.bf16.msra.mxu0 %v8078_v59  ;;  %v4895_v59 = vld [vmem:[%s11296_s7 + $0x1a0] sm:$0xff] }
 0x3d3   : > { %4763 = vmatprep.subr.bf16.mxu0 %v8071_v61  ;;  %v8029_v61 = vcombine.high %v3864_v37, %v3868_v39  ;;  %v8163_v63 = vcombine.high %v4891_v56, %v4895_v59  ;;  %v3936_v39 = vld [vmem:[%s11295_s6 + $0x388] sm:$0xff] }
 0x3d6   : > { %4764 = vmatpush2.bf16.msra.mxu0 %v8070_v29  ;;  %v3860_v29 = vld [vmem:[%s11295_s6 + $0x128] sm:$0xff] }
 0x3d7   : > { %4765 = vmatprep.subr.bf16.mxu0 %v8063_v13  ;;  %v8162_v13 = vcombine.low %v4891_v56, %v4895_v59 }
 0x3da   : > { %4766 = vmatpush2.bf16.msra.mxu0 %v8062_v24  ;;  %v4887_v24 = vld [vmem:[%s11296_s7 + $0x160] sm:$0xff] }
 0x3db   : > { %4767 = vmatprep.subr.bf16.mxu0 %v8055_v2  ;;  %v8021_v2 = vcombine.high %v3856_v16, %v3860_v29 }
 0x3de   : > { %4768 = vmatpush2.bf16.msra.mxu0 %v8054_v38  ;;  %v8155_v38 = vcombine.high %v4883_v36, %v4887_v24 }
 0x3e1   : > { %4770 = vmatmul.mubr.bf16.vlgmr.msra.gmra.mxu0 %v9641_v26 }
 0x443   : > { %v3136_v45 = vpop.xlane.xlu0 %3135 }
 0x444   : > { %v3137_v47 = vsub.f32 %v3133_v52, %v3136_v45  ;;  %v3848_v45 = vld [vmem:[%s11295_s6 + $0xc8] sm:$0xff] }
 0x446   : > { %v3138_v42 = vmul.f32 1.442695, %v3137_v47  ;;  %v3852_v47 = vld [vmem:[%s11295_s6 + $0xe8] sm:$0xff] }
 0x448   : > { %8765 = vpow2.f32 %v3138_v42  ;;  %v8154_v42 = vcombine.low %v4883_v36, %v4887_v24  ;;  %v3912_v24 = vld [vmem:[%s11295_s6 + $0x2c8] sm:$0xff] }
 0x455   : > { %v8766_v0 = vpop.eup %8765 }
 0x456   : > { %v3140_v5 = vsel %vm1518_vm9, %v8766_v0, 0.0 }
 0x457   : > { %3141 = vadd.xlane.f32.xlu1 %v3140_v5  ;;  %v4875_v5 = vld [vmem:[%s11296_s7 + $0x100] sm:$0xff] }
 0x461   : > { %v9748_v49 = vpop.f32.mrf.mxu0 }
 0x463   : > { %v9750_v62 = vpop.f32.mrf.mxu0 }
 0x465   : > { %v4693_v43 = vpop.f32.mrf.mxu0 }
 0x466   : > { %v4879_v43 = vld [vmem:[%s11296_s7 + $0x120] sm:$0xff] }
 0x467   : > { %v4694_v10 = vpop.f32.mrf.mxu0 }
 0x468   : > { %v8013_v10 = vcombine.high %v3848_v45, %v3852_v47 }
 0x4a1   : > { %v9752_v9 = vpop.f32.mrf.mxu0 }
 0x4a3   : > { %v9754_v54 = vpop.f32.mrf.mxu0 }
 0x4a5   : > { %v4775_v14 = vpop.f32.mrf.mxu0 }
 0x4a6   : > { %v8147_v14 = vcombine.high %v4875_v5, %v4879_v43 }
 0x4a7   : > { %v4776_v57 = vpop.f32.mrf.mxu0 }
 0x4a8   : > { %v3840_v57 = vld [vmem:[%s11295_s6 + $0x88] sm:$0xff] }
 0x4e0   : > { %v3142_v8 = vpop.xlane.xlu1 %3141 }
 0x4e1   : > { %8767 = vrcp.f32 %v3142_v8  ;;  %v3844_v8 = vld [vmem:[%s11295_s6 + $0xa8] sm:$0xff] }
 0x4ee   : > { %v8768_v52 = vpop.eup %8767 }
 0x4ef   : > { %v3144_v15 = vmul.f32 %v8768_v52, %v8766_v0  ;;  %v8020_v0 = vcombine.low %v3856_v16, %v3860_v29  ;;  %v8146_v52 = vcombine.low %v4875_v5, %v4879_v43  ;;  %v4851_v29 = vld [vmem:[%s11296_s7 + $0x40] sm:$0xff]  ;;  %v3904_v43 = vld [vmem:[%s11295_s6 + $0x288] sm:$0xff] }
 0x4f1   : > { %v3153_v18 = vrot.slane %v3144_v15, %v9188_v6  ;;  %v3146_v34 = vcombine.high %v3144_v15, %v3144_v15  ;;  %v8012_v15 = vcombine.low %v3848_v45, %v3852_v47  ;;  %v4843_v47 = vld [vmem:[%s11296_s7] sm:$0xff] }
 0x4f3   : > { %v3169_v22 = vrot.slane %v3153_v18, %v9188_v6  ;;  %v3161_v28 = vcombine.high %v3153_v18, %v3153_v18  ;;  %v4867_v18 = vld [vmem:[%s11296_s7 + $0xc0] sm:$0xff] }
 0x4f5   : > { %7978 = vmatmul.mubr.msk.f32.vlgmr.msra.gmra.mxu1 %vm1518_vm9, %v3169_v22  ;;  %v3183_v30 = vrot.slane %v3161_v28, %v9188_v6  ;;  %v3191_v33 = vcombine.high %v3169_v22, %v3169_v22  ;;  %v4871_v22 = vld [vmem:[%s11296_s7 + $0xe0] sm:$0xff]  ;;  %v8005_v28 = vcombine.high %v3840_v57, %v3844_v8 }
 0x4f6   : > { %3301 = vmatpush1.msra.mxu1 %v9480_v27  ;;  %3334 = vmatprep.mubr.f32.mxu1 %v8889_v1 }
 0x4f7   : > { %3373 = vmatprep.subr.mxu1 %v9483_v51  ;;  %v3193_v27 = vcombine.high %v3183_v30, %v3183_v30  ;;  %v3160_v51 = vrot.slane %v3146_v34, %v9188_v6  ;;  %v3836_v34 = vld [vmem:[%s11295_s6 + $0x68] sm:$0xff] }
 0x4f9   : > { %7979 = vmatmul.mubr.msk.f32.vlgmr.msra.gmra.mxu1 %vm1518_vm9, %v3183_v30  ;;  %v8139_v30 = vcombine.high %v4867_v18, %v4871_v22 }
 0x4fa   : > { %3374 = vmatpush1.msra.mxu1 %v9488_v20  ;;  %3407 = vmatprep.mubr.f32.mxu1 %v8889_v1  ;;  %v3176_v20 = vrot.slane %v3160_v51, %v9188_v6 }
 0x4fb   : > { %3446 = vmatprep.subr.mxu1 %v9495_v25  ;;  %v3162_v25 = vcombine.high %v3160_v51, %v3160_v51  ;;  %v8004_v51 = vcombine.low %v3840_v57, %v3844_v8  ;;  %v4963_v8 = vld [vmem:[%s11296_s7 + $0x3c0] sm:$0xff] }
 0x4fd   : > { %7980 = vmatmul.mubr.msk.f32.vlgmr.msra.gmra.mxu1 %vm1518_vm9, %v3191_v33  ;;  %v3832_v33 = vld [vmem:[%s11295_s6 + $0x48] sm:$0xff] }
 0x4fe   : > { %3447 = vmatpush1.msra.mxu1 %v9500_v31  ;;  %3480 = vmatprep.mubr.f32.mxu1 %v8889_v1  ;;  %v3190_v31 = vrot.slane %v3162_v25, %v9188_v6  ;;  %v4863_v25 = vld [vmem:[%s11296_s7 + $0xa0] sm:$0xff] }
 0x4ff   : > { %3519 = vmatprep.subr.mxu1 %v9504_v7  ;;  %v3880_v7 = vld [vmem:[%s11295_s6 + $0x1c8] sm:$0xff] }
 0x500   : > { %v3194_v17 = vcombine.high %v3190_v31, %v3190_v31 }
 0x501   : > { %7981 = vmatmul.mubr.msk.f32.vlgmr.msra.gmra.mxu1 %vm1518_vm9, %v3193_v27  ;;  %v8138_v27 = vcombine.low %v4867_v18, %v4871_v22  ;;  %v3896_v22 = vld [vmem:[%s11295_s6 + $0x248] sm:$0xff] }
 0x502   : > { %3520 = vmatpush1.msra.mxu1 %v9509_v35  ;;  %3553 = vmatprep.mubr.f32.mxu1 %v8889_v1  ;;  %v3884_v35 = vld [vmem:[%s11295_s6 + $0x1e8] sm:$0xff] }
 0x503   : > { %3592 = vmatprep.subr.mxu1 %v9513_v44  ;;  %v3192_v44 = vcombine.high %v3176_v20, %v3176_v20 }
 0x505   : > { %7982 = vmatmul.mubr.msk.f32.vlgmr.msra.gmra.mxu1 %vm1518_vm9, %v3176_v20  ;;  %v4859_v20 = vld [vmem:[%s11296_s7 + $0x80] sm:$0xff] }
 0x506   : > { %3593 = vmatpush1.msra.mxu1 %v9518_v48  ;;  %3626 = vmatprep.mubr.f32.mxu1 %v8889_v1  ;;  %v8045_v48 = vcombine.high %v3880_v7, %v3884_v35 }
 0x507   : > { %3665 = vmatprep.subr.mxu1 %v9521_v53  ;;  %v3872_v53 = vld [vmem:[%s11295_s6 + $0x188] sm:$0xff] }
 0x508   : > { %v8036_v46 = vcombine.low %v3872_v53, %v3876_v3 }
 0x509   : > { %7983 = vmatmul.mubr.msk.f32.vlgmr.msra.gmra.mxu1 %vm1518_vm9, %v3190_v31  ;;  %v7997_v31 = vcombine.high %v3832_v33, %v3836_v34 }
 0x50a   : > { %3666 = vmatpush1.msra.mxu1 %v9526_v58  ;;  %3699 = vmatprep.mubr.f32.mxu1 %v8889_v1  ;;  %v8044_v58 = vcombine.low %v3880_v7, %v3884_v35  ;;  %v8131_v7 = vcombine.high %v4859_v20, %v4863_v25  ;;  %v3824_v35 = vld [vmem:[%s11295_s6 + $0x8] sm:$0xff] }
 0x50b   : > { %3738 = vmatprep.subr.mxu1 %v9529_v60  ;;  %v8037_v60 = vcombine.high %v3872_v53, %v3876_v3  ;;  %v7996_v53 = vcombine.low %v3832_v33, %v3836_v34  ;;  %v4955_v34 = vld [vmem:[%s11296_s7 + $0x380] sm:$0xff] }
 0x50d   : > { %7984 = vmatmul.mubr.msk.f32.vlgmr.msra.gmra.mxu1 %vm1518_vm9, %v3192_v44  ;;  %v3828_v44 = vld [vmem:[%s11295_s6 + $0x28] sm:$0xff] }
 0x50e   : > { %3739 = vmatpush1.msra.mxu1 %v9534_v41  ;;  %3772 = vmatprep.mubr.f32.mxu1 %v8889_v1  ;;  %v4899_v41 = vld [vmem:[%s11296_s7 + $0x1c0] sm:$0xff]  ;;  %v7989_v3 = vcombine.high %v3824_v35, %v3828_v44 }
 0x50f   : > { %4696 = vmatprep.subr.bf16.mxu1 %v8045_v48  ;;  %v4903_v1 = vld [vmem:[%s11296_s7 + $0x1e0] sm:$0xff]  ;;  %v8130_v48 = vcombine.low %v4859_v20, %v4863_v25  ;;  %v3888_v25 = vld [vmem:[%s11295_s6 + $0x208] sm:$0xff] }
 0x510   : > { %v8170_v50 = vcombine.low %v4899_v41, %v4903_v1  ;;  %v8171_v55 = vcombine.high %v4899_v41, %v4903_v1  ;;  %v3940_v41 = vld [vmem:[%s11295_s6 + $0x3a8] sm:$0xff] }
 0x511   : > { %7985 = vmatmul.mubr.msk.f32.vlgmr.msra.gmra.mxu1 %vm1518_vm9, %v3194_v17  ;;  %v3948_v17 = vld [vmem:[%s11295_s6 + $0x3e8] sm:$0xff]  ;;  %v8100_v56 = vcombine.low %v3936_v39, %v3940_v41 }
 0x512   : > { %4697 = vmatpush1.bf16.msra.mxu1 %v8044_v58  ;;  %4728 = vmatprep.mubr.bf16.mxu1 %v9639_v19  ;;  %v3944_v58 = vld [vmem:[%s11295_s6 + $0x3c8] sm:$0xff] }
 0x513   : > { %4698 = vmatprep.subr.bf16.mxu1 %v8037_v60  ;;  %5675 = vmatprep.subr.bf16.mxu0 %v8171_v55  ;;  %v7988_v60 = vcombine.low %v3824_v35, %v3828_v44  ;;  %v8109_v37 = vcombine.high %v3944_v58, %v3948_v17  ;;  %v8108_v1 = vcombine.low %v3944_v58, %v3948_v17  ;;  %v3932_v55 = vld [vmem:[%s11295_s6 + $0x368] sm:$0xff]  ;;  %v4947_v44 = vld [vmem:[%s11296_s7 + $0x340] sm:$0xff]  ;;  %v3882_v58 = vld [vmem:[%s11295_s6 + $0x1d8] sm:$0xff] }
 0x514   : > { %5676 = vmatpush1.bf16.msra.mxu0 %v8170_v50  ;;  %v3928_v50 = vld [vmem:[%s11295_s6 + $0x348] sm:$0xff]  ;;  %v3886_v17 = vld [vmem:[%s11295_s6 + $0x1f8] sm:$0xff] }
 0x515   : > { %5677 = vmatprep.subr.bf16.mxu0 %v8163_v63  ;;  %v8093_v59 = vcombine.high %v3928_v50, %v3932_v55  ;;  %v3924_v63 = vld [vmem:[%s11295_s6 + $0x328] sm:$0xff]  ;;  %v8092_v16 = vcombine.low %v3928_v50, %v3932_v55  ;;  %v3874_v50 = vld [vmem:[%s11295_s6 + $0x198] sm:$0xff] }
 0x516   : > { %4699 = vmatpush1.bf16.msra.mxu1 %v8036_v46  ;;  %v8101_v46 = vcombine.high %v3936_v39, %v3940_v41  ;;  %v4939_v39 = vld [vmem:[%s11296_s7 + $0x300] sm:$0xff]  ;;  %v3878_v55 = vld [vmem:[%s11295_s6 + $0x1b8] sm:$0xff] }
 0x517   : > { %4700 = vmatprep.subr.bf16.mxu1 %v8029_v61  ;;  %v3920_v61 = vld [vmem:[%s11295_s6 + $0x308] sm:$0xff]  ;;  %v4943_v41 = vld [vmem:[%s11296_s7 + $0x320] sm:$0xff] }
 0x518   : > { %5678 = vmatpush1.bf16.msra.mxu0 %v8162_v13  ;;  %v4855_v13 = vld [vmem:[%s11296_s7 + $0x60] sm:$0xff]  ;;  %v8084_v45 = vcombine.low %v3920_v61, %v3924_v63 }
 0x519   : > { %5679 = vmatprep.subr.bf16.mxu0 %v8155_v38  ;;  %v8123_v36 = vcombine.high %v4851_v29, %v4855_v13  ;;  %v8122_v38 = vcombine.low %v4851_v29, %v4855_v13  ;;  %v3866_v13 = vld [vmem:[%s11295_s6 + $0x158] sm:$0xff] }
 0x51a   : > { %4701 = vmatpush1.bf16.msra.mxu1 %v8028_v32  ;;  %v8085_v32 = vcombine.high %v3920_v61, %v3924_v63  ;;  %v4931_v61 = vld [vmem:[%s11296_s7 + $0x2c0] sm:$0xff] }
 0x51b   : > { %4702 = vmatprep.subr.bf16.mxu1 %v8021_v2  ;;  %v3916_v2 = vld [vmem:[%s11295_s6 + $0x2e8] sm:$0xff]  ;;  %v4935_v63 = vld [vmem:[%s11296_s7 + $0x2e0] sm:$0xff] }
 0x51c   : > { %5680 = vmatpush1.bf16.msra.mxu0 %v8154_v42  ;;  %v4847_v42 = vld [vmem:[%s11296_s7 + $0x20] sm:$0xff]  ;;  %v8076_v57 = vcombine.low %v3912_v24, %v3916_v2  ;;  %v8203_v29 = vcombine.high %v4931_v61, %v4935_v63 }
 0x51d   : > { %5681 = vmatprep.subr.bf16.mxu0 %v8147_v14  ;;  %v8115_v5 = vcombine.high %v4843_v47, %v4847_v42  ;;  %v8114_v14 = vcombine.low %v4843_v47, %v4847_v42  ;;  %v3858_v42 = vld [vmem:[%s11295_s6 + $0x118] sm:$0xff] }
 0x51e   : > { %4703 = vmatpush1.bf16.msra.mxu1 %v8020_v0  ;;  %v8077_v0 = vcombine.high %v3912_v24, %v3916_v2  ;;  %v8040_v24 = vcombine.low %v3874_v50, %v3878_v55  ;;  %v4923_v2 = vld [vmem:[%s11296_s7 + $0x280] sm:$0xff] }
 0x51f   : > { %4704 = vmatprep.subr.bf16.mxu1 %v8013_v10  ;;  %v3908_v10 = vld [vmem:[%s11295_s6 + $0x2a8] sm:$0xff] }
 0x520   : > { %5682 = vmatpush1.bf16.msra.mxu0 %v8146_v52  ;;  %v4967_v52 = vld [vmem:[%s11296_s7 + $0x3e0] sm:$0xff]  ;;  %v8068_v33 = vcombine.low %v3904_v43, %v3908_v10 }
 0x521   : > { %5683 = vmatprep.subr.bf16.mxu0 %v8139_v30  ;;  %v8235_v18 = vcombine.high %v4963_v8, %v4967_v52  ;;  %v8234_v30 = vcombine.low %v4963_v8, %v4967_v52  ;;  %v3850_v52 = vld [vmem:[%s11295_s6 + $0xd8] sm:$0xff] }
 0x522   : > { %4705 = vmatpush1.bf16.msra.mxu1 %v8012_v15  ;;  %v8069_v15 = vcombine.high %v3904_v43, %v3908_v10  ;;  %v4915_v10 = vld [vmem:[%s11296_s7 + $0x240] sm:$0xff] }
 0x523   : > { %4706 = vmatprep.subr.bf16.mxu1 %v8005_v28  ;;  %v3900_v28 = vld [vmem:[%s11295_s6 + $0x268] sm:$0xff] }
 0x524   : > { %5684 = vmatpush1.bf16.msra.mxu0 %v8138_v27  ;;  %v4959_v27 = vld [vmem:[%s11296_s7 + $0x3a0] sm:$0xff]  ;;  %v8060_v35 = vcombine.low %v3896_v22, %v3900_v28 }
 0x525   : > { %5685 = vmatprep.subr.bf16.mxu0 %v8131_v7  ;;  %v8227_v20 = vcombine.high %v4955_v34, %v4959_v27  ;;  %v8226_v7 = vcombine.low %v4955_v34, %v4959_v27  ;;  %v3842_v27 = vld [vmem:[%s11295_s6 + $0x98] sm:$0xff] }
 0x526   : > { %4707 = vmatpush1.bf16.msra.mxu1 %v8004_v51  ;;  %v8061_v51 = vcombine.high %v3896_v22, %v3900_v28  ;;  %v4907_v28 = vld [vmem:[%s11296_s7 + $0x200] sm:$0xff] }
 0x527   : > { %4708 = vmatprep.subr.bf16.mxu1 %v7997_v31  ;;  %v3892_v31 = vld [vmem:[%s11295_s6 + $0x228] sm:$0xff] }
 0x528   : > { %5686 = vmatpush1.bf16.msra.mxu0 %v8130_v48  ;;  %v4951_v48 = vld [vmem:[%s11296_s7 + $0x360] sm:$0xff] }
 0x529   : > { %5687 = vmatprep.subr.bf16.mxu0 %v8123_v36  ;;  %v8202_v36 = vcombine.low %v4931_v61, %v4935_v63 }
 0x52a   : > { %4709 = vmatpush1.bf16.msra.mxu1 %v7996_v53  ;;  %v8053_v53 = vcombine.high %v3888_v25, %v3892_v31 }
 0x52b   : > { %4710 = vmatprep.subr.bf16.mxu1 %v7989_v3  ;;  %v8219_v3 = vcombine.high %v4947_v44, %v4951_v48 }
 0x52c   : > { %5688 = vmatpush1.bf16.msra.mxu0 %v8122_v38  ;;  %v4927_v38 = vld [vmem:[%s11296_s7 + $0x2a0] sm:$0xff] }
 0x52d   : > { %5689 = vmatprep.subr.bf16.mxu0 %v8115_v5  ;;  %v8195_v47 = vcombine.high %v4923_v2, %v4927_v38  ;;  %v8194_v5 = vcombine.low %v4923_v2, %v4927_v38 }
 0x52e   : > { %4711 = vmatpush1.bf16.msra.mxu1 %v7988_v60  ;;  %v8218_v60 = vcombine.low %v4947_v44, %v4951_v48 }
 0x52f   : > { %4712 = vmatprep.subr.bf16.mxu1 %v8109_v37  ;;  %v8052_v37 = vcombine.low %v3888_v25, %v3892_v31  ;;  %v10024_v31 = vld [vmem:[%s11296_s7 + $0x1d0] sm:$0xff] }
 0x530   : > { %5690 = vmatpush1.bf16.msra.mxu0 %v8114_v14  ;;  %v4919_v14 = vld [vmem:[%s11296_s7 + $0x260] sm:$0xff] }
 0x531   : > { %5691 = vmatprep.subr.bf16.mxu0 %v8235_v18  ;;  %v8187_v8 = vcombine.high %v4915_v10, %v4919_v14  ;;  %v8186_v18 = vcombine.low %v4915_v10, %v4919_v14 }
 0x532   : > { %4713 = vmatpush2.bf16.msra.mxu1 %v8108_v1  ;;  %v8049_v1 = vcombine.high %v3882_v58, %v3886_v17 }
 0x533   : > { %4714 = vmatprep.subr.bf16.mxu1 %v8101_v46  ;;  %v8211_v46 = vcombine.high %v4939_v39, %v4943_v41 }
 0x534   : > { %5692 = vmatpush2.bf16.msra.mxu0 %v8234_v30  ;;  %v4911_v30 = vld [vmem:[%s11296_s7 + $0x220] sm:$0xff] }
 0x535   : > { %5693 = vmatprep.subr.bf16.mxu0 %v8227_v20  ;;  %v8179_v34 = vcombine.high %v4907_v28, %v4911_v30  ;;  %v8178_v20 = vcombine.low %v4907_v28, %v4911_v30 }
 0x536   : > { %4715 = vmatpush2.bf16.msra.mxu1 %v8100_v56  ;;  %v8210_v56 = vcombine.low %v4939_v39, %v4943_v41 }
 0x537   : > { %4716 = vmatprep.subr.bf16.mxu1 %v8093_v59  ;;  %v8048_v59 = vcombine.low %v3882_v58, %v3886_v17 }
 0x538   : > { %5694 = vmatpush2.bf16.msra.mxu0 %v8226_v7  ;;  %v10029_v7 = vld [vmem:[%s11296_s7 + $0x1f0] sm:$0xff] }
 0x539   : > { %5695 = vmatprep.subr.bf16.mxu0 %v8219_v3  ;;  %v8174_v44 = vcombine.low %v10024_v31, %v10029_v7  ;;  %v8175_v48 = vcombine.high %v10024_v31, %v10029_v7  ;;  %v3838_v3 = vld [vmem:[%s11295_s6 + $0x78] sm:$0xff]  ;;  %v4881_v31 = vld [vmem:[%s11296_s7 + $0x130] sm:$0xff] }
 0x53a   : > { %4717 = vmatpush2.bf16.msra.mxu1 %v8092_v16  ;;  %v8041_v16 = vcombine.high %v3874_v50, %v3878_v55  ;;  %v4878_v7 = vld [vmem:[%s11296_s7 + $0x118] sm:$0xff] }
 0x53b   : > { %4718 = vmatprep.subr.bf16.mxu1 %v8085_v32  ;;  %v3870_v32 = vld [vmem:[%s11295_s6 + $0x178] sm:$0xff] }
 0x53c   : > { %5696 = vmatpush2.bf16.msra.mxu0 %v8218_v60  ;;  %v8032_v43 = vcombine.low %v3866_v13, %v3870_v32  ;;  %v3826_v60 = vld [vmem:[%s11295_s6 + $0x18] sm:$0xff] }
 0x53d   : > { %5697 = vmatprep.subr.bf16.mxu0 %v8211_v46  ;;  %v3950_v46 = vld [vmem:[%s11295_s6 + $0x3f8] sm:$0xff] }
 0x53e   : > { %4719 = vmatpush2.bf16.msra.mxu1 %v8084_v45  ;;  %v8033_v45 = vcombine.high %v3866_v13, %v3870_v32 }
 0x53f   : > { %4720 = vmatprep.subr.bf16.mxu1 %v8077_v0  ;;  %v3862_v0 = vld [vmem:[%s11295_s6 + $0x138] sm:$0xff] }
 0x540   : > { %5698 = vmatpush2.bf16.msra.mxu0 %v8210_v56  ;;  %v8024_v22 = vcombine.low %v3858_v42, %v3862_v0  ;;  %v3938_v56 = vld [vmem:[%s11295_s6 + $0x398] sm:$0xff] }
 0x541   : > { %5699 = vmatprep.subr.bf16.mxu0 %v8203_v29  ;;  %v3934_v29 = vld [vmem:[%s11295_s6 + $0x378] sm:$0xff] }
 0x542   : > { %4721 = vmatpush2.bf16.msra.mxu1 %v8076_v57  ;;  %v8025_v57 = vcombine.high %v3858_v42, %v3862_v0 }
 0x543   : > { %4722 = vmatprep.subr.bf16.mxu1 %v8069_v15  ;;  %v3854_v15 = vld [vmem:[%s11295_s6 + $0xf8] sm:$0xff] }
 0x544   : > { %5700 = vmatpush2.bf16.msra.mxu0 %v8202_v36  ;;  %v8016_v25 = vcombine.low %v3850_v52, %v3854_v15  ;;  %v3922_v36 = vld [vmem:[%s11295_s6 + $0x318] sm:$0xff] }
 0x545   : > { %5701 = vmatprep.subr.bf16.mxu0 %v8195_v47  ;;  %v3918_v47 = vld [vmem:[%s11295_s6 + $0x2f8] sm:$0xff] }
 0x546   : > { %4723 = vmatpush2.bf16.msra.mxu1 %v8068_v33  ;;  %v8017_v33 = vcombine.high %v3850_v52, %v3854_v15 }
 0x547   : > { %4724 = vmatprep.subr.bf16.mxu1 %v8061_v51  ;;  %v3846_v51 = vld [vmem:[%s11295_s6 + $0xb8] sm:$0xff] }
 0x548   : > { %5702 = vmatpush2.bf16.msra.mxu0 %v8194_v5  ;;  %v8008_v58 = vcombine.low %v3842_v27, %v3846_v51  ;;  %v3906_v5 = vld [vmem:[%s11295_s6 + $0x298] sm:$0xff] }
 0x549   : > { %5703 = vmatprep.subr.bf16.mxu0 %v8187_v8  ;;  %v3902_v8 = vld [vmem:[%s11295_s6 + $0x278] sm:$0xff] }
 0x54a   : > { %4725 = vmatpush2.bf16.msra.mxu1 %v8060_v35  ;;  %v8009_v35 = vcombine.high %v3842_v27, %v3846_v51 }
 0x54b   : > { %4726 = vmatprep.subr.bf16.mxu1 %v8053_v53  ;;  %v3834_v53 = vld [vmem:[%s11295_s6 + $0x58] sm:$0xff] }
 0x54c   : > { %5704 = vmatpush2.bf16.msra.mxu0 %v8186_v18  ;;  %v8001_v17 = vcombine.high %v3834_v53, %v3838_v3  ;;  %v8000_v39 = vcombine.low %v3834_v53, %v3838_v3  ;;  %v3890_v18 = vld [vmem:[%s11295_s6 + $0x218] sm:$0xff]  ;;  %v4884_v53 = vld [vmem:[%s11296_s7 + $0x148] sm:$0xff] }
 0x54d   : > { %5705 = vmatprep.subr.bf16.mxu0 %v8179_v34  ;;  %v4904_v34 = vld [vmem:[%s11296_s7 + $0x1e8] sm:$0xff] }
 0x54e   : > { %4727 = vmatpush2.bf16.msra.mxu1 %v8052_v37  ;;  %v3830_v37 = vld [vmem:[%s11295_s6 + $0x38] sm:$0xff]  ;;  %v4888_v3 = vld [vmem:[%s11296_s7 + $0x168] sm:$0xff] }
 0x54f   : > { %4778 = vmatprep.subr.bf16.mxu1 %v8049_v1  ;;  %v7993_v41 = vcombine.high %v3826_v60, %v3830_v37  ;;  %v3946_v1 = vld [vmem:[%s11295_s6 + $0x3d8] sm:$0xff]  ;;  %v7992_v50 = vcombine.low %v3826_v60, %v3830_v37  ;;  %v4876_v60 = vld [vmem:[%s11296_s7 + $0x108] sm:$0xff] }
 0x550   : > { %5706 = vmatpush2.bf16.msra.mxu0 %v8178_v20  ;;  %v8113_v55 = vcombine.high %v3946_v1, %v3950_v46  ;;  %v8112_v61 = vcombine.low %v3946_v1, %v3950_v46  ;;  %v4892_v20 = vld [vmem:[%s11296_s7 + $0x188] sm:$0xff] }
 0x551   : > { %4729 = vmatmul.mubr.bf16.vlgmr.msra.gmra.mxu1 %v9641_v26  ;;  %5757 = vmatprep.subr.bf16.mxu0 %v8175_v48  ;;  %v4880_v37 = vld [vmem:[%s11296_s7 + $0x128] sm:$0xff] }
 0x552   : > { %4779 = vmatpush1.bf16.msra.mxu1 %v8048_v59  ;;  %4810 = vmatprep.mubr.bf16.mxu1 %v9639_v19  ;;  %v3942_v59 = vld [vmem:[%s11295_s6 + $0x3b8] sm:$0xff]  ;;  %v4868_v1 = vld [vmem:[%s11296_s7 + $0xc8] sm:$0xff] }
 0x553   : > { %4780 = vmatprep.subr.bf16.mxu1 %v8041_v16  ;;  %v8105_v63 = vcombine.high %v3938_v56, %v3942_v59  ;;  %v3930_v16 = vld [vmem:[%s11295_s6 + $0x358] sm:$0xff]  ;;  %v8104_v13 = vcombine.low %v3938_v56, %v3942_v59  ;;  %v4872_v46 = vld [vmem:[%s11296_s7 + $0xe8] sm:$0xff] }
 0x554   : > { %v8097_v32 = vcombine.high %v3930_v16, %v3934_v29  ;;  %v8096_v2 = vcombine.low %v3930_v16, %v3934_v29  ;;  %v4860_v56 = vld [vmem:[%s11296_s7 + $0x88] sm:$0xff] }
 0x555   : > { %v4864_v59 = vld [vmem:[%s11296_s7 + $0xa8] sm:$0xff] }
 0x556   : > { %4781 = vmatpush1.bf16.msra.mxu1 %v8040_v24  ;;  %v3926_v24 = vld [vmem:[%s11295_s6 + $0x338] sm:$0xff]  ;;  %v4852_v16 = vld [vmem:[%s11296_s7 + $0x48] sm:$0xff] }
 0x557   : > { %4782 = vmatprep.subr.bf16.mxu1 %v8033_v45  ;;  %v8089_v38 = vcombine.high %v3922_v36, %v3926_v24  ;;  %v3914_v45 = vld [vmem:[%s11295_s6 + $0x2d8] sm:$0xff]  ;;  %v8088_v42 = vcombine.low %v3922_v36, %v3926_v24  ;;  %v4856_v29 = vld [vmem:[%s11296_s7 + $0x68] sm:$0xff] }
 0x558   : > { %v8081_v0 = vcombine.high %v3914_v45, %v3918_v47  ;;  %v8080_v10 = vcombine.low %v3914_v45, %v3918_v47  ;;  %v4844_v36 = vld [vmem:[%s11296_s7 + $0x8] sm:$0xff] }
 0x559   : > { %v4848_v24 = vld [vmem:[%s11296_s7 + $0x28] sm:$0xff] }
 0x55a   : > { %4783 = vmatpush1.bf16.msra.mxu1 %v8032_v43  ;;  %v3910_v43 = vld [vmem:[%s11295_s6 + $0x2b8] sm:$0xff]  ;;  %v4964_v45 = vld [vmem:[%s11296_s7 + $0x3c8] sm:$0xff] }
 0x55b   : > { %4784 = vmatprep.subr.bf16.mxu1 %v8025_v57  ;;  %v8073_v14 = vcombine.high %v3906_v5, %v3910_v43  ;;  %v3898_v57 = vld [vmem:[%s11295_s6 + $0x258] sm:$0xff]  ;;  %v8072_v52 = vcombine.low %v3906_v5, %v3910_v43  ;;  %v4968_v47 = vld [vmem:[%s11296_s7 + $0x3e8] sm:$0xff] }
 0x55c   : > { %v8065_v15 = vcombine.high %v3898_v57, %v3902_v8  ;;  %v8064_v28 = vcombine.low %v3898_v57, %v3902_v8  ;;  %v4956_v5 = vld [vmem:[%s11296_s7 + $0x388] sm:$0xff] }
 0x55d   : > { %v4960_v43 = vld [vmem:[%s11296_s7 + $0x3a8] sm:$0xff] }
 0x55e   : > { %4785 = vmatpush1.bf16.msra.mxu1 %v8024_v22  ;;  %v3894_v22 = vld [vmem:[%s11295_s6 + $0x238] sm:$0xff]  ;;  %v4948_v57 = vld [vmem:[%s11296_s7 + $0x348] sm:$0xff] }
 0x55f   : > { %4786 = vmatprep.subr.bf16.mxu1 %v8017_v33  ;;  %v8057_v30 = vcombine.high %v3890_v18, %v3894_v22  ;;  %v4900_v33 = vld [vmem:[%s11296_s7 + $0x1c8] sm:$0xff]  ;;  %v8056_v27 = vcombine.low %v3890_v18, %v3894_v22 }
 0x560   : > { %v8173_v51 = vcombine.high %v4900_v33, %v4904_v34  ;;  %v4952_v8 = vld [vmem:[%s11296_s7 + $0x368] sm:$0xff] }
 0x561   : > { %v4940_v18 = vld [vmem:[%s11296_s7 + $0x308] sm:$0xff] }
 0x562   : > { %4787 = vmatpush1.bf16.msra.mxu1 %v8016_v25  ;;  %v4896_v25 = vld [vmem:[%s11296_s7 + $0x1a8] sm:$0xff] }
 0x563   : > { %4788 = vmatprep.subr.bf16.mxu1 %v8009_v35  ;;  %v8172_v35 = vcombine.low %v4900_v33, %v4904_v34  ;;  %v8165_v48 = vcombine.high %v4892_v20, %v4896_v25  ;;  %v4944_v22 = vld [vmem:[%s11296_s7 + $0x328] sm:$0xff] }
 0x564   : > { %v8213_v34 = vcombine.high %v4940_v18, %v4944_v22 }
 0x566   : > { %4789 = vmatpush1.bf16.msra.mxu1 %v8008_v58  ;;  %v8164_v58 = vcombine.low %v4892_v20, %v4896_v25  ;;  %v8212_v25 = vcombine.low %v4940_v18, %v4944_v22 }
 0x567   : > { %4790 = vmatprep.subr.bf16.mxu1 %v8001_v17  ;;  %v8157_v17 = vcombine.high %v4884_v53, %v4888_v3 }
 0x56a   : > { %4791 = vmatpush1.bf16.msra.mxu1 %v8000_v39  ;;  %v8156_v39 = vcombine.low %v4884_v53, %v4888_v3  ;;  %v4924_v53 = vld [vmem:[%s11296_s7 + $0x288] sm:$0xff] }
 0x56b   : > { %4792 = vmatprep.subr.bf16.mxu1 %v7993_v41  ;;  %v8149_v41 = vcombine.high %v4876_v60, %v4880_v37  ;;  %v4928_v3 = vld [vmem:[%s11296_s7 + $0x2a8] sm:$0xff] }
 0x56e   : > { %4793 = vmatpush1.bf16.msra.mxu1 %v7992_v50  ;;  %v8148_v50 = vcombine.low %v4876_v60, %v4880_v37 }
 0x56f   : > { %4794 = vmatprep.subr.bf16.mxu1 %v8113_v55  ;;  %v8141_v55 = vcombine.high %v4868_v1, %v4872_v46 }
 0x572   : > { %4795 = vmatpush2.bf16.msra.mxu1 %v8112_v61  ;;  %v8140_v61 = vcombine.low %v4868_v1, %v4872_v46  ;;  %v4920_v1 = vld [vmem:[%s11296_s7 + $0x268] sm:$0xff] }
 0x573   : > { %4796 = vmatprep.subr.bf16.mxu1 %v8105_v63  ;;  %v8133_v63 = vcombine.high %v4860_v56, %v4864_v59 }
 0x576   : > { %4797 = vmatpush2.bf16.msra.mxu1 %v8104_v13  ;;  %v8132_v13 = vcombine.low %v4860_v56, %v4864_v59  ;;  %v8196_v56 = vcombine.low %v4924_v53, %v4928_v3 }
 0x577   : > { %4798 = vmatprep.subr.bf16.mxu1 %v8097_v32  ;;  %v8125_v32 = vcombine.high %v4852_v16, %v4856_v29 }
 0x57a   : > { %4799 = vmatpush2.bf16.msra.mxu1 %v8096_v2  ;;  %v8124_v2 = vcombine.low %v4852_v16, %v4856_v29  ;;  %v4908_v16 = vld [vmem:[%s11296_s7 + $0x208] sm:$0xff] }
 0x57b   : > { %4800 = vmatprep.subr.bf16.mxu1 %v8089_v38  ;;  %v8117_v38 = vcombine.high %v4844_v36, %v4848_v24  ;;  %v4912_v29 = vld [vmem:[%s11296_s7 + $0x228] sm:$0xff] }
 0x57e   : > { %4801 = vmatpush2.bf16.msra.mxu1 %v8088_v42  ;;  %v8116_v42 = vcombine.low %v4844_v36, %v4848_v24 }
 0x57f   : > { %4802 = vmatprep.subr.bf16.mxu1 %v8081_v0  ;;  %v8237_v0 = vcombine.high %v4964_v45, %v4968_v47 }
 0x582   : > { %4803 = vmatpush2.bf16.msra.mxu1 %v8080_v10  ;;  %v8236_v10 = vcombine.low %v4964_v45, %v4968_v47 }
 0x583   : > { %4804 = vmatprep.subr.bf16.mxu1 %v8073_v14  ;;  %v8229_v14 = vcombine.high %v4956_v5, %v4960_v43 }
 0x586   : > { %4805 = vmatpush2.bf16.msra.mxu1 %v8072_v52  ;;  %v8228_v52 = vcombine.low %v4956_v5, %v4960_v43 }
 0x587   : > { %4806 = vmatprep.subr.bf16.mxu1 %v8065_v15  ;;  %v8221_v15 = vcombine.high %v4948_v57, %v4952_v8 }
 0x58a   : > { %4807 = vmatpush2.bf16.msra.mxu1 %v8064_v28 }
 0x58b   : > { %4808 = vmatprep.subr.bf16.mxu1 %v8057_v30  ;;  %v8220_v30 = vcombine.low %v4948_v57, %v4952_v8  ;;  %v10218_v57 = vld [vmem:[%s11296_s7 + $0x1d8] sm:$0xff] }
 0x58c   : > { %v10223_v8 = vld [vmem:[%s11296_s7 + $0x1f8] sm:$0xff] }
 0x58e   : > { %4809 = vmatpush2.bf16.msra.mxu1 %v8056_v27  ;;  %v4932_v27 = vld [vmem:[%s11296_s7 + $0x2c8] sm:$0xff] }
 0x58f   : > { %5716 = vmatprep.subr.bf16.mxu1 %v8173_v51  ;;  %v4936_v51 = vld [vmem:[%s11296_s7 + $0x2e8] sm:$0xff] }
 0x590   : > { %v8204_v60 = vcombine.low %v4932_v27, %v4936_v51 }
 0x591   : > { %4811 = vmatmul.mubr.bf16.vlgmr.msra.gmra.mxu1 %v9641_v26 }
 0x592   : > { %5717 = vmatpush1.bf16.msra.mxu1 %v8172_v35 }
 0x593   : > { %5718 = vmatprep.subr.bf16.mxu1 %v8165_v48  ;;  %v8205_v48 = vcombine.high %v4932_v27, %v4936_v51 }
 0x596   : > { %5719 = vmatpush1.bf16.msra.mxu1 %v8164_v58 }
 0x597   : > { %5720 = vmatprep.subr.bf16.mxu1 %v8157_v17  ;;  %v3781_v17 = vstv %s3780_s15 }
 0x598   : > { %vm10187_vm11 = vcmp.eq.s32.totalorder %v3781_v17, 1 }
 0x59a   : > { %5721 = vmatpush1.bf16.msra.mxu1 %v8156_v39  ;;  %v8197_v39 = vcombine.high %v4924_v53, %v4928_v3 }
 0x59b   : > { %5722 = vmatprep.subr.bf16.mxu1 %v8149_v41  ;;  %v4916_v41 = vld [vmem:[%s11296_s7 + $0x248] sm:$0xff] }
 0x59e   : > { %5723 = vmatpush1.bf16.msra.mxu1 %v8148_v50 }
 0x59f   : > { %5724 = vmatprep.subr.bf16.mxu1 %v8141_v55 }
 0x5a2   : > { %5725 = vmatpush1.bf16.msra.mxu1 %v8140_v61 }
 0x5a3   : > { %5726 = vmatprep.subr.bf16.mxu1 %v8133_v63  ;;  %v8189_v63 = vcombine.high %v4916_v41, %v4920_v1 }
 0x5a6   : > { %5727 = vmatpush1.bf16.msra.mxu1 %v8132_v13 }
 0x5a7   : > { %5728 = vmatprep.subr.bf16.mxu1 %v8125_v32 }
 0x5aa   : > { %5729 = vmatpush1.bf16.msra.mxu1 %v8124_v2 }
 0x5ab   : > { %5730 = vmatprep.subr.bf16.mxu1 %v8117_v38  ;;  %v8188_v38 = vcombine.low %v4916_v41, %v4920_v1 }
 0x5ae   : > { %5731 = vmatpush1.bf16.msra.mxu1 %v8116_v42 }
 0x5af   : > { %5732 = vmatprep.subr.bf16.mxu1 %v8237_v0  ;;  %v8181_v0 = vcombine.high %v4908_v16, %v4912_v29 }
 0x5b2   : > { %5733 = vmatpush2.bf16.msra.mxu1 %v8236_v10 }
 0x5b3   : > { %5734 = vmatprep.subr.bf16.mxu1 %v8229_v14 }
 0x5b5   : > { %v3263_v28 = vpop.f32.mrf.mxu1 }
 0x5b6   : > { %5735 = vmatpush2.bf16.msra.mxu1 %v8228_v52  ;;  %v3783_v24 = vsel %vm10187_vm11, %v3263_v28, 0.0  ;;  %v8180_v28 = vcombine.low %v4908_v16, %v4912_v29 }
 0x5b7   : > { %v3265_v33 = vpop.f32.mrf.mxu1  ;;  %5736 = vmatprep.subr.bf16.mxu1 %v8221_v15  ;;  %v4827_v52 = vpack.c.bf16 %v3783_v24, %v3783_v24 }
 0x5b8   : > { %v3784_v5 = vsel %vm10187_vm11, %v3265_v33, 0.0 }
 0x5b9   : > { %v3336_v20 = vpop.f32.mrf.mxu1  ;;  %v4828_v51 = vpack.c.bf16 %v3784_v5, %v3784_v5 }
 0x5ba   : > { %5737 = vmatpush2.bf16.msra.mxu1 %v8220_v30  ;;  %v3785_v55 = vsel %vm10187_vm11, %v3336_v20, 0.0 }
 0x5bb   : > { %v3338_v35 = vpop.f32.mrf.mxu1  ;;  %5738 = vmatprep.subr.bf16.mxu1 %v8213_v34  ;;  %v4829_v13 = vpack.c.bf16 %v3785_v55, %v3785_v55 }
 0x5bc   : > { %v3786_v59 = vsel %vm10187_vm11, %v3338_v35, 0.0 }
 0x5bd   : > { %v3409_v58 = vpop.f32.mrf.mxu1  ;;  %v4830_v2 = vpack.c.bf16 %v3786_v59, %v3786_v59  ;;  %v4989_v15 = vunpack.c.l.b16 %v4829_v13  ;;  %v4988_v59 = vunpack.c.l.b16 %v4828_v51 }
 0x5be   : > { %5739 = vmatpush2.bf16.msra.mxu1 %v8212_v25  ;;  %v3787_v32 = vsel %vm10187_vm11, %v3409_v58, 0.0 }
 0x5bf   : > { %v3411_v37 = vpop.f32.mrf.mxu1  ;;  %5740 = vmatprep.subr.bf16.mxu1 %v8205_v48  ;;  %v4831_v43 = vpack.c.bf16 %v3787_v32, %v3787_v32  ;;  %v4990_v30 = vunpack.c.l.b16 %v4830_v2  ;;  %v8177_v48 = vcombine.high %v10218_v57, %v10223_v8 }
 0x5c0   : > { %v3788_v45 = vsel %vm10187_vm11, %v3411_v37, 0.0  ;;  %v5003_v37 = vrot.slane %v4989_v15, 7 }
 0x5c1   : > { %v3482_v50 = vpop.f32.mrf.mxu1  ;;  %v4832_v33 = vpack.c.bf16 %v3788_v45, %v3788_v45  ;;  %v4991_v53 = vunpack.c.l.b16 %v4831_v43  ;;  %v5017_v1 = vrot.slane %v4990_v30, 7 }
 0x5c2   : > { %5741 = vmatpush2.bf16.msra.mxu1 %v8204_v60  ;;  %v3789_v47 = vsel %vm10187_vm11, %v3482_v50, 0.0  ;;  %v4987_v60 = vunpack.c.l.b16 %v4827_v52 }
 0x5c3   : > { %v3484_v61 = vpop.f32.mrf.mxu1  ;;  %5742 = vmatprep.subr.bf16.mxu1 %v8197_v39  ;;  %v4833_v34 = vpack.c.bf16 %v3789_v47, %v3789_v47  ;;  %v4992_v50 = vunpack.c.l.b16 %v4832_v33  ;;  %v5005_v13 = vrot.slane %v4991_v53, 6 }
 0x5c4   : > { %v3790_v10 = vsel %vm10187_vm11, %v3484_v61, 0.0  ;;  %v5004_v2 = vsel %vm1497_vm2, %v5003_v37, %v4987_v60 }
 0x5c5   : > { %v3555_v36 = vpop.f32.mrf.mxu1  ;;  %v4834_v20 = vpack.c.bf16 %v3790_v10, %v3790_v10  ;;  %v4993_v55 = vunpack.c.l.b16 %v4833_v34  ;;  %v5019_v5 = vrot.slane %v4992_v50, 6 }
 0x5c6   : > { %5743 = vmatpush2.bf16.msra.mxu1 %v8196_v56  ;;  %v3791_v14 = vsel %vm10187_vm11, %v3555_v36, 0.0 }
 0x5c7   : > { %v3557_v42 = vpop.f32.mrf.mxu1  ;;  %5744 = vmatprep.subr.bf16.mxu1 %v8189_v63  ;;  %v4835_v25 = vpack.c.bf16 %v3791_v14, %v3791_v14  ;;  %v4994_v61 = vunpack.c.l.b16 %v4834_v20  ;;  %v5007_v43 = vrot.slane %v4993_v55, 5 }
 0x5c8   : > { %v3792_v18 = vsel %vm10187_vm11, %v3557_v42, 0.0 }
 0x5c9   : > { %v3628_v22 = vpop.f32.mrf.mxu1  ;;  %v4836_v3 = vpack.c.bf16 %v3792_v18, %v3792_v18  ;;  %v4995_v63 = vunpack.c.l.b16 %v4835_v25  ;;  %v5021_v14 = vrot.slane %v4994_v61, 5  ;;  %v4897_v61 = vld [vmem:[%s11296_s7 + $0x1b0] sm:$0xff] }
 0x5ca   : > { %v3793_v27 = vsel %vm10187_vm11, %v3628_v22, 0.0  ;;  %5745 = vmatpush2.bf16.msra.mxu1 %v8188_v38 }
 0x5cb   : > { %v3630_v35 = vpop.f32.mrf.mxu1  ;;  %5746 = vmatprep.subr.bf16.mxu1 %v8181_v0  ;;  %v4837_v58 = vpack.c.bf16 %v3793_v27, %v3793_v27  ;;  %v4996_v32 = vunpack.c.l.b16 %v4836_v3  ;;  %v5018_v0 = vsel %vm1497_vm2, %v5017_v1, %v4988_v59  ;;  %v5009_v52 = vrot.slane %v4995_v63, 4  ;;  %v4894_v63 = vld [vmem:[%s11296_s7 + $0x198] sm:$0xff] }
 0x5cc   : > { %v3794_v17 = vsel %vm10187_vm11, %v3630_v35, 0.0  ;;  %v5020_v35 = vsel %vm1500_vm3, %v5019_v5, %v5018_v0  ;;  %v4877_v5 = vld [vmem:[%s11296_s7 + $0x110] sm:$0xff] }
 0x5cd   : > { %v4838_v39 = vpack.c.bf16 %v3794_v17, %v3794_v17  ;;  %v3701_v41 = vpop.f32.mrf.mxu1  ;;  %v4997_v36 = vunpack.c.l.b16 %v4837_v58  ;;  %v5023_v30 = vrot.slane %v4996_v32, 4  ;;  %v5022_v3 = vsel %vm1503_vm4, %v5021_v14, %v5020_v35  ;;  %v4866_v35 = vld [vmem:[%s11296_s7 + $0xb8] sm:$0xff] }
 0x5ce   : > { %v3795_v56 = vsel %vm10187_vm11, %v3701_v41, 0.0  ;;  %5747 = vmatpush2.bf16.msra.mxu1 %v8180_v28  ;;  %v5006_v28 = vsel %vm1500_vm3, %v5005_v13, %v5004_v2  ;;  %v8176_v13 = vcombine.low %v10218_v57, %v10223_v8  ;;  %v4886_v57 = vld [vmem:[%s11296_s7 + $0x158] sm:$0xff]  ;;  %v8151_v14 = vcombine.high %v4877_v5, %v4881_v31 }
 0x5cf   : > { %v4839_v16 = vpack.c.bf16 %v3795_v56, %v3795_v56  ;;  %v3703_v29 = vpop.f32.mrf.mxu1  ;;  %5798 = vmatprep.subr.bf16.mxu1 %v8177_v48  ;;  %v4998_v38 = vunpack.c.l.b16 %v4838_v39  ;;  %v5011_v33 = vrot.slane %v4997_v36, 3  ;;  %v5008_v48 = vsel %vm1503_vm4, %v5007_v43, %v5006_v28  ;;  %v4893_v56 = vld [vmem:[%s11296_s7 + $0x190] sm:$0xff]  ;;  %v4890_v8 = vld [vmem:[%s11296_s7 + $0x178] sm:$0xff] }
 0x5d0   : > { %v3796_v24 = vsel %vm10187_vm11, %v3703_v29, 0.0  ;;  %v5010_v58 = vsel %vm1506_vm5, %v5009_v52, %v5008_v48  ;;  %v5024_v37 = vsel %vm1506_vm5, %v5023_v30, %v5022_v3  ;;  %v4885_v36 = vld [vmem:[%s11296_s7 + $0x150] sm:$0xff]  ;;  %v8161_v0 = vcombine.high %v4886_v57, %v4890_v8  ;;  %v4874_v28 = vld [vmem:[%s11296_s7 + $0xf8] sm:$0xff] }
 0x5d1   : > { %v4999_v45 = vunpack.c.l.b16 %v4839_v16  ;;  %v4840_v47 = vpack.c.bf16 %v3796_v24, %v3796_v24  ;;  %v3774_v42 = vpop.f32.mrf.mxu1  ;;  %v5025_v27 = vrot.slane %v4998_v38, 3  ;;  %v5012_v46 = vsel %vm1509_vm6, %v5011_v33, %v5010_v58  ;;  %v4898_v16 = vld [vmem:[%s11296_s7 + $0x1b8] sm:$0xff]  ;;  %v4889_v38 = vld [vmem:[%s11296_s7 + $0x170] sm:$0xff] }
 0x5d2   : > { %v3797_v10 = vsel %vm10187_vm11, %v3774_v42, 0.0  ;;  %v8167_v24 = vcombine.high %v4893_v56, %v4897_v61  ;;  %v8169_v2 = vcombine.high %v4894_v63, %v4898_v16  ;;  %v8159_v42 = vcombine.high %v4885_v36, %v4889_v38 }
 0x5d3   : > { %v5000_v15 = vunpack.c.l.b16 %v4840_v47  ;;  %v4841_v18 = vpack.c.bf16 %v3797_v10, %v3797_v10  ;;  %v3776_v22 = vpop.f32.mrf.mxu1  ;;  %v5013_v51 = vrot.slane %v4999_v45, 2  ;;  %v5026_v39 = vsel %vm1509_vm6, %v5025_v27, %v5024_v37  ;;  %v4854_v37 = vld [vmem:[%s11296_s7 + $0x58] sm:$0xff] }
 0x5d4   : > { %v3798_v34 = vsel %vm10187_vm11, %v3776_v22, 0.0  ;;  %v8166_v45 = vcombine.low %v4893_v56, %v4897_v61  ;;  %v8168_v47 = vcombine.low %v4894_v63, %v4898_v16  ;;  %v8158_v43 = vcombine.low %v4885_v36, %v4889_v38  ;;  %v4870_v22 = vld [vmem:[%s11296_s7 + $0xd8] sm:$0xff]  ;;  %v4849_v56 = vld [vmem:[%s11296_s7 + $0x30] sm:$0xff] }
 0x5d5   : > { %v5001_v20 = vunpack.c.l.b16 %v4841_v18  ;;  %v4842_v25 = vpack.c.bf16 %v3798_v34, %v3798_v34  ;;  %v5027_v53 = vrot.slane %v5000_v15, 2  ;;  %v5014_v41 = vsel %vm1512_vm7, %v5013_v51, %v5012_v46  ;;  %v4869_v15 = vld [vmem:[%s11296_s7 + $0xd0] sm:$0xff]  ;;  %v4858_v46 = vld [vmem:[%s11296_s7 + $0x78] sm:$0xff] }
 0x5d6   : > { %v8160_v10 = vcombine.low %v4886_v57, %v4890_v8  ;;  %v4873_v18 = vld [vmem:[%s11296_s7 + $0xf0] sm:$0xff]  ;;  %v8150_v30 = vcombine.low %v4877_v5, %v4881_v31  ;;  %v8145_v27 = vcombine.high %v4870_v22, %v4874_v28  ;;  %v4850_v61 = vld [vmem:[%s11296_s7 + $0x38] sm:$0xff]  ;;  %v8128_v16 = vcombine.low %v4854_v37, %v4858_v46 }
 0x5d7   : > { %v5015_v17 = vrot.slane %v5001_v20, 1  ;;  %v5002_v60 = vunpack.c.l.b16 %v4842_v25  ;;  %v5028_v50 = vsel %vm1512_vm7, %v5027_v53, %v5026_v39  ;;  %v8143_v34 = vcombine.high %v4869_v15, %v4873_v18  ;;  %v4861_v51 = vld [vmem:[%s11296_s7 + $0x90] sm:$0xff]  ;;  %v4862_v25 = vld [vmem:[%s11296_s7 + $0x98] sm:$0xff] }
 0x5d8   : > { %v4865_v20 = vld [vmem:[%s11296_s7 + $0xb0] sm:$0xff]  ;;  %v8142_v48 = vcombine.low %v4869_v15, %v4873_v18  ;;  %v8144_v53 = vcombine.low %v4870_v22, %v4874_v28  ;;  %v8137_v58 = vcombine.high %v4862_v25, %v4866_v35  ;;  %v4966_v38 = vld [vmem:[%s11296_s7 + $0x3d8] sm:$0xff] }
 0x5d9   : > { %v5029_v1 = vrot.slane %v5002_v60, 1  ;;  %v5016_v55 = vsel %vm1515_vm8, %v5015_v17, %v5014_v41  ;;  %v8135_v3 = vcombine.high %v4861_v51, %v4865_v20  ;;  %v4853_v17 = vld [vmem:[%s11296_s7 + $0x50] sm:$0xff]  ;;  %v8134_v39 = vcombine.low %v4861_v51, %v4865_v20  ;;  %v4970_v57 = vld [vmem:[%s11296_s7 + $0x3f8] sm:$0xff] }
 0x5da   : > { %v10271_v32 = vpack.c.b16 %v5016_v55, %v5016_v55  ;;  %v4857_v60 = vld [vmem:[%s11296_s7 + $0x70] sm:$0xff]  ;;  %v8136_v41 = vcombine.low %v4862_v25, %v4866_v35  ;;  %v4958_v31 = vld [vmem:[%s11296_s7 + $0x398] sm:$0xff] }
 0x5db   : > { %v5030_v59 = vsel %vm1515_vm8, %v5029_v1, %v5028_v50  ;;  %v8127_v1 = vcombine.high %v4853_v17, %v4857_v60  ;;  %v8129_v50 = vcombine.high %v4854_v37, %v4858_v46  ;;  %v4845_v55 = vld [vmem:[%s11296_s7 + $0x10] sm:$0xff]  ;;  %v8126_v63 = vcombine.low %v4853_v17, %v4857_v60  ;;  %v4950_v18 = vld [vmem:[%s11296_s7 + $0x358] sm:$0xff] }
 0x5dc   : > { %v10267_v29 = vpack.c.b16 %v5030_v59, %v5030_v59  ;;  %v4846_v59 = vld [vmem:[%s11296_s7 + $0x18] sm:$0xff]  ;;  %v8118_v8 = vcombine.low %v4845_v55, %v4849_v56  ;;  %v4961_v5 = vld [vmem:[%s11296_s7 + $0x3b0] sm:$0xff] }
 0x5dd   : > { %v8121_v36 = vcombine.high %v4846_v59, %v4850_v61  ;;  %v4953_v15 = vld [vmem:[%s11296_s7 + $0x370] sm:$0xff]  ;;  %v4954_v22 = vld [vmem:[%s11296_s7 + $0x378] sm:$0xff] }
 0x5de   : > { %5707 = vmatprep.mubr.bf16.mxu0 %v10267_v29  ;;  %5748 = vmatprep.mubr.bf16.mxu1 %v10267_v29  ;;  %v4945_v51 = vld [vmem:[%s11296_s7 + $0x330] sm:$0xff]  ;;  %v4942_v20 = vld [vmem:[%s11296_s7 + $0x318] sm:$0xff] }
 0x5df   : > { %5708 = vmatmul.mubr.bf16.vlgmr.msra.gmra.mxu0 %v10271_v32  ;;  %5749 = vmatmul.mubr.bf16.vlgmr.msra.gmra.mxu1 %v10271_v32  ;;  %v4946_v25 = vld [vmem:[%s11296_s7 + $0x338] sm:$0xff]  ;;  %v4937_v17 = vld [vmem:[%s11296_s7 + $0x2f0] sm:$0xff] }
 0x5e0   : > { %5758 = vmatpush1.bf16.msra.mxu0 %v8174_v44  ;;  %5799 = vmatpush1.bf16.msra.mxu1 %v8176_v13  ;;  %v4882_v44 = vld [vmem:[%s11296_s7 + $0x138] sm:$0xff]  ;;  %v8119_v13 = vcombine.high %v4845_v55, %v4849_v56  ;;  %v4929_v55 = vld [vmem:[%s11296_s7 + $0x2b0] sm:$0xff] }
 0x5e1   : > { %5789 = vmatprep.mubr.bf16.mxu0 %v10267_v29  ;;  %5830 = vmatprep.mubr.bf16.mxu1 %v10267_v29  ;;  %v8153_v52 = vcombine.high %v4878_v7, %v4882_v44  ;;  %v8152_v33 = vcombine.low %v4878_v7, %v4882_v44  ;;  %v4962_v7 = vld [vmem:[%s11296_s7 + $0x3b8] sm:$0xff] }
 0x5e2   : > { %5759 = vmatprep.subr.bf16.mxu0 %v8167_v24  ;;  %5800 = vmatprep.subr.bf16.mxu1 %v8169_v2  ;;  %v4965_v24 = vld [vmem:[%s11296_s7 + $0x3d0] sm:$0xff]  ;;  %v4934_v60 = vld [vmem:[%s11296_s7 + $0x2d8] sm:$0xff] }
 0x5e3   : > { %v4969_v2 = vld [vmem:[%s11296_s7 + $0x3f0] sm:$0xff]  ;;  %v4938_v37 = vld [vmem:[%s11296_s7 + $0x2f8] sm:$0xff] }
 0x5e4   : > { %5760 = vmatpush1.bf16.msra.mxu0 %v8166_v45  ;;  %5801 = vmatpush1.bf16.msra.mxu1 %v8168_v47  ;;  %v8120_v45 = vcombine.low %v4846_v59, %v4850_v61  ;;  %v8239_v47 = vcombine.high %v4965_v24, %v4969_v2  ;;  %v8238_v44 = vcombine.low %v4965_v24, %v4969_v2  ;;  %v4926_v56 = vld [vmem:[%s11296_s7 + $0x298] sm:$0xff]  ;;  %v4921_v24 = vld [vmem:[%s11296_s7 + $0x270] sm:$0xff] }
 0x5e5   : > { %5761 = vmatprep.subr.bf16.mxu0 %v8159_v42  ;;  %5802 = vmatprep.subr.bf16.mxu1 %v8161_v0  ;;  %v8241_v42 = vcombine.high %v4966_v38, %v4970_v57  ;;  %v4957_v0 = vld [vmem:[%s11296_s7 + $0x390] sm:$0xff]  ;;  %v4930_v59 = vld [vmem:[%s11296_s7 + $0x2b8] sm:$0xff] }
 0x5e6   : > { %v8230_v28 = vcombine.low %v4957_v0, %v4961_v5  ;;  %v4918_v2 = vld [vmem:[%s11296_s7 + $0x258] sm:$0xff] }
 0x5e8   : > { %5762 = vmatpush1.bf16.msra.mxu0 %v8158_v43  ;;  %5803 = vmatpush1.bf16.msra.mxu1 %v8160_v10  ;;  %v8240_v43 = vcombine.low %v4966_v38, %v4970_v57  ;;  %v8231_v10 = vcombine.high %v4957_v0, %v4961_v5  ;;  %v4922_v38 = vld [vmem:[%s11296_s7 + $0x278] sm:$0xff]  ;;  %v4909_v0 = vld [vmem:[%s11296_s7 + $0x210] sm:$0xff] }
 0x5e9   : > { %5763 = vmatprep.subr.bf16.mxu0 %v8151_v14  ;;  %5804 = vmatprep.subr.bf16.mxu1 %v8153_v52  ;;  %v8233_v14 = vcombine.high %v4958_v31, %v4962_v7  ;;  %v4949_v52 = vld [vmem:[%s11296_s7 + $0x350] sm:$0xff] }
 0x5ea   : > { %v8222_v35 = vcombine.low %v4949_v52, %v4953_v15  ;;  %v4913_v5 = vld [vmem:[%s11296_s7 + $0x230] sm:$0xff] }
 0x5ec   : > { %5764 = vmatpush1.bf16.msra.mxu0 %v8150_v30  ;;  %5805 = vmatpush1.bf16.msra.mxu1 %v8152_v33  ;;  %v8232_v30 = vcombine.low %v4958_v31, %v4962_v7  ;;  %v8223_v33 = vcombine.high %v4949_v52, %v4953_v15  ;;  %v4910_v31 = vld [vmem:[%s11296_s7 + $0x218] sm:$0xff]  ;;  %v8183_v52 = vcombine.high %v4909_v0, %v4913_v5 }
 0x5ed   : > { %5765 = vmatprep.subr.bf16.mxu0 %v8143_v34  ;;  %5806 = vmatprep.subr.bf16.mxu1 %v8145_v27  ;;  %v8225_v34 = vcombine.high %v4950_v18, %v4954_v22  ;;  %v4941_v27 = vld [vmem:[%s11296_s7 + $0x310] sm:$0xff]  ;;  %v4914_v7 = vld [vmem:[%s11296_s7 + $0x238] sm:$0xff] }
 0x5ee   : > { %v8214_v46 = vcombine.low %v4941_v27, %v4945_v51  ;;  %v8185_v15 = vcombine.high %v4910_v31, %v4914_v7 }
 0x5f0   : > { %5766 = vmatpush1.bf16.msra.mxu0 %v8142_v48  ;;  %5807 = vmatpush1.bf16.msra.mxu1 %v8144_v53  ;;  %v8224_v48 = vcombine.low %v4950_v18, %v4954_v22  ;;  %v8215_v53 = vcombine.high %v4941_v27, %v4945_v51  ;;  %v5903_v18 = vld [vmem:[%s11297_s8 + $0x1c0] sm:$0xff]  ;;  %v8184_v27 = vcombine.low %v4910_v31, %v4914_v7 }
 0x5f1   : > { %5767 = vmatprep.subr.bf16.mxu0 %v8135_v3  ;;  %5808 = vmatprep.subr.bf16.mxu1 %v8137_v58  ;;  %v8217_v3 = vcombine.high %v4942_v20, %v4946_v25  ;;  %v4933_v58 = vld [vmem:[%s11296_s7 + $0x2d0] sm:$0xff]  ;;  %v5907_v22 = vld [vmem:[%s11297_s8 + $0x1e0] sm:$0xff] }
 0x5f2   : > { %v8206_v61 = vcombine.low %v4933_v58, %v4937_v17  ;;  %v8299_v51 = vcombine.high %v5903_v18, %v5907_v22  ;;  %v5863_v7 = vld [vmem:[%s11297_s8 + $0x80] sm:$0xff] }
 0x5f4   : > { %5768 = vmatpush1.bf16.msra.mxu0 %v8134_v39  ;;  %5809 = vmatpush1.bf16.msra.mxu1 %v8136_v41  ;;  %v8216_v39 = vcombine.low %v4942_v20, %v4946_v25  ;;  %v8207_v41 = vcombine.high %v4933_v58, %v4937_v17  ;;  %v5895_v25 = vld [vmem:[%s11297_s8 + $0x180] sm:$0xff] }
 0x5f5   : > { %5769 = vmatprep.subr.bf16.mxu0 %v8127_v1  ;;  %5810 = vmatprep.subr.bf16.mxu1 %v8129_v50  ;;  %v8209_v1 = vcombine.high %v4934_v60, %v4938_v37  ;;  %v4925_v50 = vld [vmem:[%s11296_s7 + $0x290] sm:$0xff] }
 0x5f6   : > { %v8198_v57 = vcombine.low %v4925_v50, %v4929_v55 }
 0x5f8   : > { %5770 = vmatpush1.bf16.msra.mxu0 %v8126_v63  ;;  %5811 = vmatpush1.bf16.msra.mxu1 %v8128_v16  ;;  %v8208_v63 = vcombine.low %v4934_v60, %v4938_v37  ;;  %v8199_v16 = vcombine.high %v4925_v50, %v4929_v55  ;;  %v5887_v37 = vld [vmem:[%s11297_s8 + $0x140] sm:$0xff] }
 0x5f9   : > { %5771 = vmatprep.subr.bf16.mxu0 %v8119_v13  ;;  %5812 = vmatprep.subr.bf16.mxu1 %v8121_v36  ;;  %v8201_v13 = vcombine.high %v4926_v56, %v4930_v59  ;;  %v4917_v36 = vld [vmem:[%s11296_s7 + $0x250] sm:$0xff] }
 0x5fc   : > { %5772 = vmatpush1.bf16.msra.mxu0 %v8118_v8  ;;  %5813 = vmatpush1.bf16.msra.mxu1 %v8120_v45  ;;  %v8200_v8 = vcombine.low %v4926_v56, %v4930_v59  ;;  %v5879_v59 = vld [vmem:[%s11297_s8 + $0x100] sm:$0xff] }
 0x5fd   : > { %5773 = vmatprep.subr.bf16.mxu0 %v8239_v47  ;;  %5814 = vmatprep.subr.bf16.mxu1 %v8241_v42  ;;  %v8191_v47 = vcombine.high %v4917_v36, %v4921_v24  ;;  %v8193_v42 = vcombine.high %v4918_v2, %v4922_v38 }
 0x600   : > { %5774 = vmatpush2.bf16.msra.mxu0 %v8238_v44  ;;  %5815 = vmatpush2.bf16.msra.mxu1 %v8240_v43  ;;  %v8190_v43 = vcombine.low %v4917_v36, %v4921_v24 }
 0x601   : > { %5775 = vmatprep.subr.bf16.mxu0 %v8231_v10  ;;  %5816 = vmatprep.subr.bf16.mxu1 %v8233_v14  ;;  %v8192_v10 = vcombine.low %v4918_v2, %v4922_v38  ;;  %v5871_v38 = vld [vmem:[%s11297_s8 + $0xc0] sm:$0xff] }
 0x604   : > { %5776 = vmatpush2.bf16.msra.mxu0 %v8230_v28  ;;  %5817 = vmatpush2.bf16.msra.mxu1 %v8232_v30  ;;  %v5904_v28 = vld [vmem:[%s11297_s8 + $0x1c8] sm:$0xff] }
 0x605   : > { %5777 = vmatprep.subr.bf16.mxu0 %v8223_v33  ;;  %5818 = vmatprep.subr.bf16.mxu1 %v8225_v34  ;;  %v5908_v30 = vld [vmem:[%s11297_s8 + $0x1e8] sm:$0xff]  ;;  %v8182_v34 = vcombine.low %v4909_v0, %v4913_v5 }
 0x606   : > { %v8301_v20 = vcombine.high %v5904_v28, %v5908_v30  ;;  %v8300_v58 = vcombine.low %v5904_v28, %v5908_v30  ;;  %v5855_v28 = vld [vmem:[%s11297_s8 + $0x40] sm:$0xff] }
 0x607   : > { %v5859_v30 = vld [vmem:[%s11297_s8 + $0x60] sm:$0xff] }
 0x608   : > { %5778 = vmatpush2.bf16.msra.mxu0 %v8222_v35  ;;  %5819 = vmatpush2.bf16.msra.mxu1 %v8224_v48  ;;  %v5899_v35 = vld [vmem:[%s11297_s8 + $0x1a0] sm:$0xff]  ;;  %v5896_v48 = vld [vmem:[%s11297_s8 + $0x188] sm:$0xff] }
 0x609   : > { %5779 = vmatprep.subr.bf16.mxu0 %v8215_v53  ;;  %5820 = vmatprep.subr.bf16.mxu1 %v8217_v3  ;;  %v5900_v53 = vld [vmem:[%s11297_s8 + $0x1a8] sm:$0xff]  ;;  %v8298_v3 = vcombine.low %v5903_v18, %v5907_v22  ;;  %v8291_v17 = vcombine.high %v5895_v25, %v5899_v35 }
 0x60a   : > { %v8293_v60 = vcombine.high %v5896_v48, %v5900_v53  ;;  %v8292_v50 = vcombine.low %v5896_v48, %v5900_v53  ;;  %v5851_v48 = vld [vmem:[%s11297_s8 + $0x20] sm:$0xff]  ;;  %v5848_v53 = vld [vmem:[%s11297_s8 + $0x8] sm:$0xff] }
 0x60c   : > { %5780 = vmatpush2.bf16.msra.mxu0 %v8214_v46  ;;  %5821 = vmatpush2.bf16.msra.mxu1 %v8216_v39  ;;  %v5891_v46 = vld [vmem:[%s11297_s8 + $0x160] sm:$0xff]  ;;  %v5888_v39 = vld [vmem:[%s11297_s8 + $0x148] sm:$0xff] }
 0x60d   : > { %5781 = vmatprep.subr.bf16.mxu0 %v8207_v41  ;;  %5822 = vmatprep.subr.bf16.mxu1 %v8209_v1  ;;  %v5892_v41 = vld [vmem:[%s11297_s8 + $0x168] sm:$0xff]  ;;  %v8290_v1 = vcombine.low %v5895_v25, %v5899_v35  ;;  %v8283_v55 = vcombine.high %v5887_v37, %v5891_v46  ;;  %v5847_v35 = vld [vmem:[%s11297_s8] sm:$0xff] }
 0x60e   : > { %v8285_v56 = vcombine.high %v5888_v39, %v5892_v41  ;;  %v8284_v36 = vcombine.low %v5888_v39, %v5892_v41  ;;  %v5971_v39 = vld [vmem:[%s11297_s8 + $0x3e0] sm:$0xff]  ;;  %v5968_v41 = vld [vmem:[%s11297_s8 + $0x3c8] sm:$0xff] }
 0x610   : > { %5782 = vmatpush2.bf16.msra.mxu0 %v8206_v61  ;;  %5823 = vmatpush2.bf16.msra.mxu1 %v8208_v63  ;;  %v5883_v61 = vld [vmem:[%s11297_s8 + $0x120] sm:$0xff]  ;;  %v5880_v63 = vld [vmem:[%s11297_s8 + $0x108] sm:$0xff] }
 0x611   : > { %v10438_v45 = vpop.f32.mrf.mxu1  ;;  %5783 = vmatprep.subr.bf16.mxu0 %v8199_v16  ;;  %5824 = vmatprep.subr.bf16.mxu1 %v8201_v13  ;;  %v5884_v16 = vld [vmem:[%s11297_s8 + $0x128] sm:$0xff]  ;;  %v8282_v13 = vcombine.low %v5887_v37, %v5891_v46  ;;  %v8275_v24 = vcombine.high %v5879_v59, %v5883_v61  ;;  %v5967_v46 = vld [vmem:[%s11297_s8 + $0x3c0] sm:$0xff] }
 0x612   : > { %v8277_v2 = vcombine.high %v5880_v63, %v5884_v16  ;;  %v8276_v0 = vcombine.low %v5880_v63, %v5884_v16  ;;  %v5963_v63 = vld [vmem:[%s11297_s8 + $0x3a0] sm:$0xff]  ;;  %v5960_v16 = vld [vmem:[%s11297_s8 + $0x388] sm:$0xff] }
 0x613   : > { %v10452_v44 = vpop.f32.mrf.mxu1 }
 0x614   : > { %5784 = vmatpush2.bf16.msra.mxu0 %v8198_v57  ;;  %5825 = vmatpush2.bf16.msra.mxu1 %v8200_v8  ;;  %v5875_v57 = vld [vmem:[%s11297_s8 + $0xe0] sm:$0xff]  ;;  %v5872_v8 = vld [vmem:[%s11297_s8 + $0xc8] sm:$0xff] }
 0x615   : > { %v4734_v14 = vpop.f32.mrf.mxu1  ;;  %5785 = vmatprep.subr.bf16.mxu0 %v8191_v47  ;;  %5826 = vmatprep.subr.bf16.mxu1 %v8193_v42  ;;  %v5876_v47 = vld [vmem:[%s11297_s8 + $0xe8] sm:$0xff]  ;;  %v8274_v42 = vcombine.low %v5879_v59, %v5883_v61  ;;  %v8267_v5 = vcombine.high %v5871_v38, %v5875_v57  ;;  %v5959_v61 = vld [vmem:[%s11297_s8 + $0x380] sm:$0xff] }
 0x616   : > { %v8269_v31 = vcombine.high %v5872_v8, %v5876_v47  ;;  %v5868_v14 = vld [vmem:[%s11297_s8 + $0xa8] sm:$0xff] }
 0x617   : > { %v4735_v33 = vpop.f32.mrf.mxu1 }
 0x618   : > { %5786 = vmatpush2.bf16.msra.mxu0 %v8190_v43  ;;  %5827 = vmatpush2.bf16.msra.mxu1 %v8192_v10  ;;  %v5867_v43 = vld [vmem:[%s11297_s8 + $0xa0] sm:$0xff]  ;;  %v5864_v10 = vld [vmem:[%s11297_s8 + $0x88] sm:$0xff] }
 0x619   : > { %5787 = vmatprep.subr.bf16.mxu0 %v8183_v52  ;;  %5828 = vmatprep.subr.bf16.mxu1 %v8185_v15  ;;  %v8266_v52 = vcombine.low %v5871_v38, %v5875_v57  ;;  %v8268_v15 = vcombine.low %v5872_v8, %v5876_v47  ;;  %v8259_v18 = vcombine.high %v5863_v7, %v5867_v43  ;;  %v5856_v33 = vld [vmem:[%s11297_s8 + $0x48] sm:$0xff]  ;;  %v5951_v57 = vld [vmem:[%s11297_s8 + $0x340] sm:$0xff] }
 0x61a   : > { %v8261_v22 = vcombine.high %v5864_v10, %v5868_v14  ;;  %v5955_v8 = vld [vmem:[%s11297_s8 + $0x360] sm:$0xff]  ;;  %v5952_v47 = vld [vmem:[%s11297_s8 + $0x348] sm:$0xff] }
 0x61c   : > { %5788 = vmatpush2.bf16.msra.mxu0 %v8182_v34  ;;  %5829 = vmatpush2.bf16.msra.mxu1 %v8184_v27  ;;  %v5860_v34 = vld [vmem:[%s11297_s8 + $0x68] sm:$0xff]  ;;  %v8258_v27 = vcombine.low %v5863_v7, %v5867_v43  ;;  %v5943_v43 = vld [vmem:[%s11297_s8 + $0x300] sm:$0xff] }
 0x61d   : > { %6615 = vmatprep.subr.bf16.mxu0 %v8299_v51  ;;  %6656 = vmatprep.subr.bf16.mxu1 %v8301_v20  ;;  %v8260_v51 = vcombine.low %v5864_v10, %v5868_v14  ;;  %v8251_v20 = vcombine.high %v5855_v28, %v5859_v30  ;;  %v8253_v25 = vcombine.high %v5856_v33, %v5860_v34  ;;  %v5947_v10 = vld [vmem:[%s11297_s8 + $0x320] sm:$0xff]  ;;  %v5944_v14 = vld [vmem:[%s11297_s8 + $0x308] sm:$0xff] }
 0x61f   : > { %5790 = vmatmul.mubr.bf16.vlgmr.msra.gmra.mxu0 %v10271_v32  ;;  %5831 = vmatmul.mubr.bf16.vlgmr.msra.gmra.mxu1 %v10271_v32 }
 0x620   : > { %6616 = vmatpush1.bf16.msra.mxu0 %v8298_v3  ;;  %6657 = vmatpush1.bf16.msra.mxu1 %v8300_v58  ;;  %v5852_v3 = vld [vmem:[%s11297_s8 + $0x28] sm:$0xff]  ;;  %v8250_v58 = vcombine.low %v5855_v28, %v5859_v30  ;;  %v5935_v30 = vld [vmem:[%s11297_s8 + $0x2c0] sm:$0xff] }
 0x621   : > { %6617 = vmatprep.subr.bf16.mxu0 %v8291_v17  ;;  %6658 = vmatprep.subr.bf16.mxu1 %v8293_v60  ;;  %v8252_v17 = vcombine.low %v5856_v33, %v5860_v34  ;;  %v8243_v60 = vcombine.high %v5847_v35, %v5851_v48  ;;  %v8245_v37 = vcombine.high %v5848_v53, %v5852_v3  ;;  %v5939_v33 = vld [vmem:[%s11297_s8 + $0x2e0] sm:$0xff]  ;;  %v5936_v34 = vld [vmem:[%s11297_s8 + $0x2c8] sm:$0xff] }
 0x622   : > { %6647 = vmatprep.mubr.bf16.mxu0 %v9048_v21  ;;  %6688 = vmatprep.mubr.bf16.mxu1 %v9048_v21 }
 0x624   : > { %6618 = vmatpush1.bf16.msra.mxu0 %v8290_v1  ;;  %6659 = vmatpush1.bf16.msra.mxu1 %v8292_v50  ;;  %v5972_v1 = vld [vmem:[%s11297_s8 + $0x3e8] sm:$0xff]  ;;  %v8242_v50 = vcombine.low %v5847_v35, %v5851_v48  ;;  %v5927_v48 = vld [vmem:[%s11297_s8 + $0x280] sm:$0xff] }
 0x625   : > { %6619 = vmatprep.subr.bf16.mxu0 %v8283_v55  ;;  %6660 = vmatprep.subr.bf16.mxu1 %v8285_v56  ;;  %v8244_v55 = vcombine.low %v5848_v53, %v5852_v3  ;;  %v8363_v56 = vcombine.high %v5967_v46, %v5971_v39  ;;  %v8365_v59 = vcombine.high %v5968_v41, %v5972_v1  ;;  %v5931_v53 = vld [vmem:[%s11297_s8 + $0x2a0] sm:$0xff]  ;;  %v5928_v3 = vld [vmem:[%s11297_s8 + $0x288] sm:$0xff] }
 0x628   : > { %6620 = vmatpush1.bf16.msra.mxu0 %v8282_v13  ;;  %6661 = vmatpush1.bf16.msra.mxu1 %v8284_v36  ;;  %v5964_v13 = vld [vmem:[%s11297_s8 + $0x3a8] sm:$0xff]  ;;  %v8362_v36 = vcombine.low %v5967_v46, %v5971_v39  ;;  %v5919_v39 = vld [vmem:[%s11297_s8 + $0x240] sm:$0xff] }
 0x629   : > { %6621 = vmatprep.subr.bf16.mxu0 %v8275_v24  ;;  %6662 = vmatprep.subr.bf16.mxu1 %v8277_v2  ;;  %v8364_v24 = vcombine.low %v5968_v41, %v5972_v1  ;;  %v8355_v2 = vcombine.high %v5959_v61, %v5963_v63  ;;  %v8357_v38 = vcombine.high %v5960_v16, %v5964_v13  ;;  %v5923_v41 = vld [vmem:[%s11297_s8 + $0x260] sm:$0xff]  ;;  %v5920_v1 = vld [vmem:[%s11297_s8 + $0x248] sm:$0xff] }
 0x62c   : > { %6622 = vmatpush1.bf16.msra.mxu0 %v8274_v42  ;;  %6663 = vmatpush1.bf16.msra.mxu1 %v8276_v0  ;;  %v5956_v42 = vld [vmem:[%s11297_s8 + $0x368] sm:$0xff]  ;;  %v8354_v0 = vcombine.low %v5959_v61, %v5963_v63  ;;  %v8315_v61 = vcombine.high %v5919_v39, %v5923_v41 }
 0x62d   : > { %6623 = vmatprep.subr.bf16.mxu0 %v8267_v5  ;;  %6664 = vmatprep.subr.bf16.mxu1 %v8269_v31  ;;  %v8356_v5 = vcombine.low %v5960_v16, %v5964_v13  ;;  %v8347_v31 = vcombine.high %v5951_v57, %v5955_v8  ;;  %v8349_v7 = vcombine.high %v5952_v47, %v5956_v42  ;;  %v5911_v16 = vld [vmem:[%s11297_s8 + $0x200] sm:$0xff] }
 0x62e   : > { %v5915_v13 = vld [vmem:[%s11297_s8 + $0x220] sm:$0xff] }
 0x630   : > { %6624 = vmatpush1.bf16.msra.mxu0 %v8266_v52  ;;  %6665 = vmatpush1.bf16.msra.mxu1 %v8268_v15  ;;  %v5948_v52 = vld [vmem:[%s11297_s8 + $0x328] sm:$0xff]  ;;  %v8346_v15 = vcombine.low %v5951_v57, %v5955_v8 }
 0x631   : > { %6625 = vmatprep.subr.bf16.mxu0 %v8259_v18  ;;  %6666 = vmatprep.subr.bf16.mxu1 %v8261_v22  ;;  %v8348_v18 = vcombine.low %v5952_v47, %v5956_v42  ;;  %v8339_v22 = vcombine.high %v5943_v43, %v5947_v10  ;;  %v8341_v28 = vcombine.high %v5944_v14, %v5948_v52 }
 0x632   : > { %v8307_v47 = vcombine.high %v5911_v16, %v5915_v13 }
 0x634   : > { %6626 = vmatpush1.bf16.msra.mxu0 %v8258_v27  ;;  %6667 = vmatpush1.bf16.msra.mxu1 %v8260_v51  ;;  %v5940_v27 = vld [vmem:[%s11297_s8 + $0x2e8] sm:$0xff]  ;;  %v8338_v51 = vcombine.low %v5943_v43, %v5947_v10  ;;  %v8306_v10 = vcombine.low %v5911_v16, %v5915_v13 }
 0x635   : > { %6627 = vmatprep.subr.bf16.mxu0 %v8251_v20  ;;  %6668 = vmatprep.subr.bf16.mxu1 %v8253_v25  ;;  %v8340_v20 = vcombine.low %v5944_v14, %v5948_v52  ;;  %v8331_v25 = vcombine.high %v5935_v30, %v5939_v33  ;;  %v8333_v35 = vcombine.high %v5936_v34, %v5940_v27 }
 0x638   : > { %6628 = vmatpush1.bf16.msra.mxu0 %v8250_v58  ;;  %6669 = vmatpush1.bf16.msra.mxu1 %v8252_v17  ;;  %v5932_v58 = vld [vmem:[%s11297_s8 + $0x2a8] sm:$0xff]  ;;  %v8330_v17 = vcombine.low %v5935_v30, %v5939_v33  ;;  %v5902_v30 = vld [vmem:[%s11297_s8 + $0x1b8] sm:$0xff] }
 0x639   : > { %6629 = vmatprep.subr.bf16.mxu0 %v8243_v60  ;;  %6670 = vmatprep.subr.bf16.mxu1 %v8245_v37  ;;  %v8332_v60 = vcombine.low %v5936_v34, %v5940_v27  ;;  %v8323_v37 = vcombine.high %v5927_v48, %v5931_v53  ;;  %v8325_v46 = vcombine.high %v5928_v3, %v5932_v58 }
 0x63c   : > { %6630 = vmatpush1.bf16.msra.mxu0 %v8242_v50  ;;  %6671 = vmatpush1.bf16.msra.mxu1 %v8244_v55  ;;  %v5924_v50 = vld [vmem:[%s11297_s8 + $0x268] sm:$0xff]  ;;  %v8322_v55 = vcombine.low %v5927_v48, %v5931_v53  ;;  %v5894_v48 = vld [vmem:[%s11297_s8 + $0x178] sm:$0xff] }
 0x63d   : > { %6631 = vmatprep.subr.bf16.mxu0 %v8363_v56  ;;  %6672 = vmatprep.subr.bf16.mxu1 %v8365_v59  ;;  %v8324_v56 = vcombine.low %v5928_v3, %v5932_v58  ;;  %v8317_v63 = vcombine.high %v5920_v1, %v5924_v50  ;;  %v8316_v57 = vcombine.low %v5920_v1, %v5924_v50 }
 0x640   : > { %6632 = vmatpush2.bf16.msra.mxu0 %v8362_v36  ;;  %6673 = vmatpush2.bf16.msra.mxu1 %v8364_v24  ;;  %v5912_v36 = vld [vmem:[%s11297_s8 + $0x208] sm:$0xff] }
 0x641   : > { %6633 = vmatprep.subr.bf16.mxu0 %v8355_v2  ;;  %6674 = vmatprep.subr.bf16.mxu1 %v8357_v38  ;;  %v5916_v24 = vld [vmem:[%s11297_s8 + $0x228] sm:$0xff]  ;;  %v8314_v38 = vcombine.low %v5919_v39, %v5923_v41  ;;  %v5886_v39 = vld [vmem:[%s11297_s8 + $0x138] sm:$0xff] }
 0x642   : > { %v8309_v42 = vcombine.high %v5912_v36, %v5916_v24  ;;  %v8308_v14 = vcombine.low %v5912_v36, %v5916_v24 }
 0x644   : > { %6634 = vmatpush2.bf16.msra.mxu0 %v8354_v0  ;;  %6675 = vmatpush2.bf16.msra.mxu1 %v8356_v5  ;;  %v5905_v0 = vld [vmem:[%s11297_s8 + $0x1d0] sm:$0xff] }
 0x645   : > { %6635 = vmatprep.subr.bf16.mxu0 %v8347_v31  ;;  %6676 = vmatprep.subr.bf16.mxu1 %v8349_v7  ;;  %v5909_v5 = vld [vmem:[%s11297_s8 + $0x1f0] sm:$0xff]  ;;  %v5906_v31 = vld [vmem:[%s11297_s8 + $0x1d8] sm:$0xff] }
 0x646   : > { %v5910_v7 = vld [vmem:[%s11297_s8 + $0x1f8] sm:$0xff]  ;;  %v8303_v52 = vcombine.high %v5905_v0, %v5909_v5  ;;  %v8302_v33 = vcombine.low %v5905_v0, %v5909_v5 }
 0x647   : > { %v8304_v34 = vcombine.low %v5906_v31, %v5910_v7 }
 0x648   : > { %6636 = vmatpush2.bf16.msra.mxu0 %v8346_v15  ;;  %6677 = vmatpush2.bf16.msra.mxu1 %v8348_v18  ;;  %v8305_v15 = vcombine.high %v5906_v31, %v5910_v7  ;;  %v5897_v18 = vld [vmem:[%s11297_s8 + $0x190] sm:$0xff] }
 0x649   : > { %6637 = vmatprep.subr.bf16.mxu0 %v8339_v22  ;;  %6678 = vmatprep.subr.bf16.mxu1 %v8341_v28  ;;  %v5901_v22 = vld [vmem:[%s11297_s8 + $0x1b0] sm:$0xff]  ;;  %v5898_v28 = vld [vmem:[%s11297_s8 + $0x198] sm:$0xff] }
 0x64a   : > { %v8295_v27 = vcombine.high %v5897_v18, %v5901_v22  ;;  %v8294_v53 = vcombine.low %v5897_v18, %v5901_v22  ;;  %v8296_v3 = vcombine.low %v5898_v28, %v5902_v30  ;;  %v5857_v7 = vld [vmem:[%s11297_s8 + $0x50] sm:$0xff] }
 0x64c   : > { %6638 = vmatpush2.bf16.msra.mxu0 %v8338_v51  ;;  %6679 = vmatpush2.bf16.msra.mxu1 %v8340_v20  ;;  %v8297_v51 = vcombine.high %v5898_v28, %v5902_v30  ;;  %v5889_v20 = vld [vmem:[%s11297_s8 + $0x150] sm:$0xff] }
 0x64d   : > { %6639 = vmatprep.subr.bf16.mxu0 %v8331_v25  ;;  %6680 = vmatprep.subr.bf16.mxu1 %v8333_v35  ;;  %v5893_v25 = vld [vmem:[%s11297_s8 + $0x170] sm:$0xff]  ;;  %v5890_v35 = vld [vmem:[%s11297_s8 + $0x158] sm:$0xff] }
 0x64e   : > { %v8287_v58 = vcombine.high %v5889_v20, %v5893_v25  ;;  %v8286_v41 = vcombine.low %v5889_v20, %v5893_v25  ;;  %v8288_v1 = vcombine.low %v5890_v35, %v5894_v48  ;;  %v5849_v28 = vld [vmem:[%s11297_s8 + $0x10] sm:$0xff] }
 0x64f   : > { %v5853_v30 = vld [vmem:[%s11297_s8 + $0x30] sm:$0xff] }
 0x650   : > { %6640 = vmatpush2.bf16.msra.mxu0 %v8330_v17  ;;  %6681 = vmatpush2.bf16.msra.mxu1 %v8332_v60  ;;  %v8289_v17 = vcombine.high %v5890_v35, %v5894_v48  ;;  %v5881_v60 = vld [vmem:[%s11297_s8 + $0x110] sm:$0xff]  ;;  %v8247_v20 = vcombine.high %v5849_v28, %v5853_v30 }
 0x651   : > { %v10638_v59 = vpop.f32.mrf.mxu1  ;;  %6641 = vmatprep.subr.bf16.mxu0 %v8323_v37  ;;  %6682 = vmatprep.subr.bf16.mxu1 %v8325_v46  ;;  %v5885_v37 = vld [vmem:[%s11297_s8 + $0x130] sm:$0xff]  ;;  %v5882_v46 = vld [vmem:[%s11297_s8 + $0x118] sm:$0xff] }
 0x652   : > { %v8279_v50 = vcombine.high %v5881_v60, %v5885_v37  ;;  %v8278_v16 = vcombine.low %v5881_v60, %v5885_v37  ;;  %v8280_v13 = vcombine.low %v5882_v46, %v5886_v39  ;;  %v5969_v35 = vld [vmem:[%s11297_s8 + $0x3d0] sm:$0xff] }
 0x653   : > { %v10652_v2 = vpop.f32.mrf.mxu1  ;;  %v5973_v48 = vld [vmem:[%s11297_s8 + $0x3f0] sm:$0xff] }
 0x654   : > { %6642 = vmatpush2.bf16.msra.mxu0 %v8322_v55  ;;  %6683 = vmatpush2.bf16.msra.mxu1 %v8324_v56  ;;  %v8281_v55 = vcombine.high %v5882_v46, %v5886_v39  ;;  %v5873_v56 = vld [vmem:[%s11297_s8 + $0xd0] sm:$0xff]  ;;  %v8367_v60 = vcombine.high %v5969_v35, %v5973_v48 }
 0x655   : > { %v4816_v8 = vpop.f32.mrf.mxu1  ;;  %6643 = vmatprep.subr.bf16.mxu0 %v8315_v61  ;;  %6684 = vmatprep.subr.bf16.mxu1 %v8317_v63  ;;  %v5877_v61 = vld [vmem:[%s11297_s8 + $0xf0] sm:$0xff]  ;;  %v5878_v63 = vld [vmem:[%s11297_s8 + $0xf8] sm:$0xff] }
 0x656   : > { %v8271_v36 = vcombine.high %v5873_v56, %v5877_v61  ;;  %v5866_v8 = vld [vmem:[%s11297_s8 + $0x98] sm:$0xff]  ;;  %v5961_v46 = vld [vmem:[%s11297_s8 + $0x390] sm:$0xff] }
 0x657   : > { %v4817_v43 = vpop.f32.mrf.mxu1  ;;  %v5965_v39 = vld [vmem:[%s11297_s8 + $0x3b0] sm:$0xff] }
 0x658   : > { %6644 = vmatpush2.bf16.msra.mxu0 %v8314_v38  ;;  %6685 = vmatpush2.bf16.msra.mxu1 %v8316_v57  ;;  %v5865_v38 = vld [vmem:[%s11297_s8 + $0x90] sm:$0xff] }
 0x659   : > { %6645 = vmatprep.subr.bf16.mxu0 %v8307_v47  ;;  %6686 = vmatprep.subr.bf16.mxu1 %v8309_v42  ;;  %v5869_v57 = vld [vmem:[%s11297_s8 + $0xb0] sm:$0xff]  ;;  %v5870_v47 = vld [vmem:[%s11297_s8 + $0xb8] sm:$0xff]  ;;  %v8270_v42 = vcombine.low %v5873_v56, %v5877_v61  ;;  %v8359_v56 = vcombine.high %v5961_v46, %v5965_v39 }
 0x65a   : > { %v8263_v5 = vcombine.high %v5865_v38, %v5869_v57  ;;  %v8265_v31 = vcombine.high %v5866_v8, %v5870_v47  ;;  %v5861_v43 = vld [vmem:[%s11297_s8 + $0x70] sm:$0xff] }
 0x65b   : > { %v8255_v18 = vcombine.high %v5857_v7, %v5861_v43 }
 0x65c   : > { %6646 = vmatpush2.bf16.msra.mxu0 %v8306_v10  ;;  %6687 = vmatpush2.bf16.msra.mxu1 %v8308_v14  ;;  %v5858_v10 = vld [vmem:[%s11297_s8 + $0x58] sm:$0xff] }
 0x65d   : > { %6697 = vmatprep.subr.bf16.mxu0 %v8303_v52  ;;  %6738 = vmatprep.subr.bf16.mxu1 %v8305_v15  ;;  %v5862_v14 = vld [vmem:[%s11297_s8 + $0x78] sm:$0xff]  ;;  %v8262_v52 = vcombine.low %v5865_v38, %v5869_v57  ;;  %v8264_v15 = vcombine.low %v5866_v8, %v5870_v47  ;;  %v5945_v8 = vld [vmem:[%s11297_s8 + $0x310] sm:$0xff] }
 0x65e   : > { %v8257_v22 = vcombine.high %v5858_v10, %v5862_v14  ;;  %v5949_v47 = vld [vmem:[%s11297_s8 + $0x330] sm:$0xff] }
 0x65f   : > { %6648 = vmatmul.mubr.bf16.vlgmr.msra.gmra.mxu0 %v9102_v40  ;;  %6689 = vmatmul.mubr.bf16.vlgmr.msra.gmra.mxu1 %v9102_v40 }
 0x660   : > { %6698 = vmatpush1.bf16.msra.mxu0 %v8302_v33  ;;  %6739 = vmatpush1.bf16.msra.mxu1 %v8304_v34  ;;  %v5850_v33 = vld [vmem:[%s11297_s8 + $0x18] sm:$0xff] }
 0x661   : > { %6699 = vmatprep.subr.bf16.mxu0 %v8295_v27  ;;  %6740 = vmatprep.subr.bf16.mxu1 %v8297_v51  ;;  %v5854_v34 = vld [vmem:[%s11297_s8 + $0x38] sm:$0xff]  ;;  %v8254_v27 = vcombine.low %v5857_v7, %v5861_v43  ;;  %v8256_v51 = vcombine.low %v5858_v10, %v5862_v14  ;;  %v8343_v7 = vcombine.high %v5945_v8, %v5949_v47  ;;  %v5937_v10 = vld [vmem:[%s11297_s8 + $0x2d0] sm:$0xff] }
 0x662   : > { %6729 = vmatprep.mubr.bf16.mxu0 %v9048_v21  ;;  %6770 = vmatprep.mubr.bf16.mxu1 %v9048_v21  ;;  %v5874_v21 = vld [vmem:[%s11297_s8 + $0xd8] sm:$0xff]  ;;  %v8249_v25 = vcombine.high %v5850_v33, %v5854_v34  ;;  %v5941_v14 = vld [vmem:[%s11297_s8 + $0x2f0] sm:$0xff] }
 0x663   : > { %v8273_v24 = vcombine.high %v5874_v21, %v5878_v63  ;;  %v8272_v0 = vcombine.low %v5874_v21, %v5878_v63  ;;  %v5953_v21 = vld [vmem:[%s11297_s8 + $0x350] sm:$0xff] }
 0x664   : > { %6700 = vmatpush1.bf16.msra.mxu0 %v8294_v53  ;;  %6741 = vmatpush1.bf16.msra.mxu1 %v8296_v3  ;;  %v5970_v53 = vld [vmem:[%s11297_s8 + $0x3d8] sm:$0xff]  ;;  %v5957_v63 = vld [vmem:[%s11297_s8 + $0x370] sm:$0xff] }
 0x665   : > { %6701 = vmatprep.subr.bf16.mxu0 %v8287_v58  ;;  %6742 = vmatprep.subr.bf16.mxu1 %v8289_v17  ;;  %v5974_v3 = vld [vmem:[%s11297_s8 + $0x3f8] sm:$0xff]  ;;  %v8246_v58 = vcombine.low %v5849_v28, %v5853_v30  ;;  %v8248_v17 = vcombine.low %v5850_v33, %v5854_v34  ;;  %v8351_v38 = vcombine.high %v5953_v21, %v5957_v63  ;;  %v5929_v33 = vld [vmem:[%s11297_s8 + $0x290] sm:$0xff] }
 0x666   : > { %v8369_v37 = vcombine.high %v5970_v53, %v5974_v3  ;;  %v8335_v28 = vcombine.high %v5937_v10, %v5941_v14  ;;  %v5933_v34 = vld [vmem:[%s11297_s8 + $0x2b0] sm:$0xff] }
 0x668   : > { %6702 = vmatpush1.bf16.msra.mxu0 %v8286_v41  ;;  %6743 = vmatpush1.bf16.msra.mxu1 %v8288_v1  ;;  %v5962_v41 = vld [vmem:[%s11297_s8 + $0x398] sm:$0xff] }
 0x669   : > { %6703 = vmatprep.subr.bf16.mxu0 %v8279_v50  ;;  %6744 = vmatprep.subr.bf16.mxu1 %v8281_v55  ;;  %v5966_v1 = vld [vmem:[%s11297_s8 + $0x3b8] sm:$0xff]  ;;  %v8366_v50 = vcombine.low %v5969_v35, %v5973_v48  ;;  %v8368_v55 = vcombine.low %v5970_v53, %v5974_v3  ;;  %v8327_v35 = vcombine.high %v5929_v33, %v5933_v34  ;;  %v5921_v53 = vld [vmem:[%s11297_s8 + $0x250] sm:$0xff] }
 0x66a   : > { %v8361_v61 = vcombine.high %v5962_v41, %v5966_v1  ;;  %v5925_v3 = vld [vmem:[%s11297_s8 + $0x270] sm:$0xff] }
 0x66c   : > { %6704 = vmatpush1.bf16.msra.mxu0 %v8278_v16  ;;  %6745 = vmatpush1.bf16.msra.mxu1 %v8280_v13  ;;  %v5954_v16 = vld [vmem:[%s11297_s8 + $0x358] sm:$0xff] }
 0x66d   : > { %6705 = vmatprep.subr.bf16.mxu0 %v8271_v36  ;;  %6746 = vmatprep.subr.bf16.mxu1 %v8273_v24  ;;  %v5958_v13 = vld [vmem:[%s11297_s8 + $0x378] sm:$0xff]  ;;  %v8358_v36 = vcombine.low %v5961_v46, %v5965_v39  ;;  %v8360_v24 = vcombine.low %v5962_v41, %v5966_v1  ;;  %v8319_v46 = vcombine.high %v5921_v53, %v5925_v3  ;;  %v5913_v41 = vld [vmem:[%s11297_s8 + $0x210] sm:$0xff] }
 0x66e   : > { %v8353_v57 = vcombine.high %v5954_v16, %v5958_v13  ;;  %v5917_v1 = vld [vmem:[%s11297_s8 + $0x230] sm:$0xff] }
 0x670   : > { %6706 = vmatpush1.bf16.msra.mxu0 %v8270_v42  ;;  %6747 = vmatpush1.bf16.msra.mxu1 %v8272_v0  ;;  %v5946_v42 = vld [vmem:[%s11297_s8 + $0x318] sm:$0xff] }
 0x671   : > { %6707 = vmatprep.subr.bf16.mxu0 %v8263_v5  ;;  %6748 = vmatprep.subr.bf16.mxu1 %v8265_v31  ;;  %v5950_v0 = vld [vmem:[%s11297_s8 + $0x338] sm:$0xff]  ;;  %v8350_v5 = vcombine.low %v5953_v21, %v5957_v63  ;;  %v8352_v31 = vcombine.low %v5954_v16, %v5958_v13  ;;  %v8311_v21 = vcombine.high %v5913_v41, %v5917_v1 }
 0x672   : > { %v8345_v43 = vcombine.high %v5946_v42, %v5950_v0  ;;  %v8310_v16 = vcombine.low %v5913_v41, %v5917_v1  ;;  %v8630_v41 = vld [vmem:[%s11299_s10 + $0x1e4] ss:$8 sps:$4 sm:$0xff]   ;;  %v8705_v1 = vld [vmem:[%s11299_s10 + $0x54] ss:$8 sps:$4 sm:$0xff]  }
 0x674   : > { %6708 = vmatpush1.bf16.msra.mxu0 %v8262_v52  ;;  %6749 = vmatpush1.bf16.msra.mxu1 %v8264_v15  ;;  %v5938_v52 = vld [vmem:[%s11297_s8 + $0x2d8] sm:$0xff] }
 0x675   : > { %6709 = vmatprep.subr.bf16.mxu0 %v8255_v18  ;;  %6750 = vmatprep.subr.bf16.mxu1 %v8257_v22  ;;  %v5942_v15 = vld [vmem:[%s11297_s8 + $0x2f8] sm:$0xff]  ;;  %v8342_v18 = vcombine.low %v5945_v8, %v5949_v47  ;;  %v8344_v22 = vcombine.low %v5946_v42, %v5950_v0  ;;  %v8606_v42 = vld [vmem:[%s11299_s10 + $0x164] ss:$8 sps:$4 sm:$0xff]  }
 0x676   : > { %v8337_v30 = vcombine.high %v5938_v52, %v5942_v15  ;;  %v8601_v8 = vld [vmem:[%s11299_s10 + $0x170] ss:$8 sps:$4 sm:$0xff]  }
 0x677   : > { %v3802_v47 = vld [vmem:[%s8983_s20 + $0x18] sm:$0xff] }
 0x678   : > { %6710 = vmatpush1.bf16.msra.mxu0 %v8254_v27  ;;  %6751 = vmatpush1.bf16.msra.mxu1 %v8256_v51  ;;  %v5930_v27 = vld [vmem:[%s11297_s8 + $0x298] sm:$0xff] }
 0x679   : > { %6711 = vmatprep.subr.bf16.mxu0 %v8247_v20  ;;  %6752 = vmatprep.subr.bf16.mxu1 %v8249_v25  ;;  %v5934_v51 = vld [vmem:[%s11297_s8 + $0x2b8] sm:$0xff]  ;;  %v8334_v20 = vcombine.low %v5937_v10, %v5941_v14  ;;  %v8336_v25 = vcombine.low %v5938_v52, %v5942_v15  ;;  %v4822_v10 = vadd.f32 %v10452_v44, %v3802_v47  ;;  %v8640_v47 = vld [vmem:[%s11299_s10 + $0x1a0] ss:$8 sps:$4 sm:$0xff]  }
 0x67a   : > { %v8329_v48 = vcombine.high %v5930_v27, %v5934_v51 }
 0x67c   : > { %6712 = vmatpush1.bf16.msra.mxu0 %v8246_v58  ;;  %6753 = vmatpush1.bf16.msra.mxu1 %v8248_v17  ;;  %v5922_v58 = vld [vmem:[%s11297_s8 + $0x258] sm:$0xff] }
 0x67d   : > { %6713 = vmatprep.subr.bf16.mxu0 %v8367_v60  ;;  %6754 = vmatprep.subr.bf16.mxu1 %v8369_v37  ;;  %v5926_v17 = vld [vmem:[%s11297_s8 + $0x278] sm:$0xff]  ;;  %v8326_v60 = vcombine.low %v5929_v33, %v5933_v34  ;;  %v8328_v37 = vcombine.low %v5930_v27, %v5934_v51  ;;  %v8612_v33 = vld [vmem:[%s11299_s10 + $0x144] ss:$8 sps:$4 sm:$0xff]   ;;  %v8610_v34 = vld [vmem:[%s11299_s10 + $0x140] ss:$8 sps:$4 sm:$0xff]  }
 0x67e   : > { %v8321_v39 = vcombine.high %v5922_v58, %v5926_v17  ;;  %v8615_v27 = vld [vmem:[%s11299_s10 + $0x134] ss:$8 sps:$4 sm:$0xff]   ;;  %v8613_v51 = vld [vmem:[%s11299_s10 + $0x130] ss:$8 sps:$4 sm:$0xff]  }
 0x680   : > { %6714 = vmatpush2.bf16.msra.mxu0 %v8366_v50  ;;  %6755 = vmatpush2.bf16.msra.mxu1 %v8368_v55  ;;  %v5914_v50 = vld [vmem:[%s11297_s8 + $0x218] sm:$0xff] }
 0x681   : > { %6715 = vmatprep.subr.bf16.mxu0 %v8359_v56  ;;  %6756 = vmatprep.subr.bf16.mxu1 %v8361_v61  ;;  %v5918_v55 = vld [vmem:[%s11297_s8 + $0x238] sm:$0xff]  ;;  %v8318_v56 = vcombine.low %v5921_v53, %v5925_v3  ;;  %v8320_v61 = vcombine.low %v5922_v58, %v5926_v17  ;;  %v8624_v53 = vld [vmem:[%s11299_s10 + $0x104] ss:$8 sps:$4 sm:$0xff]   ;;  %v8622_v3 = vld [vmem:[%s11299_s10 + $0x100] ss:$8 sps:$4 sm:$0xff]  }
 0x682   : > { %v8313_v63 = vcombine.high %v5914_v50, %v5918_v55  ;;  %v8312_v13 = vcombine.low %v5914_v50, %v5918_v55  ;;  %v8627_v58 = vld [vmem:[%s11299_s10 + $0x1f4] ss:$8 sps:$4 sm:$0xff]   ;;  %v8697_v17 = vld [vmem:[%s11299_s10 + $0x70] ss:$8 sps:$4 sm:$0xff]   ;;  %v8628_v50 = vld [vmem:[%s11299_s10 + $0x1e0] ss:$8 sps:$4 sm:$0xff]  }
 0x683   : > { %v8703_v55 = vld [vmem:[%s11299_s10 + $0x50] ss:$8 sps:$4 sm:$0xff]  }
 0x684   : > { %6716 = vmatpush2.bf16.msra.mxu0 %v8358_v36  ;;  %6757 = vmatpush2.bf16.msra.mxu1 %v8360_v24  ;;  %v8603_v36 = vld [vmem:[%s11299_s10 + $0x174] ss:$8 sps:$4 sm:$0xff]   ;;  %v3799_v24 = vld [vmem:[%s8983_s20] sm:$0xff] }
 0x685   : > { %6717 = vmatprep.subr.bf16.mxu0 %v8351_v38  ;;  %6758 = vmatprep.subr.bf16.mxu1 %v8353_v57  ;;  %v3801_v38 = vld [vmem:[%s8983_s20 + $0x10] sm:$0xff]  ;;  %v3800_v57 = vld [vmem:[%s8983_s20 + $0x8] sm:$0xff]  ;;  %v4819_v0 = vadd.f32 %v9748_v49, %v3799_v24 }
 0x686   : > { %v8604_v49 = vld [vmem:[%s11299_s10 + $0x160] ss:$8 sps:$4 sm:$0xff]   ;;  %v8709_v24 = vld [vmem:[%s11299_s10 + $0x30] ss:$8 sps:$4 sm:$0xff]  }
 0x688   : > { %6718 = vmatpush2.bf16.msra.mxu0 %v8350_v5  ;;  %6759 = vmatpush2.bf16.msra.mxu1 %v8352_v31  ;;  %v4821_v5 = vadd.f32 %v10438_v45, %v3801_v38  ;;  %v4820_v31 = vadd.f32 %v9750_v62, %v3800_v57  ;;  %v8639_v38 = vld [vmem:[%s11299_s10 + $0x1b4] ss:$8 sps:$4 sm:$0xff]   ;;  %v8637_v57 = vld [vmem:[%s11299_s10 + $0x1b0] ss:$8 sps:$4 sm:$0xff]  }
 0x689   : > { %6719 = vmatprep.subr.bf16.mxu0 %v8343_v7  ;;  %6760 = vmatprep.subr.bf16.mxu1 %v8345_v43 }
 0x68c   : > { %6720 = vmatpush2.bf16.msra.mxu0 %v8342_v18  ;;  %6761 = vmatpush2.bf16.msra.mxu1 %v8344_v22 }
 0x68d   : > { %6721 = vmatprep.subr.bf16.mxu0 %v8335_v28  ;;  %6762 = vmatprep.subr.bf16.mxu1 %v8337_v30 }
 0x690   : > { %6722 = vmatpush2.bf16.msra.mxu0 %v8334_v20  ;;  %6763 = vmatpush2.bf16.msra.mxu1 %v8336_v25  ;;  %v8618_v20 = vld [vmem:[%s11299_s10 + $0x124] ss:$8 sps:$4 sm:$0xff]   ;;  %v8616_v25 = vld [vmem:[%s11299_s10 + $0x120] ss:$8 sps:$4 sm:$0xff]  }
 0x691   : > { %6723 = vmatprep.subr.bf16.mxu0 %v8327_v35  ;;  %6764 = vmatprep.subr.bf16.mxu1 %v8329_v48  ;;  %v8621_v35 = vld [vmem:[%s11299_s10 + $0x114] ss:$8 sps:$4 sm:$0xff]   ;;  %v8619_v48 = vld [vmem:[%s11299_s10 + $0x110] ss:$8 sps:$4 sm:$0xff]  }
 0x694   : > { %6724 = vmatpush2.bf16.msra.mxu0 %v8326_v60  ;;  %6765 = vmatpush2.bf16.msra.mxu1 %v8328_v37  ;;  %v8699_v60 = vld [vmem:[%s11299_s10 + $0x74] ss:$8 sps:$4 sm:$0xff]   ;;  %v8702_v37 = vld [vmem:[%s11299_s10 + $0x64] ss:$8 sps:$4 sm:$0xff]  }
 0x695   : > { %6725 = vmatprep.subr.bf16.mxu0 %v8319_v46  ;;  %6766 = vmatprep.subr.bf16.mxu1 %v8321_v39  ;;  %v8625_v46 = vld [vmem:[%s11299_s10 + $0x1f0] ss:$8 sps:$4 sm:$0xff]   ;;  %v8700_v39 = vld [vmem:[%s11299_s10 + $0x60] ss:$8 sps:$4 sm:$0xff]  }
 0x698   : > { %6726 = vmatpush2.bf16.msra.mxu0 %v8318_v56  ;;  %6767 = vmatpush2.bf16.msra.mxu1 %v8320_v61  ;;  %v8633_v56 = vld [vmem:[%s11299_s10 + $0x1d4] ss:$8 sps:$4 sm:$0xff]   ;;  %v8708_v61 = vld [vmem:[%s11299_s10 + $0x44] ss:$8 sps:$4 sm:$0xff]  }
 0x699   : > { %6727 = vmatprep.subr.bf16.mxu0 %v8311_v21  ;;  %6768 = vmatprep.subr.bf16.mxu1 %v8313_v63  ;;  %v8631_v21 = vld [vmem:[%s11299_s10 + $0x1d0] ss:$8 sps:$4 sm:$0xff]   ;;  %v8706_v63 = vld [vmem:[%s11299_s10 + $0x40] ss:$8 sps:$4 sm:$0xff]  }
 0x69c   : > { %6728 = vmatpush2.bf16.msra.mxu0 %v8310_v16  ;;  %6769 = vmatpush2.bf16.msra.mxu1 %v8312_v13  ;;  %v8636_v16 = vld [vmem:[%s11299_s10 + $0x1c4] ss:$8 sps:$4 sm:$0xff]   ;;  %v8711_v13 = vld [vmem:[%s11299_s10 + $0x34] ss:$8 sps:$4 sm:$0xff]  }
 0x69d   : > { %7282 = vmatprep.subr.bf16.mxu0 %v8603_v36  ;;  %7483 = vmatprep.subr.bf16.mxu1 %v8699_v60  ;;  %v8634_v36 = vld [vmem:[%s11299_s10 + $0x1c0] ss:$8 sps:$4 sm:$0xff]   ;;  %v8660_v60 = vld [vmem:[%s11299_s10 + $0x244] ss:$8 sps:$4 sm:$0xff]  }
 0x69f   : > { %6730 = vmatmul.mubr.bf16.vlgmr.msra.gmra.mxu0 %v9102_v40  ;;  %6771 = vmatmul.mubr.bf16.vlgmr.msra.gmra.mxu1 %v9102_v40  ;;  %v5709_v7 = vpop.f32.mrf.mxu0  ;;  %v5750_v43 = vpop.f32.mrf.mxu1  ;;  %v8609_v40 = vld [vmem:[%s11299_s10 + $0x154] ss:$8 sps:$4 sm:$0xff]  }
 0x6a0   : > { %v10869_v14 = vadd.f32 %v5709_v7, %v4819_v0  ;;  %v10871_v52 = vadd.f32 %v5750_v43, %v4821_v5  ;;  %7283 = vmatpush1.bf16.msra.mxu0 %v8601_v8  ;;  %7314 = vmatprep.mubr.bf16.mxu0 %v9639_v19  ;;  %v8607_v19 = vld [vmem:[%s11299_s10 + $0x150] ss:$8 sps:$4 sm:$0xff]   ;;  %v8642_v8 = vld [vmem:[%s11299_s10 + $0x1a4] ss:$8 sps:$4 sm:$0xff]   ;;  %v8651_v7 = vld [vmem:[%s11299_s10 + $0x274] ss:$8 sps:$4 sm:$0xff]  }
 0x6a1   : > { %v5711_v62 = vpop.f32.mrf.mxu0  ;;  %v5752_v45 = vpop.f32.mrf.mxu1  ;;  %7284 = vmatprep.subr.bf16.mxu0 %v8606_v42  ;;  %7484 = vmatpush1.bf16.msra.mxu1 %v8697_v17  ;;  %v8645_v42 = vld [vmem:[%s11299_s10 + $0x194] ss:$8 sps:$4 sm:$0xff]   ;;  %v8643_v0 = vld [vmem:[%s11299_s10 + $0x190] ss:$8 sps:$4 sm:$0xff]   ;;  %v8648_v5 = vld [vmem:[%s11299_s10 + $0x184] ss:$8 sps:$4 sm:$0xff]  }
 0x6a2   : > { %v10880_v15 = vadd.f32 %v5711_v62, %v4820_v31  ;;  %v10882_v44 = vadd.f32 %v5752_v45, %v4822_v10  ;;  %7485 = vmatprep.subr.bf16.mxu1 %v8702_v37  ;;  %v8646_v31 = vld [vmem:[%s11299_s10 + $0x180] ss:$8 sps:$4 sm:$0xff]   ;;  %v3805_v10 = vld [vmem:[%s8983_s20 + $0x30] sm:$0xff]  ;;  %v3806_v45 = vld [vmem:[%s8983_s20 + $0x38] sm:$0xff] }
 0x6a3   : > { %v5713_v18 = vpop.f32.mrf.mxu0  ;;  %v5754_v22 = vpop.f32.mrf.mxu1  ;;  %v3803_v43 = vld [vmem:[%s8983_s20 + $0x20] sm:$0xff]  ;;  %v8649_v62 = vld [vmem:[%s11299_s10 + $0x270] ss:$8 sps:$4 sm:$0xff]  }
 0x6a4   : > { %7285 = vmatpush1.bf16.msra.mxu0 %v8604_v49  ;;  %v3804_v49 = vld [vmem:[%s8983_s20 + $0x28] sm:$0xff]  ;;  %v4823_v18 = vadd.f32 %v9752_v9, %v3803_v43  ;;  %v4825_v22 = vadd.f32 %v10638_v59, %v3805_v10  ;;  %s8890_s20 = smov [#allocation6]  }
 0x6a5   : > { %v5714_v28 = vpop.f32.mrf.mxu0  ;;  %v5755_v30 = vpop.f32.mrf.mxu1  ;;  %7286 = vmatprep.subr.bf16.mxu0 %v8609_v40  ;;  %7486 = vmatpush1.bf16.msra.mxu1 %v8700_v39  ;;  %v8654_v40 = vld [vmem:[%s11299_s10 + $0x264] ss:$8 sps:$4 sm:$0xff]   ;;  %v8652_v9 = vld [vmem:[%s11299_s10 + $0x260] ss:$8 sps:$4 sm:$0xff]   ;;  %s7810_s21 = sshll.u32 %s8890_s20, 4  ;;  %s7811_s21 = int_to_ptr.vmem [resolvable:$true] %s7810_s21 }
 0x6a6   : > { %7487 = vmatprep.subr.bf16.mxu1 %v8705_v1  ;;  %v8720_v37 = vld [vmem:[%s11299_s10 + $0x4] ss:$8 sps:$4 sm:$0xff]   ;;  %v8718_v39 = vld [vmem:[%s11299_s10] ss:$8 sps:$4 sm:$0xff]   ;;  %v8723_v1 = vld [vmem:[%s11299_s10 + $0xf4] ss:$8 sps:$4 sm:$0xff]   ;;  %p8830_p11 = scmp.lt.s32.totalorder %s7811_s21, %s7811_s21 }
 0x6a7   : > { %v8678_v43 = vld [vmem:[%s11299_s10 + $0x2e4] ss:$8 sps:$4 sm:$0xff]   ;;  %v8736_v10 = vld [vmem:[%s11299_s10 + $0xa0] ss:$8 sps:$4 sm:$0xff]   ;;  %s8823_s25 = scalar_lea.vmem %s7811_s21, 256 }
 0x6a8   : > { %7287 = vmatpush1.bf16.msra.mxu0 %v8607_v19  ;;  %v4824_v19 = vadd.f32 %v9754_v54, %v3804_v49  ;;  %v8741_v49 = vld [vmem:[%s11299_s10 + $0x94] ss:$8 sps:$4 sm:$0xff]   ;;  %p8824_p8 = scmp.ne.s32.totalorder %s7811_s21, %s8823_s25  ;;  %p8831_p12 = scmp.lt.s32.totalorder %s8823_s25, %s8823_s25 }
 0x6a9   : > { %7288 = vmatprep.subr.bf16.mxu0 %v8612_v33  ;;  %7488 = vmatpush1.bf16.msra.mxu1 %v8703_v55  ;;  %v8714_v33 = vld [vmem:[%s11299_s10 + $0x24] ss:$8 sps:$4 sm:$0xff]   ;;  %v8721_v55 = vld [vmem:[%s11299_s10 + $0xf0] ss:$8 sps:$4 sm:$0xff]  }
 0x6aa   : > { %7489 = vmatprep.subr.bf16.mxu1 %v8708_v61  ;;  %v8726_v61 = vld [vmem:[%s11299_s10 + $0xe4] ss:$8 sps:$4 sm:$0xff]   ;;  %p8825_p9 = pnand %p8824_p8, %p8488_p7  ;;  %p8832_p13 = por %p8831_p12, %p8830_p11 }
 0x6ac   : > { %7289 = vmatpush1.bf16.msra.mxu0 %v8610_v34  ;;  %v4826_v34 = vadd.f32 %v10652_v2, %v3806_v45  ;;  %v8657_v2 = vld [vmem:[%s11299_s10 + $0x254] ss:$8 sps:$4 sm:$0xff]   ;;  %p8826_p10 = pneg %p8825_p9 }
 0x6ad   : > { %7290 = vmatprep.subr.bf16.mxu0 %v8615_v27  ;;  %7490 = vmatpush1.bf16.msra.mxu1 %v8706_v63  ;;  %v8724_v63 = vld [vmem:[%s11299_s10 + $0xe0] ss:$8 sps:$4 sm:$0xff]   ;;  %v8681_v45 = vld [vmem:[%s11299_s10 + $0x2d4] ss:$8 sps:$4 sm:$0xff]  }
 0x6ae   : > { %7491 = vmatprep.subr.bf16.mxu1 %v8711_v13  ;;  %v8729_v13 = vld [vmem:[%s11299_s10 + $0xd4] ss:$8 sps:$4 sm:$0xff]   ;;  %p8833_p0 = pnand %p8832_p13, %p8826_p10 }
 0x6b0   : > { %7291 = vmatpush1.bf16.msra.mxu0 %v8613_v51 }
 0x6b1   : > { %7292 = vmatprep.subr.bf16.mxu0 %v8618_v20  ;;  %7492 = vmatpush1.bf16.msra.mxu1 %v8709_v24  ;;  %v8727_v24 = vld [vmem:[%s11299_s10 + $0xd0] ss:$8 sps:$4 sm:$0xff]  }
 0x6b2   : > { %7493 = vmatprep.subr.bf16.mxu1 %v8714_v33  ;;  %v8687_v33 = vld [vmem:[%s11299_s10 + $0x2b4] ss:$8 sps:$4 sm:$0xff]  }
 0x6b4   : > { %7293 = vmatpush1.bf16.msra.mxu0 %v8616_v25 }
 0x6b5   : > { %7294 = vmatprep.subr.bf16.mxu0 %v8621_v35 }
 0x6b8   : > { %7295 = vmatpush1.bf16.msra.mxu0 %v8619_v48  ;;  %v8717_v48 = vld [vmem:[%s11299_s10 + $0x14] ss:$8 sps:$4 sm:$0xff]  }
 0x6b9   : > { %7296 = vmatprep.subr.bf16.mxu0 %v8624_v53  ;;  %v8655_v53 = vld [vmem:[%s11299_s10 + $0x250] ss:$8 sps:$4 sm:$0xff]  }
 0x6bc   : > { %7297 = vmatpush1.bf16.msra.mxu0 %v8622_v3  ;;  %v8715_v3 = vld [vmem:[%s11299_s10 + $0x10] ss:$8 sps:$4 sm:$0xff]  }
 0x6bd   : > { %7298 = vmatprep.subr.bf16.mxu0 %v8627_v58 }
 0x6c0   : > { %7299 = vmatpush2.bf16.msra.mxu0 %v8625_v46  ;;  %v8658_v46 = vld [vmem:[%s11299_s10 + $0x240] ss:$8 sps:$4 sm:$0xff]  }
 0x6c1   : > { %7300 = vmatprep.subr.bf16.mxu0 %v8630_v41  ;;  %v8663_v41 = vld [vmem:[%s11299_s10 + $0x234] ss:$8 sps:$4 sm:$0xff]  }
 0x6c4   : > { %7301 = vmatpush2.bf16.msra.mxu0 %v8628_v50  ;;  %v8661_v50 = vld [vmem:[%s11299_s10 + $0x230] ss:$8 sps:$4 sm:$0xff]  }
 0x6c5   : > { %7302 = vmatprep.subr.bf16.mxu0 %v8633_v56  ;;  %v8666_v56 = vld [vmem:[%s11299_s10 + $0x224] ss:$8 sps:$4 sm:$0xff]  }
 0x6c8   : > { %7303 = vmatpush2.bf16.msra.mxu0 %v8631_v21  ;;  %v8664_v21 = vld [vmem:[%s11299_s10 + $0x220] ss:$8 sps:$4 sm:$0xff]  }
 0x6c9   : > { %7304 = vmatprep.subr.bf16.mxu0 %v8636_v16  ;;  %v8669_v16 = vld [vmem:[%s11299_s10 + $0x214] ss:$8 sps:$4 sm:$0xff]  }
 0x6cc   : > { %7305 = vmatpush2.bf16.msra.mxu0 %v8634_v36  ;;  %v8667_v36 = vld [vmem:[%s11299_s10 + $0x210] ss:$8 sps:$4 sm:$0xff]  }
 0x6cd   : > { %7306 = vmatprep.subr.bf16.mxu0 %v8639_v38  ;;  %v8672_v38 = vld [vmem:[%s11299_s10 + $0x204] ss:$8 sps:$4 sm:$0xff]  }
 0x6d0   : > { %7307 = vmatpush2.bf16.msra.mxu0 %v8637_v57  ;;  %v8732_v57 = vld [vmem:[%s11299_s10 + $0xc4] ss:$8 sps:$4 sm:$0xff]  }
 0x6d1   : > { %7308 = vmatprep.subr.bf16.mxu0 %v8642_v8  ;;  %v8670_v8 = vld [vmem:[%s11299_s10 + $0x200] ss:$8 sps:$4 sm:$0xff]  }
 0x6d4   : > { %7309 = vmatpush2.bf16.msra.mxu0 %v8640_v47  ;;  %v8730_v47 = vld [vmem:[%s11299_s10 + $0xc0] ss:$8 sps:$4 sm:$0xff]  }
 0x6d5   : > { %7310 = vmatprep.subr.bf16.mxu0 %v8645_v42  ;;  %v8675_v42 = vld [vmem:[%s11299_s10 + $0x2f4] ss:$8 sps:$4 sm:$0xff]  }
 0x6d8   : > { %7311 = vmatpush2.bf16.msra.mxu0 %v8643_v0  ;;  %v8735_v0 = vld [vmem:[%s11299_s10 + $0xb4] ss:$8 sps:$4 sm:$0xff]  }
 0x6d9   : > { %7312 = vmatprep.subr.bf16.mxu0 %v8648_v5  ;;  %v8733_v5 = vld [vmem:[%s11299_s10 + $0xb0] ss:$8 sps:$4 sm:$0xff]  }
 0x6dc   : > { %7313 = vmatpush2.bf16.msra.mxu0 %v8646_v31  ;;  %v8738_v31 = vld [vmem:[%s11299_s10 + $0xa4] ss:$8 sps:$4 sm:$0xff]  }
 0x6dd   : > { %7716 = vmatprep.subr.bf16.mxu0 %v8651_v7  ;;  %v8673_v7 = vld [vmem:[%s11299_s10 + $0x2f0] ss:$8 sps:$4 sm:$0xff]  }
 0x6df   : > { %v5791_v28 = vpop.f32.mrf.mxu0  ;;  %v5832_v30 = vpop.f32.mrf.mxu1  ;;  %7315 = vmatmul.mubr.bf16.vlgmr.msra.gmra.mxu0 %v9641_v26  ;;  %v8712_v26 = vld [vmem:[%s11299_s10 + $0x20] ss:$8 sps:$4 sm:$0xff]  }
 0x6e0   : > { %v11016_v27 = vadd.f32 %v5791_v28, %v4823_v18  ;;  %v11018_v51 = vadd.f32 %v5832_v30, %v4825_v22  ;;  %7717 = vmatpush1.bf16.msra.mxu0 %v8649_v62  ;;  %7748 = vmatprep.mubr.bf16.mxu0 %v10267_v29  ;;  %v8676_v62 = vld [vmem:[%s11299_s10 + $0x2e0] ss:$8 sps:$4 sm:$0xff]   ;;  %v8744_v18 = vld [vmem:[%s11299_s10 + $0x84] ss:$8 sps:$4 sm:$0xff]   ;;  %v8679_v22 = vld [vmem:[%s11299_s10 + $0x2d0] ss:$8 sps:$4 sm:$0xff]  }
 0x6e1   : > { %v5793_v54 = vpop.f32.mrf.mxu0  ;;  %v5834_v59 = vpop.f32.mrf.mxu1  ;;  %7718 = vmatprep.subr.bf16.mxu0 %v8654_v40  ;;  %7494 = vmatpush1.bf16.msra.mxu1 %v8712_v26  ;;  %v8739_v40 = vld [vmem:[%s11299_s10 + $0x90] ss:$8 sps:$4 sm:$0xff]   ;;  %v8742_v28 = vld [vmem:[%s11299_s10 + $0x80] ss:$8 sps:$4 sm:$0xff]  }
 0x6e2   : > { %v11030_v20 = vadd.f32 %v5793_v54, %v4824_v19  ;;  %v11032_v25 = vadd.f32 %v5834_v59, %v4826_v34  ;;  %7495 = vmatprep.subr.bf16.mxu1 %v8717_v48  ;;  %v8684_v19 = vld [vmem:[%s11299_s10 + $0x2c4] ss:$8 sps:$4 sm:$0xff]   ;;  %v8682_v30 = vld [vmem:[%s11299_s10 + $0x2c0] ss:$8 sps:$4 sm:$0xff]   ;;  %v8685_v34 = vld [vmem:[%s11299_s10 + $0x2b0] ss:$8 sps:$4 sm:$0xff]  }
 0x6e3   : > { %v5795_v29 = vpop.f32.mrf.mxu0  ;;  %v5836_v35 = vpop.f32.mrf.mxu1  ;;  %v8688_v26 = vld [vmem:[%s11299_s10 + $0x2a0] ss:$8 sps:$4 sm:$0xff]   ;;  %v8693_v54 = vld [vmem:[%s11299_s10 + $0x294] ss:$8 sps:$4 sm:$0xff]   ;;  %v8691_v59 = vld [vmem:[%s11299_s10 + $0x290] ss:$8 sps:$4 sm:$0xff]  }
 0x6e4   : > { %7719 = vmatpush1.bf16.msra.mxu0 %v8652_v9  ;;  %v8690_v9 = vld [vmem:[%s11299_s10 + $0x2a4] ss:$8 sps:$4 sm:$0xff]   ;;  %v8694_v29 = vld [vmem:[%s11299_s10 + $0x280] ss:$8 sps:$4 sm:$0xff]  }
 0x6e5   : > { %v5796_v58 = vpop.f32.mrf.mxu0  ;;  %v5837_v17 = vpop.f32.mrf.mxu1  ;;  %7720 = vmatprep.subr.bf16.mxu0 %v8657_v2  ;;  %7496 = vmatpush1.bf16.msra.mxu1 %v8715_v3  ;;  %v8696_v2 = vld [vmem:[%s11299_s10 + $0x284] ss:$8 sps:$4 sm:$0xff]  }
 0x6e6   : > { %7497 = vmatprep.subr.bf16.mxu1 %v8720_v37 }
 0x6e8   : > { %7721 = vmatpush1.bf16.msra.mxu0 %v8655_v53 }
 0x6e9   : > { %7722 = vmatprep.subr.bf16.mxu0 %v8660_v60  ;;  %7498 = vmatpush1.bf16.msra.mxu1 %v8718_v39  ;;  %v6799_v39 = vsub.s32 2, %v9185_v4 }
 0x6ea   : > { %7499 = vmatprep.subr.bf16.mxu1 %v8723_v1 }
 0x6ec   : > { %7723 = vmatpush1.bf16.msra.mxu0 %v8658_v46  ;;  %v6787_v46 = vld [vmem:[%s11298_s9] sm:$0xff] }
 0x6ed   : > { %7724 = vmatprep.subr.bf16.mxu0 %v8663_v41  ;;  %7500 = vmatpush2.bf16.msra.mxu1 %v8721_v55  ;;  %v6792_v1 = vrot.slane %v6787_v46, %v9195_v12  ;;  %v6800_v55 = vrot.slane %v6787_v46, %v6799_v39 }
 0x6ee   : > { %7501 = vmatprep.subr.bf16.mxu1 %v8726_v61  ;;  %v6796_v61 = vrot.slane %v6787_v46, %v9192_v11 }
 0x6f0   : > { %7725 = vmatpush1.bf16.msra.mxu0 %v8661_v50 }
 0x6f1   : > { %7726 = vmatprep.subr.bf16.mxu0 %v8666_v56  ;;  %7502 = vmatpush2.bf16.msra.mxu1 %v8724_v63 }
 0x6f2   : > { %7503 = vmatprep.subr.bf16.mxu1 %v8729_v13 }
 0x6f4   : > { %7727 = vmatpush1.bf16.msra.mxu0 %v8664_v21 }
 0x6f5   : > { %7728 = vmatprep.subr.bf16.mxu0 %v8669_v16  ;;  %7504 = vmatpush2.bf16.msra.mxu1 %v8727_v24 }
 0x6f6   : > { %7505 = vmatprep.subr.bf16.mxu1 %v8732_v57 }
 0x6f8   : > { %7729 = vmatpush1.bf16.msra.mxu0 %v8667_v36 }
 0x6f9   : > { %7730 = vmatprep.subr.bf16.mxu0 %v8672_v38  ;;  %7506 = vmatpush2.bf16.msra.mxu1 %v8730_v47 }
 0x6fa   : > { %7507 = vmatprep.subr.bf16.mxu1 %v8735_v0  ;;  %v6811_v0 = vsub.s32 5, %v9185_v4 }
 0x6fc   : > { %7731 = vmatpush1.bf16.msra.mxu0 %v8670_v8 }
 0x6fd   : > { %7732 = vmatprep.subr.bf16.mxu0 %v8675_v42  ;;  %7508 = vmatpush2.bf16.msra.mxu1 %v8733_v5  ;;  %v6815_v42 = vsub.s32 6, %v9185_v4 }
 0x6fe   : > { %7509 = vmatprep.subr.bf16.mxu1 %v8738_v31  ;;  %v6819_v31 = vsub.s32 7, %v9185_v4 }
 0x700   : > { %7733 = vmatpush2.bf16.msra.mxu0 %v8673_v7 }
 0x701   : > { %7734 = vmatprep.subr.bf16.mxu0 %v8678_v43  ;;  %7510 = vmatpush2.bf16.msra.mxu1 %v8736_v10 }
 0x702   : > { %7511 = vmatprep.subr.bf16.mxu1 %v8741_v49  ;;  %v6816_v49 = vrot.slane %v6787_v46, %v6815_v42 }
 0x704   : > { %7735 = vmatpush2.bf16.msra.mxu0 %v8676_v62 }
 0x705   : > { %7736 = vmatprep.subr.bf16.mxu0 %v8681_v45  ;;  %7512 = vmatpush2.bf16.msra.mxu1 %v8739_v40 }
 0x706   : > { %7513 = vmatprep.subr.bf16.mxu1 %v8744_v18  ;;  %v6812_v18 = vrot.slane %v6787_v46, %v6811_v0 }
 0x708   : > { %7737 = vmatpush2.bf16.msra.mxu0 %v8679_v22 }
 0x709   : > { %7738 = vmatprep.subr.bf16.mxu0 %v8684_v19  ;;  %7514 = vmatpush2.bf16.msra.mxu1 %v8742_v28  ;;  %v6820_v28 = vrot.slane %v6787_v46, %v6819_v31 }
 0x70c   : > { %7739 = vmatpush2.bf16.msra.mxu0 %v8682_v30 }
 0x70d   : > { %7740 = vmatprep.subr.bf16.mxu0 %v8687_v33 }
 0x710   : > { %7741 = vmatpush2.bf16.msra.mxu0 %v8685_v34 }
 0x711   : > { %7742 = vmatprep.subr.bf16.mxu0 %v8690_v9 }
 0x714   : > { %7743 = vmatpush2.bf16.msra.mxu0 %v8688_v26 }
 0x715   : > { %7744 = vmatprep.subr.bf16.mxu0 %v8693_v54 }
 0x718   : > { %7745 = vmatpush2.bf16.msra.mxu0 %v8691_v59 }
 0x719   : > { %7746 = vmatprep.subr.bf16.mxu0 %v8696_v2 }
 0x71c   : > { %7747 = vmatpush2.bf16.msra.mxu0 %v8694_v29 }
 0x71f   : > { %v6649_v35 = vpop.f32.mrf.mxu0  ;;  %v6690_v48 = vpop.f32.mrf.mxu1  ;;  %7749 = vmatmul.mubr.bf16.vlgmr.msra.gmra.mxu0 %v10271_v32  ;;  %v6803_v32 = vsub.s32 3, %v9185_v4 }
 0x720   : > { %v6779_v41 = vadd.f32 %v6649_v35, %v10869_v14  ;;  %v6781_v50 = vadd.f32 %v6690_v48, %v10871_v52 }
 0x721   : > { %v6651_v53 = vpop.f32.mrf.mxu0  ;;  %v6692_v3 = vpop.f32.mrf.mxu1  ;;  %v6804_v13 = vrot.slane %v6787_v46, %v6803_v32 }
 0x722   : > { %v6780_v56 = vadd.f32 %v6651_v53, %v10880_v15  ;;  %v6829_v21 = vadd.f32 %v6792_v1, %v6779_v41  ;;  %v6831_v63 = vadd.f32 %v6800_v55, %v6781_v50  ;;  %v6782_v16 = vadd.f32 %v6692_v3, %v10882_v44  ;;  %v498_v41 = vld [vmem:[#allocation3] sm:$0xff] }
 0x723   : > { %v6653_v58 = vpop.f32.mrf.mxu0  ;;  %v6694_v17 = vpop.f32.mrf.mxu1  ;;  %v6807_v15 = vsub.s32 4, %v9185_v4 }
 0x724   : > { %v6830_v36 = vadd.f32 %v6796_v61, %v6780_v56  ;;  %v8370_v24 = vmul.f32 -1.442695, %v6829_v21  ;;  %v8372_v38 = vmul.f32 -1.442695, %v6831_v63  ;;  %v6832_v14 = vadd.f32 %v6804_v13, %v6782_v16 }
 0x725   : > { %v6654_v60 = vpop.f32.mrf.mxu0  ;;  %v6695_v37 = vpop.f32.mrf.mxu1  ;;  %v6808_v10 = vrot.slane %v6787_v46, %v6807_v15 }
 0x726   : > { %v8371_v57 = vmul.f32 -1.442695, %v6830_v36  ;;  %8769 = vpow2.f32 %v8370_v24  ;;  %v8373_v52 = vmul.f32 -1.442695, %v6832_v14  ;;  %v497_v60 = vld [vmem:[#allocation3 + $0x8] sm:$0xff] }
 0x727   : > { %8771 = vpow2.f32 %v8372_v38 }
 0x728   : > { %8773 = vpow2.f32 %v8371_v57 }
 0x729   : > { %8775 = vpow2.f32 %v8373_v52 }
 0x733   : > { %v8770_v8 = vpop.eup %8769 }
 0x734   : > { %v8772_v47 = vpop.eup %8771  ;;  %v6843_v5 = vadd.f32 1.0, %v8770_v8 }
 0x735   : > { %v8774_v44 = vpop.eup %8773  ;;  %v6855_v7 = vadd.f32 1.0, %v8772_v47 }
 0x736   : > { %v8776_v43 = vpop.eup %8775  ;;  %v6844_v62 = vadd.f32 1.0, %v8774_v44  ;;  %8777 = vrcp.f32 %v6843_v5 }
 0x737   : > { %8779 = vrcp.f32 %v6855_v7  ;;  %v6856_v30 = vadd.f32 1.0, %v8776_v43  ;;  %v7759_v43 = vld [vmem:[%s11300_s11] sm:$0x3] }
 0x738   : > { %8781 = vrcp.f32 %v6844_v62 }
 0x743   : > { %v8778_v58 = vpop.eup %8777 }
 0x744   : > { %v8780_v17 = vpop.eup %8779 }
 0x745   : > { %v6875_v46 = vmul.f32 %v8780_v17, %v497_v60  ;;  %v8810_v17 = vld [vmem:[#allocation5 + $0x58] sm:$0xff] }
 0x75f   : > { %v6731_v45 = vpop.f32.mrf.mxu0  ;;  %v6772_v40 = vpop.f32.mrf.mxu1 }
 0x760   : > { %v6783_v22 = vadd.f32 %v6731_v45, %v11016_v27  ;;  %v6785_v19 = vadd.f32 %v6772_v40, %v11018_v51 }
 0x761   : > { %v6733_v33 = vpop.f32.mrf.mxu0  ;;  %v6774_v34 = vpop.f32.mrf.mxu1 }
 0x762   : > { %v6833_v9 = vadd.f32 %v6808_v10, %v6783_v22  ;;  %v6835_v26 = vadd.f32 %v6816_v49, %v6785_v19  ;;  %v6784_v54 = vadd.f32 %v6733_v33, %v11030_v20  ;;  %v6786_v59 = vadd.f32 %v6774_v34, %v11032_v25  ;;  %v8782_v20 = vpop.eup %8781 }
 0x763   : > { %v6735_v2 = vpop.f32.mrf.mxu0  ;;  %v6776_v29 = vpop.f32.mrf.mxu1 }
 0x764   : > { %8783 = vtanh.f32 %v6833_v9  ;;  %v8374_v35 = vmul.f32 -1.442695, %v6835_v26  ;;  %v6834_v48 = vadd.f32 %v6812_v18, %v6784_v54  ;;  %v6836_v27 = vadd.f32 %v6820_v28, %v6786_v59 }
 0x765   : > { %8785 = vrcp.f32 %v6856_v30  ;;  %v6736_v51 = vpop.f32.mrf.mxu0  ;;  %v6777_v53 = vpop.f32.mrf.mxu1 }
 0x766   : > { %8787 = vpow2.f32 %v8374_v35  ;;  %v8375_v3 = vmul.f32 -1.442695, %v6836_v27  ;;  %v8808_v51 = vld [vmem:[#allocation5 + $0x8] sm:$0xff] }
 0x767   : > { %8789 = vtanh.f32 %v6834_v48  ;;  %v8807_v48 = vld [vmem:[#allocation5 + $0x48] sm:$0xff] }
 0x768   : > { %8791 = vpow2.f32 %v8375_v3  ;;  %v8809_v3 = vld [vmem:[#allocation5 + $0x40] sm:$0xff] }
 0x771   : > { %v8784_v37 = vpop.eup %8783 }
 0x772   : > { %v8786_v25 = vpop.eup %8785  ;;  %v6877_v39 = vmul.f32 %v8784_v37, %v8778_v58 }
 0x773   : > { %v8788_v1 = vpop.eup %8787  ;;  %v6876_v61 = vmul.f32 %v8786_v25, %v498_v41  ;;  %v8812_v25 = vld [vmem:[#allocation5 + $0x38] sm:$0xff] }
 0x774   : > { %v8790_v50 = vpop.eup %8789  ;;  %v6879_v55 = vadd.f32 %v6877_v39, %v6875_v46  ;;  %v6869_v32 = vadd.f32 1.0, %v8788_v1  ;;  %v8813_v39 = vld [vmem:[#allocation5 + $0x70] sm:$0xff]  ;;  %v8814_v1 = vld [vmem:[#allocation5 + $0x78] sm:$0xff] }
 0x775   : > { %v8792_v56 = vpop.eup %8791  ;;  %v6878_v21 = vmul.f32 %v8790_v50, %v8782_v20  ;;  %v8811_v20 = vld [vmem:[#allocation5 + $0x20] sm:$0xff] }
 0x776   : > { %8793 = vtanh.f32 %v6879_v55  ;;  %6887 = vst [vmem:[#allocation3 + $0x8] sm:$0xff] %v6879_v55  ;;  %7793 = vst [vmem:[#allocation8] sm:$0xff] %v6879_v55  ;;  %v6870_v63 = vadd.f32 1.0, %v8792_v56  ;;  %v8815_v55 = vld [vmem:[#allocation5 + $0x10] sm:$0xff] }
 0x777   : > { %8795 = vrcp.f32 %v6869_v32  ;;  %v6880_v16 = vadd.f32 %v6878_v21, %v6876_v61  ;;  %v8816_v56 = vld [vmem:[#allocation5 + $0x30] sm:$0xff]  ;;  %v8817_v21 = vld [vmem:[#allocation5 + $0x68] sm:$0xff] }
 0x778   : > { %8797 = vrcp.f32 %v6870_v63 }
 0x779   : > { %8799 = vtanh.f32 %v6880_v16  ;;  %6888 = vst [vmem:[#allocation3] sm:$0xff] %v6880_v16  ;;  %7794 = vst [vmem:[#allocation8 + $0x8] sm:$0xff] %v6880_v16  ;;  %v8818_v16 = vld [vmem:[#allocation5 + $0x28] sm:$0xff] }
 0x783   : > { %v8794_v13 = vpop.eup %8793 }
 0x784   : > { %v8796_v36 = vpop.eup %8795 }
 0x785   : > { %v8798_v24 = vpop.eup %8797  ;;  %v6883_v38 = vmul.f32 %v8796_v36, %v8794_v13  ;;  %v8819_v36 = vld [vmem:[#allocation5 + $0x60] sm:$0xff] }
 0x786   : > { %v8800_v14 = vpop.eup %8799 }
 0x787   : > { %v6884_v57 = vmul.f32 %v8800_v14, %v8798_v24  ;;  %6885 = vst [vmem:[#allocation2] sm:$0xff] %v6883_v38  ;;  %7791 = vst [vmem:[#allocation6] sm:$0xff] %v6883_v38  ;;  %v7056_v15 = vpack.c.bf16 %v6883_v38, %v6883_v38 }
 0x789   : > { %6886 = vst [vmem:[#allocation2 + $0x8] sm:$0xff] %v6884_v57  ;;  %v7057_v52 = vpack.c.bf16 %v6884_v57, %v6884_v57  ;;  %7792 = vst [vmem:[#allocation6 + $0x8] sm:$0xff] %v6884_v57  ;;  %v6894_v8 = vcombine.low %v6883_v38, %v6884_v57  ;;  %v6895_v47 = vcombine.high %v6883_v38, %v6884_v57  ;;  %v8820_v38 = vld [vmem:[#allocation5] sm:$0xff]  ;;  %v8821_v57 = vld [vmem:[#allocation5 + $0x18] sm:$0xff] }
 0x78b   : > { %7515 = vmatprep.mubr.bf16.mxu1 %v7057_v52  ;;  %v6902_v42 = vrot.slane %v6894_v8, %v9188_v6  ;;  %v6909_v0 = vrot.slane %v6895_v47, %v9188_v6  ;;  %v8822_v8 = vld [vmem:[#allocation5 + $0x50] sm:$0xff] }
 0x78c   : > { %7516 = vmatmul.mubr.bf16.vlgmr.msra.gmra.mxu1 %v7056_v15 }
 0x78d   : > { %v6910_v44 = vcombine.high %v6902_v42, %v6902_v42  ;;  %v6911_v5 = vcombine.high %v6909_v0, %v6909_v0  ;;  %v6918_v31 = vrot.slane %v6902_v42, %v9188_v6  ;;  %v6925_v7 = vrot.slane %v6909_v0, %v9188_v6 }
 0x78f   : > { %v6932_v10 = vrot.slane %v6910_v44, %v9188_v6  ;;  %v6939_v49 = vrot.slane %v6911_v5, %v9188_v6  ;;  %v6940_v62 = vcombine.high %v6918_v31, %v6918_v31  ;;  %v6941_v45 = vcombine.high %v6925_v7, %v6925_v7 }
 0x790   : > { %v6947_v40 = vrot.slane %v6918_v31, %v9195_v12  ;;  %v6951_v18 = vrot.slane %v6918_v31, %v9192_v11  ;;  %v6979_v22 = vrot.slane %v6925_v7, %v9195_v12  ;;  %v6983_v19 = vrot.slane %v6925_v7, %v9192_v11 }
 0x791   : > { %v6942_v28 = vcombine.high %v6932_v10, %v6932_v10  ;;  %v6943_v30 = vcombine.high %v6939_v49, %v6939_v49  ;;  %v6955_v4 = vrot.slane %v6932_v10, %v9195_v12  ;;  %v6959_v23 = vrot.slane %v6932_v10, %v9192_v11 }
 0x792   : > { %v6963_v33 = vrot.slane %v6940_v62, %v9195_v12  ;;  %v6967_v6 = vrot.slane %v6940_v62, %v9192_v11  ;;  %v6987_v34 = vrot.slane %v6939_v49, %v9195_v12  ;;  %v6991_v9 = vrot.slane %v6939_v49, %v9192_v11 }
 0x793   : > { %v6971_v26 = vrot.slane %v6942_v28, %v9195_v12  ;;  %v6975_v54 = vrot.slane %v6942_v28, %v9192_v11  ;;  %v6995_v59 = vrot.slane %v6941_v45, %v9195_v12  ;;  %v6999_v2 = vrot.slane %v6941_v45, %v9192_v11 }
 0x794   : > { %v7003_v29 = vrot.slane %v6943_v30, %v9195_v12  ;;  %v7007_v35 = vrot.slane %v6943_v30, %v9192_v11  ;;  %v7024_v27 = vsel %vm11202_vm12, %v6947_v40, %v8807_v48  ;;  %v7025_v53 = vsel %vm11202_vm12, %v6951_v18, %v8808_v51 }
 0x795   : > { %v7026_v58 = vsel %vm11202_vm12, %v6955_v4, %v8809_v3  ;;  %v7027_v60 = vsel %vm11202_vm12, %v6959_v23, %v8810_v17  ;;  %v7028_v37 = vsel %vm11202_vm12, %v6963_v33, %v8811_v20  ;;  %v7029_v46 = vsel %vm11202_vm12, %v6967_v6, %v8812_v25  ;;  %7040 = vst [vmem:[#allocation5 + $0x48] sm:$0xff] %v7024_v27 }
 0x796   : > { %7041 = vst [vmem:[#allocation5 + $0x8] sm:$0xff] %v7025_v53  ;;  %v7030_v41 = vsel %vm11202_vm12, %v6971_v26, %v8813_v39  ;;  %v7031_v50 = vsel %vm11202_vm12, %v6975_v54, %v8814_v1  ;;  %v7032_v32 = vsel %vm11202_vm12, %v6979_v22, %v8815_v55  ;;  %v7033_v61 = vsel %vm11202_vm12, %v6983_v19, %v8816_v56 }
 0x797   : > { %7042 = vst [vmem:[#allocation5 + $0x40] sm:$0xff] %v7026_v58  ;;  %7043 = vst [vmem:[#allocation5 + $0x58] sm:$0xff] %v7027_v60  ;;  %v7034_v63 = vsel %vm11202_vm12, %v6987_v34, %v8817_v21  ;;  %v7035_v13 = vsel %vm11202_vm12, %v6991_v9, %v8818_v16  ;;  %v7036_v24 = vsel %vm11202_vm12, %v6995_v59, %v8819_v36 }
 0x798   : > { %7044 = vst [vmem:[#allocation5 + $0x20] sm:$0xff] %v7028_v37  ;;  %7045 = vst [vmem:[#allocation5 + $0x38] sm:$0xff] %v7029_v46  ;;  %v7037_v14 = vsel %vm11202_vm12, %v6999_v2, %v8820_v38  ;;  %v7038_v52 = vsel %vm11202_vm12, %v7003_v29, %v8821_v57  ;;  %v7039_v47 = vsel %vm11202_vm12, %v7007_v35, %v8822_v8 }
 0x799   : > { %7046 = vst [vmem:[#allocation5 + $0x70] sm:$0xff] %v7030_v41  ;;  %7047 = vst [vmem:[#allocation5 + $0x78] sm:$0xff] %v7031_v50  ;;  %v7764_v22 = vrot.slane %v7759_v43, %v9195_v12  ;;  %v7768_v19 = vrot.slane %v7759_v43, %v9192_v11 }
 0x79a   : > { %7048 = vst [vmem:[#allocation5 + $0x10] sm:$0xff] %v7032_v32  ;;  %7049 = vst [vmem:[#allocation5 + $0x30] sm:$0xff] %v7033_v61 }
 0x79b   : > { %7050 = vst [vmem:[#allocation5 + $0x68] sm:$0xff] %v7034_v63  ;;  %7051 = vst [vmem:[#allocation5 + $0x28] sm:$0xff] %v7035_v13 }
 0x79c   : > { %7052 = vst [vmem:[#allocation5 + $0x60] sm:$0xff] %v7036_v24  ;;  %7053 = vst [vmem:[#allocation5] sm:$0xff] %v7037_v14 }
 0x79d   : > { %7054 = vst [vmem:[#allocation5 + $0x18] sm:$0xff] %v7038_v52  ;;  %7055 = vst [vmem:[#allocation5 + $0x50] sm:$0xff] %v7039_v47 }
 0x79f   : > { %v7316_v15 = vpop.f32.mrf.mxu0 }
 0x7a1   : > { %v7318_v42 = vpop.f32.mrf.mxu0 }
 0x7a3   : > { %v7320_v0 = vpop.f32.mrf.mxu0 }
 0x7a5   : > { %v7321_v44 = vpop.f32.mrf.mxu0 }
 0x7df   : > { %v7750_v5 = vpop.f32.mrf.mxu0 }
 0x7e1   : > { %v7752_v31 = vpop.f32.mrf.mxu0 }
 0x7e3   : > { %v7754_v7 = vpop.f32.mrf.mxu0 }
 0x7e5   : > { %v7755_v10 = vpop.f32.mrf.mxu0 }
 0x84c   : > { %v7517_v49 = vpop.f32.mrf.mxu1 }
 0x84d   : > { %v7518_v62 = vadd.f32 %v7517_v49, %v7316_v15 }
 0x84e   : > { %v7519_v45 = vpop.f32.mrf.mxu1 }
 0x84f   : > { %v7757_v40 = vadd.f32 %v7750_v5, %v7518_v62  ;;  %v7520_v18 = vadd.f32 %v7519_v45, %v7318_v42 }
 0x850   : > { %v7521_v28 = vpop.f32.mrf.mxu1 }
 0x851   : > { %v7758_v30 = vadd.f32 %v7752_v31, %v7520_v18  ;;  %v7771_v23 = vadd.f32 %v7764_v22, %v7757_v40 }
 0x852   : > { %v7522_v4 = vpop.f32.mrf.mxu1 }
 0x853   : > { %v7772_v33 = vadd.f32 %v7768_v19, %v7758_v30 }
 0x855   : > { %v7773_v6 = vmax.f32 %v7771_v23, %v7772_v33 }
 0x857   : > { %7774 = vmax.xlane.f32.xlu1 %v7773_v6 }
 0x8e0   : > { %v7775_v34 = vpop.xlane.xlu1 %7774 }
 0x8e1   : > { %v7776_v9 = vsub.f32 %v7771_v23, %v7775_v34  ;;  %v7777_v26 = vsub.f32 %v7772_v33, %v7775_v34 }
 0x8e3   : > { %v7778_v54 = vmul.f32 1.442695, %v7776_v9  ;;  %v7780_v59 = vmul.f32 1.442695, %v7777_v26 }
 0x8e5   : > { %8801 = vpow2.f32 %v7778_v54 }
 0x8e6   : > { %8803 = vpow2.f32 %v7780_v59 }
 0x8f2   : > { %v8802_v2 = vpop.eup %8801 }
 0x8f3   : > { %v8804_v12 = vpop.eup %8803 }
 0x8f4   : > { %v7782_v29 = vadd.f32 %v8804_v12, %v8802_v2 }
 0x8f6   : > { %7783 = vadd.xlane.f32.xlu0 %v7782_v29 }
 0x8f7   : > { %8836 = shalt.err (!%p8833_p0)
}
 0x8f8   : > { %8481 = dma.vmem_to_hbm [thread:$0]  (%p8488_p7), %s7811_s21, 256, %s11302_s13, [#allocation7]  }
 0x8f9   : > { %s8847_s28 = scalar_lea.vmem %s7822_s24, 256  ;;  %p8854_p4 = scmp.lt.s32.totalorder %s7822_s24, %s7822_s24 }
 0x8fa   : > { %p8848_p1 = scmp.ne.s32.totalorder %s7822_s24, %s8847_s28  ;;  %p8855_p5 = scmp.lt.s32.totalorder %s8847_s28, %s8847_s28 }
 0x8fc   : > { %p8849_p2 = pnand %p8848_p1, %p8488_p7  ;;  %p8856_p6 = por %p8855_p5, %p8854_p4 }
 0x8fe   : > { %p8850_p3 = pneg %p8849_p2 }
 0x900   : > { %p8857_p8 = pnand %p8856_p6, %p8850_p3 }
 0x902   : > { %8860 = shalt.err (!%p8857_p8)
}
 0x903   : > { %8483 = dma.vmem_to_hbm [thread:$0]  (%p8488_p7), %s7822_s24, 256, %s11303_s14, [#allocation9]  }
 0x97f   : > { %v7784_v11 = vpop.xlane.xlu0 %7783 }
 0x980   : > { %8805 = vlog2.f32 %v7784_v11 }
 0x98d   : > { %v8806_v35 = vpop.eup %8805 }
 0x98e   : > { %v7786_v48 = vmul.f32 0.6931472, %v8806_v35 }
 0x990   : > { %v7787_v27 = vsub.f32 %v7776_v9, %v7786_v48  ;;  %v7788_v51 = vsub.f32 %v7777_v26, %v7786_v48 }
 0x992   : > { %7789 = vst [vmem:[%s8988_s23] sm:$0xff] %v7787_v27  ;;  %7790 = vst [vmem:[%s8988_s23 + $0x8] sm:$0xff] %v7788_v51 }
 0x993   : > { %8876 = dma.done.wait (%p8488_p7), [#allocation7], 256  }
 0x994   : > { %8878 = vsyncadd (%p8488_p7), [#allocation7], 4294967040 }
 0x995   : > { %8880 = dma.done.wait (%p8488_p7), [#allocation9], 256  }
 0x996   : > { %8882 = vsyncadd (%p8488_p7), [#allocation9], 4294967040 }
 0x997 PF: > { %s27_s29 = sadd.s32 1, %s8885_s29  }
 0x998   : > { %p24_p9 = scmp.ge.s32.totalorder %s27_s29, 10  }
 0x99a   :  { %26 = sbr.rel (!%p24_p9) target bundleno = 2 (0x2), region = 119 }
 0x99f   :  { %7846 = vsyncpa [#allocation7], 1 }
 0x9a0   :  { %7848 = vsyncpa [#allocation7 + $0x1], 1 }
 0x9a1   :  { %7849 = vsyncpa [#allocation9], 1 }

</bundles_post_ra>
